<compile_context>
chip_gen: v5e
topology: v5e:2x2
jax: 0.10.0
libtpu: 0.0.40
codegen_flags: <defaults>
</compile_context>

<pallas_src>
import functools

import jax
import jax.numpy as jnp
from jax.experimental import pallas as pl
from jax.experimental.pallas import tpu as pltpu

LANE = 128
SUBLANE = 8


def _round_up(x, m):
    return ((x + m - 1) // m) * m


def _default_act_dtype():
    # bf16 tanh only where the EUP has bf16 (v6e/v7x); f32 elsewhere.
    try:
        kind = jax.devices()[0].device_kind.lower()
    except Exception:
        return jnp.float32
    return jnp.bfloat16 if ("v6" in kind or "v7" in kind) else jnp.float32


# ---------------------------------------------------------------------------
# Kernel
# ---------------------------------------------------------------------------
def cbow_kernel(x_ref, w1_ref, b1_ref, w2_ref, b2_ref, w3_ref, b3_ref,
                wc_ref, bc_ref, out_ref, *, n_out, act_dtype):
    # Sequence sum as a rolling accumulation: the live set is one (TM, D) f32
    # accumulator instead of a full (TM, S, D) f32 materialization.
    S = x_ref.shape[1]
    acc = x_ref[:, 0, :].astype(jnp.float32)
    for s in range(1, S):                      # S is small & static -> unrolled
        acc = acc + x_ref[:, s, :].astype(jnp.float32)

    def dense_tanh(h, w_ref, b_ref):
        # bf16 MXU inputs, f32 accumulation; tanh in act_dtype (bf16 on
        # v6e/v7x halves EUP work; f32 on v5e which has no bf16 EUP/VPU).
        y = jnp.dot(h.astype(jnp.bfloat16), w_ref[...],
                    preferred_element_type=jnp.float32) + b_ref[...]
        return jnp.tanh(y.astype(act_dtype))

    h = dense_tanh(acc, w1_ref, b1_ref)                               # (TM, H)
    h = dense_tanh(h, w2_ref, b2_ref)                                 # (TM, H)
    h = dense_tanh(h, w3_ref, b3_ref)                                 # (TM, H)

    logits = jnp.dot(h.astype(jnp.bfloat16), wc_ref[...],
                     preferred_element_type=jnp.float32) + bc_ref[...]   # (TM, N_pad)

    # log_softmax over the first n_out lanes only (rest is zero padding).
    # exp() is computed on the masked values so padded lanes are exactly 0
    # and can never overflow, regardless of the magnitude of the valid max.
    col = jax.lax.broadcasted_iota(jnp.int32, logits.shape, 1)
    valid = col < n_out
    masked = jnp.where(valid, logits, jnp.float32(-jnp.inf))
    m = jnp.max(masked, axis=1, keepdims=True)
    sumexp = jnp.sum(jnp.exp(masked - m), axis=1, keepdims=True)
    # Lane-dense (TM, 128) store; padded lanes hold garbage and are sliced
    # off by the wrapper.
    out_ref[...] = (logits - m) - jnp.log(sumexp)


# ---------------------------------------------------------------------------
# Parameter handling
# ---------------------------------------------------------------------------
def init_params(key, vector_dim=300, hidden=512, n_out=2):
    """PyTorch-Linear-style uniform init; weights stored as (in, out), f32."""
    def linear(k, fan_in, fan_out):
        kw, kb = jax.random.split(k)
        bound = 1.0 / jnp.sqrt(fan_in)
        w = jax.random.uniform(kw, (fan_in, fan_out), jnp.float32, -bound, bound)
        b = jax.random.uniform(kb, (1, fan_out), jnp.float32, -bound, bound)
        return w, b

    k1, k2, k3, k4 = jax.random.split(key, 4)
    w1, b1 = linear(k1, vector_dim, hidden)
    w2, b2 = linear(k2, hidden, hidden)
    w3, b3 = linear(k3, hidden, hidden)
    wc, bc = linear(k4, hidden, n_out)
    return (w1, b1, w2, b2, w3, b3, wc, bc)


def prepare_params(params):
    """One-time prep: pad the classifier to a lane-dense (128-wide) output and
    pre-cast the matmul weights to bf16.  The input feature dim stays at its
    native size (w1 is (300, 512)); x is never padded in HBM."""
    w1, b1, w2, b2, w3, b3, wc, bc = params
    H = w1.shape[1]
    n_out = wc.shape[1]
    n_pad = _round_up(max(n_out, LANE), LANE)        # 2 -> 128 (lane-dense store)

    wcp = jnp.zeros((H, n_pad), jnp.float32).at[:, :n_out].set(wc).astype(jnp.bfloat16)
    bcp = jnp.zeros((1, n_pad), jnp.float32).at[:, :n_out].set(bc)

    prepped = (w1.astype(jnp.bfloat16), b1,
               w2.astype(jnp.bfloat16), b2,
               w3.astype(jnp.bfloat16), b3,
               wcp, bcp)
    return prepped, n_out


# ---------------------------------------------------------------------------
# Wrapper
# ---------------------------------------------------------------------------
def cbow_forward(x, prepped_params, n_out, *, block_b=512, act_dtype=None):
    """x: (B, S, D) float (f32 or bf16). prepped_params: from prepare_params."""
    w1, b1, w2, b2, w3, b3, wc, bc = prepped_params
    B, S, D = x.shape
    H = w1.shape[1]
    N_pad = wc.shape[1]
    assert w1.shape[0] == D

    if act_dtype is None:
        act_dtype = _default_act_dtype()

    # Pad batch only to the sublane granule (8); NEVER pad/cast the seq or
    # feature dims of x in HBM (that would add a full extra HBM pass).
    B8 = _round_up(B, SUBLANE)
    if B8 != B:
        x = jnp.pad(x, ((0, B8 - B), (0, 0), (0, 0)))

    # Batch tile: large to amortize per-grid-step overhead, but halved when
    # the batch allows >= 2 grid steps so "parallel" can use both v7x
    # TensorCores.  Partial final tiles are handled by Pallas bounds clamping.
    if B8 >= 2 * SUBLANE:
        TM = min(block_b, _round_up((B8 + 1) // 2, SUBLANE))
    else:
        TM = B8
    TM = max(TM, SUBLANE)
    num_tiles = (B8 + TM - 1) // TM

    # Generation-safe VMEM budget for the chosen tile (x double-buffer +
    # double-buffered resident weights + output + temporaries headroom).
    d_lanes = _round_up(D, LANE)
    weight_bytes = sum(int(a.size) * a.dtype.itemsize for a in prepped_params)
    vmem_est = (2 * TM * S * d_lanes * x.dtype.itemsize
                + 2 * weight_bytes
                + 2 * TM * N_pad * 4
                + 10 * TM * H * 4)
    vmem_limit = int(min(max(vmem_est, 32 * 1024 * 1024), 56 * 1024 * 1024))

    cost = pl.CostEstimate(
        flops=int(2 * B8 * (D * H + 2 * H * H + H * N_pad) + B8 * (S - 1) * D),
        transcendentals=int(3 * B8 * H + B8 * N_pad),
        bytes_accessed=int(x.size * x.dtype.itemsize + weight_bytes + B8 * N_pad * 4),
    )

    kernel = functools.partial(cbow_kernel, n_out=n_out, act_dtype=act_dtype)
    inv2 = lambda i: (0, 0)    # grid-invariant: weights stay resident in VMEM

    out = pl.pallas_call(
        kernel,
        out_shape=jax.ShapeDtypeStruct((B8, N_pad), jnp.float32),
        grid=(num_tiles,),
        in_specs=[
            # Streamed x tile, unpadded: S and D are full-extent blocks.
            pl.BlockSpec((TM, S, D), lambda i: (i, 0, 0)),
            pl.BlockSpec((D, H), inv2),
            pl.BlockSpec((1, H), inv2),
            pl.BlockSpec((H, H), inv2),
            pl.BlockSpec((1, H), inv2),
            pl.BlockSpec((H, H), inv2),
            pl.BlockSpec((1, H), inv2),
            pl.BlockSpec((H, N_pad), inv2),
            pl.BlockSpec((1, N_pad), inv2),
        ],
        out_specs=pl.BlockSpec((TM, N_pad), lambda i: (i, 0)),
        compiler_params=pltpu.CompilerParams(
            dimension_semantics=("parallel",),    # megacore sharding on v7x
            vmem_limit_bytes=vmem_limit,
        ),
        cost_estimate=cost,
    )(x, w1, b1, w2, b2, w3, b3, wc, bc)

    return out[:B, :n_out]


# ---------------------------------------------------------------------------
# References
# ---------------------------------------------------------------------------
def cbow_reference_f32(x, params):
    """Pure-f32 JAX reference mirroring the PyTorch forward exactly."""
    w1, b1, w2, b2, w3, b3, wc, bc = params
    s1 = jnp.sum(x, axis=1)
    h = jnp.tanh(s1 @ w1 + b1)
    h = jnp.tanh(h @ w2 + b2)
    h = jnp.tanh(h @ w3 + b3)
    logits = h @ wc + bc
    return jax.nn.log_softmax(logits, axis=1)


def cbow_reference_matched(x, prepped_params, n_out, act_dtype):
    """Plain-JAX reference using the kernel's exact dtype recipe."""
    w1, b1, w2, b2, w3, b3, wc, bc = prepped_params
    s1 = jnp.sum(x.astype(jnp.float32), axis=1)

    def dense_tanh(h, w, b):
        y = jnp.dot(h.astype(jnp.bfloat16), w,
                    preferred_element_type=jnp.float32) + b
        return jnp.tanh(y.astype(act_dtype))

    h = dense_tanh(s1, w1, b1)
    h = dense_tanh(h, w2, b2)
    h = dense_tanh(h, w3, b3)
    logits = jnp.dot(h.astype(jnp.bfloat16), wc,
                     preferred_element_type=jnp.float32) + bc
    return jax.nn.log_softmax(logits[:, :n_out], axis=1)


# ---------------------------------------------------------------------------
if __name__ == "__main__":
    B, S, D, n_out = 2, 8, 300, 2   # module defaults: vector_dim=300, n_out=2

    key = jax.random.PRNGKey(0)
    kx, kp = jax.random.split(key)
    x = jax.random.normal(kx, (B, S, D), jnp.float32)
    params = init_params(kp, vector_dim=D, hidden=512, n_out=n_out)

    prepped, n_out_real = prepare_params(params)
    act_dtype = _default_act_dtype()

    out = cbow_forward(x, prepped, n_out_real, act_dtype=act_dtype)
    out = jax.block_until_ready(out)

    assert out.shape == (B, n_out), out.shape
    assert bool(jnp.all(jnp.isfinite(out))), "non-finite output"

    # Matches a plain-JAX reference using the same bf16-matmul / tanh recipe ...
    ref_m = cbow_reference_matched(x, prepped, n_out_real, act_dtype)
    assert jnp.allclose(out, ref_m, atol=2e-2, rtol=2e-2), (out, ref_m)
    # ... and stays close to the pure-f32 (PyTorch-equivalent) forward.
    ref_32 = cbow_reference_f32(x, params)
    assert jnp.allclose(out, ref_32, atol=5e-2, rtol=5e-2), (out, ref_32)

    print("KERNEL_OK")
</pallas_src>

<mosaic_0001>
module attributes {stable_mosaic.version = 11 : i64} {
  func.func @cbow_kernel(%arg0: i32, %arg1: memref<8x8x300xf32, #tpu.memory_space<vmem>>, %arg2: memref<300x512xbf16, #tpu.memory_space<vmem>>, %arg3: memref<1x512xf32, #tpu.memory_space<vmem>>, %arg4: memref<512x512xbf16, #tpu.memory_space<vmem>>, %arg5: memref<1x512xf32, #tpu.memory_space<vmem>>, %arg6: memref<512x512xbf16, #tpu.memory_space<vmem>>, %arg7: memref<1x512xf32, #tpu.memory_space<vmem>>, %arg8: memref<512x128xbf16, #tpu.memory_space<vmem>>, %arg9: memref<1x128xf32, #tpu.memory_space<vmem>>, %arg10: memref<8x128xf32, #tpu.memory_space<vmem>>) attributes {dimension_semantics = [#tpu.dimension_semantics<parallel>], iteration_bounds = array<i64: 1>, scalar_prefetch = 0 : i64, scratch_operands = 0 : i64, tpu.core_type = #tpu.core_type<tc>, window_params = [{transform_indices = @transform_0, window_bounds = array<i64: 8, 8, 300>}, {pipeline_mode = #tpu.pipeline_mode<synchronous>, transform_indices = @transform_1, window_bounds = array<i64: 300, 512>}, {pipeline_mode = #tpu.pipeline_mode<synchronous>, transform_indices = @transform_2, window_bounds = array<i64: 1, 512>}, {pipeline_mode = #tpu.pipeline_mode<synchronous>, transform_indices = @transform_3, window_bounds = array<i64: 512, 512>}, {pipeline_mode = #tpu.pipeline_mode<synchronous>, transform_indices = @transform_4, window_bounds = array<i64: 1, 512>}, {pipeline_mode = #tpu.pipeline_mode<synchronous>, transform_indices = @transform_5, window_bounds = array<i64: 512, 512>}, {pipeline_mode = #tpu.pipeline_mode<synchronous>, transform_indices = @transform_6, window_bounds = array<i64: 1, 512>}, {pipeline_mode = #tpu.pipeline_mode<synchronous>, transform_indices = @transform_7, window_bounds = array<i64: 512, 128>}, {pipeline_mode = #tpu.pipeline_mode<synchronous>, transform_indices = @transform_8, window_bounds = array<i64: 1, 128>}, {transform_indices = @transform_9, window_bounds = array<i64: 8, 128>}]} {
    %c0 = arith.constant 0 : index
    %c0_0 = arith.constant 0 : index
    %c0_1 = arith.constant 0 : index
    %0 = vector.load %arg1[%c0, %c0_0, %c0_1] : memref<8x8x300xf32, #tpu.memory_space<vmem>>, vector<8x1x300xf32>
    %1 = vector.shape_cast %0 : vector<8x1x300xf32> to vector<8x300xf32>
    %c0_2 = arith.constant 0 : index
    %c1 = arith.constant 1 : index
    %c0_3 = arith.constant 0 : index
    %2 = vector.load %arg1[%c0_2, %c1, %c0_3] : memref<8x8x300xf32, #tpu.memory_space<vmem>>, vector<8x1x300xf32>
    %3 = vector.shape_cast %2 : vector<8x1x300xf32> to vector<8x300xf32>
    %4 = arith.addf %1, %3 : vector<8x300xf32>
    %c0_4 = arith.constant 0 : index
    %c2 = arith.constant 2 : index
    %c0_5 = arith.constant 0 : index
    %5 = vector.load %arg1[%c0_4, %c2, %c0_5] : memref<8x8x300xf32, #tpu.memory_space<vmem>>, vector<8x1x300xf32>
    %6 = vector.shape_cast %5 : vector<8x1x300xf32> to vector<8x300xf32>
    %7 = arith.addf %4, %6 : vector<8x300xf32>
    %c0_6 = arith.constant 0 : index
    %c3 = arith.constant 3 : index
    %c0_7 = arith.constant 0 : index
    %8 = vector.load %arg1[%c0_6, %c3, %c0_7] : memref<8x8x300xf32, #tpu.memory_space<vmem>>, vector<8x1x300xf32>
    %9 = vector.shape_cast %8 : vector<8x1x300xf32> to vector<8x300xf32>
    %10 = arith.addf %7, %9 : vector<8x300xf32>
    %c0_8 = arith.constant 0 : index
    %c4 = arith.constant 4 : index
    %c0_9 = arith.constant 0 : index
    %11 = vector.load %arg1[%c0_8, %c4, %c0_9] : memref<8x8x300xf32, #tpu.memory_space<vmem>>, vector<8x1x300xf32>
    %12 = vector.shape_cast %11 : vector<8x1x300xf32> to vector<8x300xf32>
    %13 = arith.addf %10, %12 : vector<8x300xf32>
    %c0_10 = arith.constant 0 : index
    %c5 = arith.constant 5 : index
    %c0_11 = arith.constant 0 : index
    %14 = vector.load %arg1[%c0_10, %c5, %c0_11] : memref<8x8x300xf32, #tpu.memory_space<vmem>>, vector<8x1x300xf32>
    %15 = vector.shape_cast %14 : vector<8x1x300xf32> to vector<8x300xf32>
    %16 = arith.addf %13, %15 : vector<8x300xf32>
    %c0_12 = arith.constant 0 : index
    %c6 = arith.constant 6 : index
    %c0_13 = arith.constant 0 : index
    %17 = vector.load %arg1[%c0_12, %c6, %c0_13] : memref<8x8x300xf32, #tpu.memory_space<vmem>>, vector<8x1x300xf32>
    %18 = vector.shape_cast %17 : vector<8x1x300xf32> to vector<8x300xf32>
    %19 = arith.addf %16, %18 : vector<8x300xf32>
    %c0_14 = arith.constant 0 : index
    %c7 = arith.constant 7 : index
    %c0_15 = arith.constant 0 : index
    %20 = vector.load %arg1[%c0_14, %c7, %c0_15] : memref<8x8x300xf32, #tpu.memory_space<vmem>>, vector<8x1x300xf32>
    %21 = vector.shape_cast %20 : vector<8x1x300xf32> to vector<8x300xf32>
    %22 = arith.addf %19, %21 : vector<8x300xf32>
    %23 = arith.truncf %22 : vector<8x300xf32> to vector<8x300xbf16>
    %c0_16 = arith.constant 0 : index
    %c0_17 = arith.constant 0 : index
    %24 = vector.load %arg2[%c0_16, %c0_17] : memref<300x512xbf16, #tpu.memory_space<vmem>>, vector<300x512xbf16>
    %cst = arith.constant dense<0.000000e+00> : vector<8x512xf32>
    %25 = tpu.matmul %23, %24, %cst {dimension_numbers = #tpu.dot_dimension_numbers<[1], [0], [0], [1], [0, 0, 1, 1], [], []>} : vector<8x300xbf16>, vector<300x512xbf16>, vector<8x512xf32> -> vector<8x512xf32>
    %c0_18 = arith.constant 0 : index
    %c0_19 = arith.constant 0 : index
    %26 = vector.load %arg3[%c0_18, %c0_19] : memref<1x512xf32, #tpu.memory_space<vmem>>, vector<1x512xf32>
    %27 = vector.broadcast %26 : vector<1x512xf32> to vector<8x512xf32>
    %28 = arith.addf %25, %27 : vector<8x512xf32>
    %29 = math.tanh %28 : vector<8x512xf32>
    %30 = arith.truncf %29 : vector<8x512xf32> to vector<8x512xbf16>
    %c0_20 = arith.constant 0 : index
    %c0_21 = arith.constant 0 : index
    %31 = vector.load %arg4[%c0_20, %c0_21] : memref<512x512xbf16, #tpu.memory_space<vmem>>, vector<512x512xbf16>
    %cst_22 = arith.constant dense<0.000000e+00> : vector<8x512xf32>
    %32 = tpu.matmul %30, %31, %cst_22 {dimension_numbers = #tpu.dot_dimension_numbers<[1], [0], [0], [1], [0, 0, 1, 1], [], []>} : vector<8x512xbf16>, vector<512x512xbf16>, vector<8x512xf32> -> vector<8x512xf32>
    %c0_23 = arith.constant 0 : index
    %c0_24 = arith.constant 0 : index
    %33 = vector.load %arg5[%c0_23, %c0_24] : memref<1x512xf32, #tpu.memory_space<vmem>>, vector<1x512xf32>
    %34 = vector.broadcast %33 : vector<1x512xf32> to vector<8x512xf32>
    %35 = arith.addf %32, %34 : vector<8x512xf32>
    %36 = math.tanh %35 : vector<8x512xf32>
    %37 = arith.truncf %36 : vector<8x512xf32> to vector<8x512xbf16>
    %c0_25 = arith.constant 0 : index
    %c0_26 = arith.constant 0 : index
    %38 = vector.load %arg6[%c0_25, %c0_26] : memref<512x512xbf16, #tpu.memory_space<vmem>>, vector<512x512xbf16>
    %cst_27 = arith.constant dense<0.000000e+00> : vector<8x512xf32>
    %39 = tpu.matmul %37, %38, %cst_27 {dimension_numbers = #tpu.dot_dimension_numbers<[1], [0], [0], [1], [0, 0, 1, 1], [], []>} : vector<8x512xbf16>, vector<512x512xbf16>, vector<8x512xf32> -> vector<8x512xf32>
    %c0_28 = arith.constant 0 : index
    %c0_29 = arith.constant 0 : index
    %40 = vector.load %arg7[%c0_28, %c0_29] : memref<1x512xf32, #tpu.memory_space<vmem>>, vector<1x512xf32>
    %41 = vector.broadcast %40 : vector<1x512xf32> to vector<8x512xf32>
    %42 = arith.addf %39, %41 : vector<8x512xf32>
    %43 = math.tanh %42 : vector<8x512xf32>
    %44 = arith.truncf %43 : vector<8x512xf32> to vector<8x512xbf16>
    %c0_30 = arith.constant 0 : index
    %c0_31 = arith.constant 0 : index
    %45 = vector.load %arg8[%c0_30, %c0_31] : memref<512x128xbf16, #tpu.memory_space<vmem>>, vector<512x128xbf16>
    %cst_32 = arith.constant dense<0.000000e+00> : vector<8x128xf32>
    %46 = tpu.matmul %44, %45, %cst_32 {dimension_numbers = #tpu.dot_dimension_numbers<[1], [0], [0], [1], [0, 0, 1, 1], [], []>} : vector<8x512xbf16>, vector<512x128xbf16>, vector<8x128xf32> -> vector<8x128xf32>
    %c0_33 = arith.constant 0 : index
    %c0_34 = arith.constant 0 : index
    %47 = vector.load %arg9[%c0_33, %c0_34] : memref<1x128xf32, #tpu.memory_space<vmem>>, vector<1x128xf32>
    %48 = vector.broadcast %47 : vector<1x128xf32> to vector<8x128xf32>
    %49 = arith.addf %46, %48 : vector<8x128xf32>
    %50 = tpu.iota {dimensions = array<i32: 1>} : vector<8x128xi32>
    %c2_i32 = arith.constant 2 : i32
    %51 = vector.broadcast %c2_i32 : i32 to vector<8x128xi32>
    %52 = arith.cmpi slt, %50, %51 : vector<8x128xi32>
    %cst_35 = arith.constant 0xFF800000 : f32
    %53 = vector.broadcast %cst_35 : f32 to vector<8x128xf32>
    %54 = arith.select %52, %49, %53 : vector<8x128xi1>, vector<8x128xf32>
    %cst_36 = arith.constant dense<0xFF800000> : vector<8xf32>
    %55 = vector.multi_reduction <maximumf>, %54, %cst_36 [1] : vector<8x128xf32> to vector<8xf32>
    %56 = vector.shape_cast %55 : vector<8xf32> to vector<8x1xf32>
    %57 = vector.broadcast %56 : vector<8x1xf32> to vector<8x128xf32>
    %58 = arith.subf %54, %57 : vector<8x128xf32>
    %59 = math.exp %58 : vector<8x128xf32>
    %cst_37 = arith.constant dense<0.000000e+00> : vector<8xf32>
    %60 = vector.multi_reduction <add>, %59, %cst_37 [1] : vector<8x128xf32> to vector<8xf32>
    %61 = vector.shape_cast %60 : vector<8xf32> to vector<8x1xf32>
    %62 = vector.broadcast %56 : vector<8x1xf32> to vector<8x128xf32>
    %63 = arith.subf %49, %62 : vector<8x128xf32>
    %64 = math.log %61 : vector<8x1xf32>
    %65 = vector.broadcast %64 : vector<8x1xf32> to vector<8x128xf32>
    %66 = arith.subf %63, %65 : vector<8x128xf32>
    %c0_38 = arith.constant 0 : index
    %c0_39 = arith.constant 0 : index
    %67 = vector.load %arg10[%c0_38, %c0_39] : memref<8x128xf32, #tpu.memory_space<vmem>>, vector<8x128xf32>
    tpu.vector_store %arg10[%c0_38, %c0_39], %66 {strides = array<i32>} : memref<8x128xf32, #tpu.memory_space<vmem>>, vector<8x128xf32>,
    return
  }
  func.func @transform_0(%arg0: i32) -> (i32, i32, i32) {
    %c0_i32 = arith.constant 0 : i32
    %c0_i32_0 = arith.constant 0 : i32
    %c0_i32_1 = arith.constant 0 : i32
    return %arg0, %c0_i32, %c0_i32_0 : i32, i32, i32
  }
  func.func @transform_1(%arg0: i32) -> (i32, i32) {
    %c0_i32 = arith.constant 0 : i32
    %c0_i32_0 = arith.constant 0 : i32
    %c0_i32_1 = arith.constant 0 : i32
    return %c0_i32, %c0_i32_0 : i32, i32
  }
  func.func @transform_2(%arg0: i32) -> (i32, i32) {
    %c0_i32 = arith.constant 0 : i32
    %c0_i32_0 = arith.constant 0 : i32
    %c0_i32_1 = arith.constant 0 : i32
    return %c0_i32, %c0_i32_0 : i32, i32
  }
  func.func @transform_3(%arg0: i32) -> (i32, i32) {
    %c0_i32 = arith.constant 0 : i32
    %c0_i32_0 = arith.constant 0 : i32
    %c0_i32_1 = arith.constant 0 : i32
    return %c0_i32, %c0_i32_0 : i32, i32
  }
  func.func @transform_4(%arg0: i32) -> (i32, i32) {
    %c0_i32 = arith.constant 0 : i32
    %c0_i32_0 = arith.constant 0 : i32
    %c0_i32_1 = arith.constant 0 : i32
    return %c0_i32, %c0_i32_0 : i32, i32
  }
  func.func @transform_5(%arg0: i32) -> (i32, i32) {
    %c0_i32 = arith.constant 0 : i32
    %c0_i32_0 = arith.constant 0 : i32
    %c0_i32_1 = arith.constant 0 : i32
    return %c0_i32, %c0_i32_0 : i32, i32
  }
  func.func @transform_6(%arg0: i32) -> (i32, i32) {
    %c0_i32 = arith.constant 0 : i32
    %c0_i32_0 = arith.constant 0 : i32
    %c0_i32_1 = arith.constant 0 : i32
    return %c0_i32, %c0_i32_0 : i32, i32
  }
  func.func @transform_7(%arg0: i32) -> (i32, i32) {
    %c0_i32 = arith.constant 0 : i32
    %c0_i32_0 = arith.constant 0 : i32
    %c0_i32_1 = arith.constant 0 : i32
    return %c0_i32, %c0_i32_0 : i32, i32
  }
  func.func @transform_8(%arg0: i32) -> (i32, i32) {
    %c0_i32 = arith.constant 0 : i32
    %c0_i32_0 = arith.constant 0 : i32
    %c0_i32_1 = arith.constant 0 : i32
    return %c0_i32, %c0_i32_0 : i32, i32
  }
  func.func @transform_9(%arg0: i32) -> (i32, i32) {
    %c0_i32 = arith.constant 0 : i32
    %c0_i32_0 = arith.constant 0 : i32
    return %arg0, %c0_i32 : i32, i32
  }
}

</mosaic_0001>

<bundles_post_ra>
// kernel: tpu_custom_call.1
= control target key start
LH: loop header
LB: loop body
LE: loop exit
PB: predicated region body
PF: predicated region fallthrough
CT: control target
= control target key end

     0   :  { %14 = vsyncpa [#allocation3], 0  ;;  %s5838_s0 = inlined_call_operand.hbm [shape: f32[8,8,300], index: 0, kind: input, shape index: {}]   ;;  %s5839_s1 = inlined_call_operand.hbm [shape: bf16[300,512], index: 1, kind: input, shape index: {}]   ;;  %s5840_s2 = inlined_call_operand.hbm [shape: f32[1,512], index: 2, kind: input, shape index: {}]   ;;  %s5841_s3 = inlined_call_operand.hbm [shape: bf16[512,512], index: 3, kind: input, shape index: {}]   ;;  %s5842_s4 = inlined_call_operand.hbm [shape: f32[1,512], index: 4, kind: input, shape index: {}]   ;;  %s5843_s5 = inlined_call_operand.hbm [shape: bf16[512,512], index: 5, kind: input, shape index: {}]   ;;  %s5844_s6 = inlined_call_operand.vmem [shape: f32[1,512], index: 6, kind: input, shape index: {}]   ;;  %s5845_s7 = inlined_call_operand.hbm [shape: bf16[512,128], index: 7, kind: input, shape index: {}]   ;;  %s5846_s8 = inlined_call_operand.vmem [shape: f32[1,128], index: 8, kind: input, shape index: {}]   ;;  %s5847_s9 = inlined_call_operand.hbm [shape: f32[8,128], index: 9, kind: output, shape index: {}]  }
   0x1   :  { %15 = vsyncpa [#allocation6], 0 }
   0x2   :  { %16 = vsyncpa [#allocation9], 0 }
   0x3   :  { %17 = vsyncpa [#allocation12], 0  ;;  %s36_s11 = sshll.u32 %s5839_s1, 4  ;;  %s37_s11 = int_to_ptr.hbm [resolvable:$true] %s36_s11 }
   0x4   :  { %18 = vsyncpa [#allocation4], 0  ;;  %s5552_s12 = smov [#allocation5]   ;;  %s60_s16 = sshll.u32 %s5841_s3, 4  ;;  %s61_s16 = int_to_ptr.hbm [resolvable:$true] %s60_s16 }
   0x5   :  { %s38_s13 = sshll.u32 %s5552_s12, 4  ;;  %s5553_s17 = smov 256   ;;  %s39_s13 = int_to_ptr.vmem [resolvable:$true] %s38_s13 }
   0x6   :  { %s5554_s18 = smov 16   ;;  %s5555_s19 = smov [#allocation8]  }
   0x7   :  { %44 = dma.hbm_to_vmem [thread:$0]  %s37_s11, 9728, %s39_s13, [#allocation6], %s5553_s17, %s5553_s17, %s5554_s18  }
   0x8   :  { %s62_s20 = sshll.u32 %s5555_s19, 4  ;;  %s84_s23 = sshll.u32 %s5843_s5, 4  ;;  %s63_s20 = int_to_ptr.vmem [resolvable:$true] %s62_s20  ;;  %s85_s23 = int_to_ptr.hbm [resolvable:$true] %s84_s23 }
   0x9   :  { %68 = dma.hbm_to_vmem [thread:$0]  %s61_s16, 16384, %s63_s20, [#allocation9], %s5553_s17, %s5553_s17, %s5554_s18  }
   0xa   :  { %s23_s25 = sshll.u32 %s5838_s0, 4  ;;  %s5556_s26 = smov [#allocation11]   ;;  %s24_s25 = int_to_ptr.hbm [resolvable:$true] %s23_s25 }
   0xb   :  { %s86_s27 = sshll.u32 %s5556_s26, 4  ;;  %s5557_s3 = smov [#allocation2]   ;;  %s87_s27 = int_to_ptr.vmem [resolvable:$true] %s86_s27 }
   0xc   :  { %92 = dma.hbm_to_vmem [thread:$0]  %s85_s23, 16384, %s87_s27, [#allocation12], %s5553_s17, %s5553_s17, %s5554_s18  }
   0xd   :  { %s25_s28 = sshll.u32 %s5557_s3, 4  ;;  %s5558_s29 = smov 384   ;;  %s26_s28 = int_to_ptr.vmem [resolvable:$true] %s25_s28 }
   0xe   :  { %s5559_s30 = smov 24   ;;  %s50_s11 = sshll.u32 %s5840_s2, 4  ;;  %s51_s11 = int_to_ptr.hbm [resolvable:$true] %s50_s11 }
   0xf   :  { %31 = dma.hbm_to_vmem [thread:$0]  %s24_s25, 3072, %s26_s28, [#allocation3], %s5558_s29, %s5558_s29, %s5559_s30  }
  0x10   :  { %s5560_s12 = smov [#allocation7]   ;;  %s74_s15 = sshll.u32 %s5842_s4, 4  ;;  %s75_s15 = int_to_ptr.hbm [resolvable:$true] %s74_s15 }
  0x11   :  { %s52_s13 = sshll.u32 %s5560_s12, 4  ;;  %s5561_s16 = smov [#allocation10]   ;;  %s53_s13 = int_to_ptr.vmem [resolvable:$true] %s52_s13 }
  0x12   :  { %55 = dma.hbm_to_vmem [thread:$0]  %s51_s11, 64, %s53_s13, [#allocation6]  }
  0x13   :  { %s76_s17 = sshll.u32 %s5561_s16, 4  ;;  %s99_s20 = sshll.u32 %s5845_s7, 4  ;;  %s77_s17 = int_to_ptr.vmem [resolvable:$true] %s76_s17  ;;  %s100_s20 = int_to_ptr.hbm [resolvable:$true] %s99_s20 }
  0x14   :  { %79 = dma.hbm_to_vmem [thread:$0]  %s75_s15, 64, %s77_s17, [#allocation9]  }
  0x15   :  { %s5562_s2 = smov [#allocation13]   ;;  %s5563_s22 = smov 64  }
  0x16   :  { %s101_s21 = sshll.u32 %s5562_s2, 4  ;;  %s5564_s23 = smov 4   ;;  %s102_s21 = int_to_ptr.vmem [resolvable:$true] %s101_s21 }
  0x17   :  { %107 = dma.hbm_to_vmem [thread:$0]  %s100_s20, 4096, %s102_s21, [#allocation12], %s5563_s22, %s5563_s22, %s5564_s23  }
  0x18   :  { %5542 = dma.done.wait [#allocation3], 3072  }
  0x19   :  { %5543 = vsyncadd [#allocation3], 4294964224 }
  0x1a   :  { %5544 = dma.done.wait [#allocation6], 9792  }
  0x1b   :  { %5545 = vsyncadd [#allocation6], 4294957504 }
  0x1c   :  { %5546 = dma.done.wait [#allocation9], 16448  }
  0x1d   :  { %5547 = vsyncadd [#allocation9], 4294950848 }
  0x1e   :  { %5548 = dma.done.wait [#allocation12], 20480  }
  0x1f   :  { %5549 = vsyncadd [#allocation12], 4294946816  ;;  %vm970_vm0 = vcmask 1045504   ;;  %v3597_v0 = vld [vmem:[#allocation5 + $0xe0] sm:$0xf]  ;;  %vm537_vm1 = vcmask 1041409  }
  0x20   :  { %v4973_v1 = vld [vmem:[#allocation5 + $0xec] sm:$0xf0]  ;;  %v3725_v2 = vld [vmem:[#allocation5 + $0x1e0] sm:$0xf]  ;;  %v5003_v5 = vld [vmem:[#allocation5 + $0x1e4] sm:$0xf] }
  0x21   :  { %v3598_v3 = vor.u32 %v4973_v1, %v3597_v0  ;;  %v5005_v4 = vld [vmem:[#allocation5 + $0x1ec] sm:$0xf0]  ;;  %v3727_v6 = vld [vmem:[#allocation5 + $0x1f0] sm:$0xf0]  ;;  %v3773_v9 = vld [vmem:[#allocation5 + $0x240] sm:$0xf] }
  0x22   :  { %v3726_v7 = vor.u32 %v5005_v4, %v3725_v2  ;;  %v3730_v8 = vor.u32 %v5003_v5, %v3727_v6  ;;  %v5017_v10 = vld [vmem:[#allocation5 + $0x24c] sm:$0x30]  ;;  %v3581_v11 = vld [vmem:[#allocation5 + $0xc0] sm:$0xf]  ;;  %v4999_v18 = vld [vmem:[#allocation5 + $0x1c4] sm:$0xf] }
  0x23   :  { %983 = vmatpush.bf16.msra.mxu0 %v3598_v3  ;;  %v3774_v12 = vor.u32 %v5017_v10, %v3773_v9  ;;  %v4969_v13 = vld [vmem:[#allocation5 + $0xcc] sm:$0xf0]  ;;  %v3709_v14 = vld [vmem:[#allocation5 + $0x1c0] sm:$0xf]  ;;  %v3711_v19 = vld [vmem:[#allocation5 + $0x1d0] sm:$0xf0] }
  0x24   :  { %v5001_v15 = vld [vmem:[#allocation5 + $0x1cc] sm:$0xf0]  ;;  %996 = vmatpush.bf16.msra.mxu1 %v3726_v7  ;;  %1035 = vmatpush.bf16.msra.mxu2 %v3730_v8  ;;  %v3582_v16 = vor.u32 %v4969_v13, %v3581_v11  ;;  %v3757_v20 = vld [vmem:[#allocation5 + $0x220] sm:$0xf]  ;;  %v3714_v22 = vor.u32 %v4999_v18, %v3711_v19  ;;  %v4995_v30 = vld [vmem:[#allocation5 + $0x1a4] sm:$0xf] }
  0x25   :  { %v3710_v17 = vor.u32 %v5001_v15, %v3709_v14  ;;  %v972_v21 = vsel %vm970_vm0, %v3774_v12, 0  ;;  %v5013_v23 = vld [vmem:[#allocation5 + $0x22c] sm:$0xf0]  ;;  %v3565_v24 = vld [vmem:[#allocation5 + $0xa0] sm:$0xf]  ;;  %vm540_vm2 = vcmask 1042434  }
  0x26   :  { %1014 = vmatpush.bf16.msra.mxu3 %v972_v21  ;;  %v3758_v25 = vor.u32 %v5013_v23, %v3757_v20  ;;  %v4965_v26 = vld [vmem:[#allocation5 + $0xac] sm:$0xf0]  ;;  %v3693_v27 = vld [vmem:[#allocation5 + $0x1a0] sm:$0xf]  ;;  %v3695_v31 = vld [vmem:[#allocation5 + $0x1b0] sm:$0xf0] }
  0x27   :  { %v4997_v28 = vld [vmem:[#allocation5 + $0x1ac] sm:$0xf0]  ;;  %984 = vmatpush.bf16.msra.mxu0 %v3582_v16  ;;  %v3566_v29 = vor.u32 %v4965_v26, %v3565_v24  ;;  %v3741_v32 = vld [vmem:[#allocation5 + $0x200] sm:$0xf]  ;;  %v3698_v34 = vor.u32 %v4995_v30, %v3695_v31  ;;  %v4971_v36 = vld [vmem:[#allocation5 + $0xe4] sm:$0xf] }
  0x28   :  { %997 = vmatpush.bf16.msra.mxu1 %v3710_v17  ;;  %1036 = vmatpush.bf16.msra.mxu2 %v3714_v22  ;;  %v3694_v33 = vor.u32 %v4997_v28, %v3693_v27  ;;  %v5009_v35 = vld [vmem:[#allocation5 + $0x20c] sm:$0xf0]  ;;  %v3599_v37 = vld [vmem:[#allocation5 + $0xf0] sm:$0xf0]  ;;  %v3549_v38 = vld [vmem:[#allocation5 + $0x80] sm:$0xf] }
  0x29   :  { %v4961_v39 = vld [vmem:[#allocation5 + $0x8c] sm:$0xf0]  ;;  %v3677_v40 = vld [vmem:[#allocation5 + $0x180] sm:$0xf]  ;;  %v3742_v41 = vor.u32 %v5009_v35, %v3741_v32  ;;  %v4991_v43 = vld [vmem:[#allocation5 + $0x184] sm:$0xf]  ;;  %v3602_v45 = vor.u32 %v4971_v36, %v3599_v37 }
  0x2a   :  { %1015 = vmatpush.bf16.msra.mxu3 %v3758_v25  ;;  %v4993_v42 = vld [vmem:[#allocation5 + $0x18c] sm:$0xf0]  ;;  %v3679_v44 = vld [vmem:[#allocation5 + $0x190] sm:$0xf0]  ;;  %v3550_v46 = vor.u32 %v4961_v39, %v3549_v38  ;;  %v4967_v47 = vld [vmem:[#allocation5 + $0xc4] sm:$0xf] }
  0x2b   :  { %985 = vmatpush.bf16.msra.mxu0 %v3566_v29  ;;  %v3583_v48 = vld [vmem:[#allocation5 + $0xd0] sm:$0xf0]  ;;  %v3678_v49 = vor.u32 %v4993_v42, %v3677_v40  ;;  %v3682_v50 = vor.u32 %v4991_v43, %v3679_v44  ;;  %v3533_v51 = vld [vmem:[#allocation5 + $0x60] sm:$0xf]  ;;  %v4957_v52 = vld [vmem:[#allocation5 + $0x6c] sm:$0xf0] }
  0x2c   :  { %998 = vmatpush.bf16.msra.mxu1 %v3694_v33  ;;  %1037 = vmatpush.bf16.msra.mxu2 %v3698_v34  ;;  %v3661_v53 = vld [vmem:[#allocation5 + $0x160] sm:$0xf]  ;;  %v4989_v54 = vld [vmem:[#allocation5 + $0x16c] sm:$0xf0]  ;;  %v4987_v55 = vld [vmem:[#allocation5 + $0x164] sm:$0xf]  ;;  %v3586_v57 = vor.u32 %v4967_v47, %v3583_v48  ;;  %v3534_v58 = vor.u32 %v4957_v52, %v3533_v51 }
  0x2d   :  { %v3663_v56 = vld [vmem:[#allocation5 + $0x170] sm:$0xf0]  ;;  %v4963_v59 = vld [vmem:[#allocation5 + $0xa4] sm:$0xf]  ;;  %v3662_v61 = vor.u32 %v4989_v54, %v3661_v53  ;;  %v3517_v63 = vld [vmem:[#allocation5 + $0x40] sm:$0xf] }
  0x2e   :  { %1016 = vmatpush.bf16.msra.mxu3 %v3742_v41  ;;  %v3567_v60 = vld [vmem:[#allocation5 + $0xb0] sm:$0xf0]  ;;  %v3666_v62 = vor.u32 %v4987_v55, %v3663_v56  ;;  %v4953_v0 = vld [vmem:[#allocation5 + $0x4c] sm:$0xf0]  ;;  %v3645_v1 = vld [vmem:[#allocation5 + $0x140] sm:$0xf] }
  0x2f   :  { %986 = vmatpush.bf16.msra.mxu0 %v3550_v46  ;;  %v4985_v2 = vld [vmem:[#allocation5 + $0x14c] sm:$0xf0]  ;;  %v4983_v3 = vld [vmem:[#allocation5 + $0x144] sm:$0xf]  ;;  %v3647_v4 = vld [vmem:[#allocation5 + $0x150] sm:$0xf0]  ;;  %v3570_v7 = vor.u32 %v4963_v59, %v3567_v60  ;;  %v3518_v8 = vor.u32 %v4953_v0, %v3517_v63 }
  0x30   :  { %999 = vmatpush.bf16.msra.mxu1 %v3678_v49  ;;  %1038 = vmatpush.bf16.msra.mxu2 %v3682_v50  ;;  %v4959_v5 = vld [vmem:[#allocation5 + $0x84] sm:$0xf]  ;;  %v3551_v6 = vld [vmem:[#allocation5 + $0x90] sm:$0xf0]  ;;  %v3501_v9 = vld [vmem:[#allocation5 + $0x20] sm:$0xf]  ;;  %v3646_v12 = vor.u32 %v4985_v2, %v3645_v1  ;;  %v3650_v13 = vor.u32 %v4983_v3, %v3647_v4 }
  0x31   :  { %v4949_v10 = vld [vmem:[#allocation5 + $0x2c] sm:$0xf0]  ;;  %v3629_v11 = vld [vmem:[#allocation5 + $0x120] sm:$0xf]  ;;  %v4979_v15 = vld [vmem:[#allocation5 + $0x124] sm:$0xf]  ;;  %v3554_v25 = vor.u32 %v4959_v5, %v3551_v6 }
  0x32   :  { %1022 = vmatpush.bf16.msrb.mxu3 %v3602_v45  ;;  %v4981_v14 = vld [vmem:[#allocation5 + $0x12c] sm:$0xf0]  ;;  %v3631_v16 = vld [vmem:[#allocation5 + $0x130] sm:$0xf0]  ;;  %v4955_v17 = vld [vmem:[#allocation5 + $0x64] sm:$0xf]  ;;  %v3502_v26 = vor.u32 %v4949_v10, %v3501_v9 }
  0x33   :  { %987 = vmatpush.bf16.msra.mxu0 %v3534_v58  ;;  %v3535_v18 = vld [vmem:[#allocation5 + $0x70] sm:$0xf0]  ;;  %v3485_v19 = vld [vmem:[#allocation5] sm:$0xf]  ;;  %v4945_v20 = vld [vmem:[#allocation5 + $0xc] sm:$0xf0]  ;;  %v3630_v31 = vor.u32 %v4981_v14, %v3629_v11  ;;  %v3634_v32 = vor.u32 %v4979_v15, %v3631_v16 }
  0x34   :  { %1000 = vmatpush.bf16.msra.mxu1 %v3662_v61  ;;  %1039 = vmatpush.bf16.msra.mxu2 %v3666_v62  ;;  %v3613_v21 = vld [vmem:[#allocation5 + $0x100] sm:$0xf]  ;;  %v4977_v22 = vld [vmem:[#allocation5 + $0x10c] sm:$0xf0]  ;;  %v4975_v27 = vld [vmem:[#allocation5 + $0x104] sm:$0xf]  ;;  %v3538_v37 = vor.u32 %v4955_v17, %v3535_v18  ;;  %v3486_v38 = vor.u32 %v4945_v20, %v3485_v19 }
  0x35   :  { %v139_v23 = vld [vmem:[#allocation2] ss:$8 sm:$0x7]  ;;  %v3615_v28 = vld [vmem:[#allocation5 + $0x110] sm:$0xf0]  ;;  %v3614_v41 = vor.u32 %v4977_v22, %v3613_v21  ;;  %vm543_vm3 = vcmask 1043459  }
  0x36   :  { %1023 = vmatpush.bf16.msrb.mxu3 %v3586_v57  ;;  %v141_v24 = vld [vmem:[#allocation2 + $0x18] ss:$8 sm:$0x7]  ;;  %v155_v39 = vld [vmem:[#allocation2 + $0x1] ss:$8 sm:$0x7]  ;;  %v3618_v46 = vor.u32 %v4975_v27, %v3615_v28 }
  0x37   :  { %988 = vmatpush.bf16.msra.mxu0 %v3518_v8  ;;  %v143_v29 = vld [vmem:[#allocation2 + $0x30] ss:$8 sm:$0x7]  ;;  %v157_v40 = vld [vmem:[#allocation2 + $0x19] ss:$8 sm:$0x7]  ;;  %v170_v44 = vadd.f32 %v155_v39, %v139_v23 }
  0x38   :  { %v145_v30 = vld [vmem:[#allocation2 + $0x48] ss:$8 sm:$0x7]  ;;  %1001 = vmatpush.bf16.msra.mxu1 %v3646_v12  ;;  %1040 = vmatpush.bf16.msra.mxu2 %v3650_v13  ;;  %v159_v42 = vld [vmem:[#allocation2 + $0x31] ss:$8 sm:$0x7]  ;;  %v171_v45 = vadd.f32 %v157_v40, %v141_v24 }
  0x39   :  { %v147_v33 = vld [vmem:[#allocation2 + $0x60] ss:$8 sm:$0x7]  ;;  %v161_v43 = vld [vmem:[#allocation2 + $0x49] ss:$8 sm:$0x7]  ;;  %v172_v49 = vadd.f32 %v159_v42, %v143_v29 }
  0x3a   :  { %1024 = vmatpush.bf16.msrb.mxu3 %v3570_v7  ;;  %v149_v34 = vld [vmem:[#allocation2 + $0x78] ss:$8 sm:$0x7]  ;;  %v163_v47 = vld [vmem:[#allocation2 + $0x61] ss:$8 sm:$0x7]  ;;  %v173_v50 = vadd.f32 %v161_v43, %v145_v30 }
  0x3b   :  { %v151_v35 = vld [vmem:[#allocation2 + $0x90] ss:$8 sm:$0x7]  ;;  %989 = vmatpush.bf16.msra.mxu0 %v3502_v26  ;;  %v165_v48 = vld [vmem:[#allocation2 + $0x79] ss:$8 sm:$0x7]  ;;  %v174_v53 = vadd.f32 %v163_v47, %v147_v33 }
  0x3c   :  { %v153_v36 = vld [vmem:[#allocation2 + $0xa8] ss:$8 sm:$0x7]  ;;  %1002 = vmatpush.bf16.msra.mxu1 %v3630_v31  ;;  %1041 = vmatpush.bf16.msra.mxu2 %v3634_v32  ;;  %v167_v51 = vld [vmem:[#allocation2 + $0x91] ss:$8 sm:$0x7]  ;;  %v175_v54 = vadd.f32 %v165_v48, %v149_v34 }
  0x3d   :  { %v169_v52 = vld [vmem:[#allocation2 + $0xa9] ss:$8 sm:$0x7]  ;;  %v176_v55 = vadd.f32 %v167_v51, %v151_v35  ;;  %v179_v57 = vld [vmem:[#allocation2 + $0x2] ss:$8 sm:$0x7] }
  0x3e   :  { %1025 = vmatpush.bf16.msrb.mxu3 %v3554_v25  ;;  %v177_v56 = vadd.f32 %v169_v52, %v153_v36  ;;  %v181_v58 = vld [vmem:[#allocation2 + $0x1a] ss:$8 sm:$0x7]  ;;  %v194_v61 = vadd.f32 %v179_v57, %v170_v44  ;;  %v203_v9 = vld [vmem:[#allocation2 + $0x3] ss:$8 sm:$0x7] }
  0x3f   :  { %990 = vmatpush.bf16.msra.mxu0 %v3486_v38  ;;  %v183_v59 = vld [vmem:[#allocation2 + $0x32] ss:$8 sm:$0x7]  ;;  %v195_v62 = vadd.f32 %v181_v58, %v171_v45  ;;  %v205_v10 = vld [vmem:[#allocation2 + $0x1b] ss:$8 sm:$0x7] }
  0x40   :  { %v185_v60 = vld [vmem:[#allocation2 + $0x4a] ss:$8 sm:$0x7]  ;;  %1003 = vmatpush.bf16.msra.mxu1 %v3614_v41  ;;  %1042 = vmatpush.bf16.msra.mxu2 %v3618_v46  ;;  %v196_v1 = vadd.f32 %v183_v59, %v172_v49  ;;  %v207_v11 = vld [vmem:[#allocation2 + $0x33] ss:$8 sm:$0x7]  ;;  %v218_v13 = vadd.f32 %v203_v9, %v194_v61 }
  0x41   :  { %v187_v63 = vld [vmem:[#allocation2 + $0x62] ss:$8 sm:$0x7]  ;;  %v197_v2 = vadd.f32 %v185_v60, %v173_v50  ;;  %v209_v12 = vld [vmem:[#allocation2 + $0x4b] ss:$8 sm:$0x7]  ;;  %v219_v14 = vadd.f32 %v205_v10, %v195_v62 }
  0x42   :  { %1026 = vmatpush.bf16.msrb.mxu3 %v3538_v37  ;;  %v189_v0 = vld [vmem:[#allocation2 + $0x7a] ss:$8 sm:$0x7]  ;;  %v198_v5 = vadd.f32 %v187_v63, %v174_v53  ;;  %v211_v15 = vld [vmem:[#allocation2 + $0x63] ss:$8 sm:$0x7]  ;;  %v220_v17 = vadd.f32 %v207_v11, %v196_v1 }
  0x43   :  { %v191_v3 = vld [vmem:[#allocation2 + $0x92] ss:$8 sm:$0x7]  ;;  %v199_v6 = vadd.f32 %v189_v0, %v175_v54  ;;  %v213_v16 = vld [vmem:[#allocation2 + $0x7b] ss:$8 sm:$0x7]  ;;  %v221_v18 = vadd.f32 %v209_v12, %v197_v2 }
  0x44   :  { %v193_v4 = vld [vmem:[#allocation2 + $0xaa] ss:$8 sm:$0x7]  ;;  %v200_v7 = vadd.f32 %v191_v3, %v176_v55  ;;  %v215_v19 = vld [vmem:[#allocation2 + $0x93] ss:$8 sm:$0x7]  ;;  %v222_v21 = vadd.f32 %v211_v15, %v198_v5 }
  0x45   :  { %v201_v8 = vadd.f32 %v193_v4, %v177_v56  ;;  %v217_v20 = vld [vmem:[#allocation2 + $0xab] ss:$8 sm:$0x7]  ;;  %v223_v22 = vadd.f32 %v213_v16, %v199_v6  ;;  %v227_v25 = vld [vmem:[#allocation2 + $0x4] ss:$8 sm:$0x7] }
  0x46   :  { %v224_v23 = vadd.f32 %v215_v19, %v200_v7  ;;  %v229_v26 = vld [vmem:[#allocation2 + $0x1c] ss:$8 sm:$0x7]  ;;  %v242_v29 = vadd.f32 %v227_v25, %v218_v13  ;;  %v251_v41 = vld [vmem:[#allocation2 + $0x5] ss:$8 sm:$0x7] }
  0x47   :  { %v225_v24 = vadd.f32 %v217_v20, %v201_v8  ;;  %v231_v27 = vld [vmem:[#allocation2 + $0x34] ss:$8 sm:$0x7]  ;;  %v243_v30 = vadd.f32 %v229_v26, %v219_v14  ;;  %v253_v42 = vld [vmem:[#allocation2 + $0x1d] ss:$8 sm:$0x7] }
  0x48   :  { %v233_v28 = vld [vmem:[#allocation2 + $0x4c] ss:$8 sm:$0x7]  ;;  %v244_v33 = vadd.f32 %v231_v27, %v220_v17  ;;  %v255_v43 = vld [vmem:[#allocation2 + $0x35] ss:$8 sm:$0x7]  ;;  %v266_v45 = vadd.f32 %v251_v41, %v242_v29 }
  0x49   :  { %v235_v31 = vld [vmem:[#allocation2 + $0x64] ss:$8 sm:$0x7]  ;;  %v245_v34 = vadd.f32 %v233_v28, %v221_v18  ;;  %v257_v44 = vld [vmem:[#allocation2 + $0x4d] ss:$8 sm:$0x7]  ;;  %v267_v46 = vadd.f32 %v253_v42, %v243_v30 }
  0x4a   :  { %v237_v32 = vld [vmem:[#allocation2 + $0x7c] ss:$8 sm:$0x7]  ;;  %v246_v37 = vadd.f32 %v235_v31, %v222_v21  ;;  %v259_v47 = vld [vmem:[#allocation2 + $0x65] ss:$8 sm:$0x7]  ;;  %v268_v49 = vadd.f32 %v255_v43, %v244_v33 }
  0x4b   :  { %v239_v35 = vld [vmem:[#allocation2 + $0x94] ss:$8 sm:$0x7]  ;;  %v247_v38 = vadd.f32 %v237_v32, %v223_v22  ;;  %v261_v48 = vld [vmem:[#allocation2 + $0x7d] ss:$8 sm:$0x7]  ;;  %v269_v50 = vadd.f32 %v257_v44, %v245_v34 }
  0x4c   :  { %v241_v36 = vld [vmem:[#allocation2 + $0xac] ss:$8 sm:$0x7]  ;;  %v248_v39 = vadd.f32 %v239_v35, %v224_v23  ;;  %v263_v51 = vld [vmem:[#allocation2 + $0x95] ss:$8 sm:$0x7]  ;;  %v270_v53 = vadd.f32 %v259_v47, %v246_v37 }
  0x4d   :  { %v249_v40 = vadd.f32 %v241_v36, %v225_v24  ;;  %v265_v52 = vld [vmem:[#allocation2 + $0xad] ss:$8 sm:$0x7]  ;;  %v271_v54 = vadd.f32 %v261_v48, %v247_v38  ;;  %v275_v57 = vld [vmem:[#allocation2 + $0x6] ss:$8 sm:$0x7] }
  0x4e   :  { %v272_v55 = vadd.f32 %v263_v51, %v248_v39  ;;  %v277_v58 = vld [vmem:[#allocation2 + $0x1e] ss:$8 sm:$0x7]  ;;  %v290_v61 = vadd.f32 %v275_v57, %v266_v45  ;;  %v299_v9 = vld [vmem:[#allocation2 + $0x7] ss:$8 sm:$0x7] }
  0x4f   :  { %v273_v56 = vadd.f32 %v265_v52, %v249_v40  ;;  %v279_v59 = vld [vmem:[#allocation2 + $0x36] ss:$8 sm:$0x7]  ;;  %v291_v62 = vadd.f32 %v277_v58, %v267_v46  ;;  %v301_v10 = vld [vmem:[#allocation2 + $0x1f] ss:$8 sm:$0x7] }
  0x50   :  { %v281_v60 = vld [vmem:[#allocation2 + $0x4e] ss:$8 sm:$0x7]  ;;  %v292_v1 = vadd.f32 %v279_v59, %v268_v49  ;;  %v303_v11 = vld [vmem:[#allocation2 + $0x37] ss:$8 sm:$0x7]  ;;  %v5638_v13 = vadd.f32 %v299_v9, %v290_v61 }
  0x51   :  { %v283_v63 = vld [vmem:[#allocation2 + $0x66] ss:$8 sm:$0x7]  ;;  %v293_v2 = vadd.f32 %v281_v60, %v269_v50  ;;  %v305_v12 = vld [vmem:[#allocation2 + $0x4f] ss:$8 sm:$0x7]  ;;  %v5640_v14 = vadd.f32 %v301_v10, %v291_v62 }
  0x52   :  { %v285_v0 = vld [vmem:[#allocation2 + $0x7e] ss:$8 sm:$0x7]  ;;  %v294_v5 = vadd.f32 %v283_v63, %v270_v53  ;;  %v307_v15 = vld [vmem:[#allocation2 + $0x67] ss:$8 sm:$0x7]  ;;  %v5642_v17 = vadd.f32 %v303_v11, %v292_v1 }
  0x53   :  { %v287_v3 = vld [vmem:[#allocation2 + $0x96] ss:$8 sm:$0x7]  ;;  %v295_v6 = vadd.f32 %v285_v0, %v271_v54  ;;  %v309_v16 = vld [vmem:[#allocation2 + $0x7f] ss:$8 sm:$0x7]  ;;  %v5644_v18 = vadd.f32 %v305_v12, %v293_v2 }
  0x54   :  { %v289_v4 = vld [vmem:[#allocation2 + $0xae] ss:$8 sm:$0x7]  ;;  %v296_v7 = vadd.f32 %v287_v3, %v272_v55  ;;  %v311_v19 = vld [vmem:[#allocation2 + $0x97] ss:$8 sm:$0x7]  ;;  %v5646_v21 = vadd.f32 %v307_v15, %v294_v5 }
  0x55   :  { %v297_v8 = vadd.f32 %v289_v4, %v273_v56  ;;  %v313_v20 = vld [vmem:[#allocation2 + $0xaf] ss:$8 sm:$0x7]  ;;  %v5648_v22 = vadd.f32 %v309_v16, %v295_v6  ;;  %v332_v25 = vperm.slane %v5638_v13, 2  ;;  %v335_v26 = vperm.slane %v5640_v14, 2  ;;  %s3470_s27 = sshll.u32 %s5847_s9, 4  ;;  %s3471_s27 = int_to_ptr.hbm [resolvable:$true] %s3470_s27 }
  0x56   :  { %v5650_v23 = vadd.f32 %v311_v19, %v296_v7  ;;  %v338_v27 = vperm.slane %v5642_v17, 2  ;;  %v341_v28 = vperm.slane %v5644_v18, 2  ;;  %v344_v29 = vperm.slane %v5646_v21, 2  ;;  %v5015_v47 = vld [vmem:[#allocation5 + $0x244] sm:$0xf] }
  0x57   :  { %v5652_v24 = vadd.f32 %v313_v20, %v297_v8  ;;  %v347_v30 = vperm.slane %v5648_v22, 2  ;;  %v380_v33 = vpack.c.bf16 %v332_v25, %v332_v25  ;;  %v383_v34 = vpack.c.bf16 %v335_v26, %v335_v26  ;;  %v3775_v48 = vld [vmem:[#allocation5 + $0x250] sm:$0x30]  ;;  %v3605_v49 = vld [vmem:[#allocation5 + $0xe8] sm:$0xf] }
  0x58   :  { %v350_v31 = vperm.slane %v5650_v23, 2  ;;  %v386_v35 = vpack.c.bf16 %v338_v27, %v338_v27  ;;  %v389_v36 = vpack.c.bf16 %v341_v28, %v341_v28  ;;  %v392_v37 = vpack.c.bf16 %v344_v29, %v344_v29  ;;  %v4974_v50 = vld [vmem:[#allocation5 + $0xf4] sm:$0xf0]  ;;  %v3781_v53 = vld [vmem:[#allocation5 + $0x248] sm:$0xf] }
  0x59   :  { %v353_v32 = vperm.slane %v5652_v24, 2  ;;  %v395_v38 = vpack.c.bf16 %v347_v30, %v347_v30  ;;  %v514_v41 = vunpack.c.l.b16 %v380_v33  ;;  %v517_v42 = vunpack.c.l.b16 %v383_v34  ;;  %v5018_v54 = vld [vmem:[#allocation5 + $0x254] sm:$0x30]  ;;  %v4951_v55 = vld [vmem:[#allocation5 + $0x44] sm:$0xf] }
  0x5a   :  { %v398_v39 = vpack.c.bf16 %v350_v31, %v350_v31  ;;  %v520_v43 = vunpack.c.l.b16 %v386_v35  ;;  %v523_v44 = vunpack.c.l.b16 %v389_v36  ;;  %v526_v45 = vunpack.c.l.b16 %v392_v37  ;;  %v3519_v59 = vld [vmem:[#allocation5 + $0x50] sm:$0xf0] }
  0x5b   :  { %v401_v40 = vpack.c.bf16 %v353_v32, %v353_v32  ;;  %v529_v46 = vunpack.c.l.b16 %v395_v38  ;;  %vm546_vm4 = vcmask 1044484   ;;  %vm549_vm5 = vcmask 1045509  }
  0x5c   :  { %v532_v51 = vunpack.c.l.b16 %v398_v39  ;;  %vm552_vm6 = vcmask 1046534   ;;  %vm555_vm7 = vcmask 1047559   ;;  %v571_v56 = vrot.slane %v517_v42, 7 }
  0x5d   :  { %v535_v52 = vunpack.c.l.b16 %v401_v40  ;;  %v573_v57 = vrot.slane %v520_v43, 6  ;;  %v575_v58 = vrot.slane %v523_v44, 5  ;;  %v577_v60 = vrot.slane %v526_v45, 4 }
  0x5e   :  { %v579_v61 = vrot.slane %v529_v46, 3  ;;  %v581_v62 = vrot.slane %v532_v51, 2  ;;  %v572_v0 = vsel %vm537_vm1, %v571_v56, %v514_v41  ;;  %vm966_vm8 = vcmask 359424  }
  0x5f   :  { %v583_v63 = vrot.slane %v535_v52, 1  ;;  %v3778_v1 = vor.u32 %v5015_v47, %v3775_v48  ;;  %v3606_v2 = vor.u32 %v4974_v50, %v3605_v49  ;;  %v574_v3 = vsel %vm540_vm2, %v573_v57, %v572_v0 }
  0x60   :  { %v3782_v4 = vor.u32 %v5018_v54, %v3781_v53  ;;  %v3522_v5 = vor.u32 %v4951_v55, %v3519_v59  ;;  %v330_v6 = vperm.slane %v5638_v13, 0  ;;  %v576_v7 = vsel %vm543_vm3, %v575_v58, %v574_v3 }
  0x61   :  { %v975_v8 = vsel %vm970_vm0, %v3778_v1, 0  ;;  %1061 = vmatpush.bf16.msrb.mxu1 %v3606_v2  ;;  %v333_v9 = vperm.slane %v5640_v14, 0  ;;  %v336_v10 = vperm.slane %v5642_v17, 0  ;;  %v578_v11 = vsel %vm546_vm4, %v577_v60, %v576_v7  ;;  %v4970_v7 = vld [vmem:[#allocation5 + $0xd4] sm:$0xf0] }
  0x62   :  { %1053 = vmatpush.bf16.msrb.mxu0 %v975_v8  ;;  %v978_v12 = vsel %vm970_vm0, %v3782_v4, 0  ;;  %1027 = vmatpush.bf16.msrb.mxu3 %v3522_v5  ;;  %v339_v15 = vperm.slane %v5644_v18, 0  ;;  %v342_v16 = vperm.slane %v5646_v21, 0  ;;  %v580_v19 = vsel %vm549_vm5, %v579_v61, %v578_v11  ;;  %v3765_v11 = vld [vmem:[#allocation5 + $0x228] sm:$0xf] }
  0x63   :  { %1092 = vmatpush.bf16.msrb.mxu2 %v978_v12  ;;  %v345_v20 = vperm.slane %v5648_v22, 0  ;;  %v348_v25 = vperm.slane %v5650_v23, 0  ;;  %v351_v26 = vperm.slane %v5652_v24, 0  ;;  %v582_v27 = vsel %vm552_vm6, %v581_v62, %v580_v19  ;;  %v5014_v12 = vld [vmem:[#allocation5 + $0x234] sm:$0xf0] }
  0x64   :  { %v378_v28 = vpack.c.bf16 %v330_v6, %v330_v6  ;;  %v381_v29 = vpack.c.bf16 %v333_v9, %v333_v9  ;;  %v384_v30 = vpack.c.bf16 %v336_v10, %v336_v10  ;;  %v584_v31 = vsel %vm555_vm7, %v583_v63, %v582_v27  ;;  %v3759_v6 = vld [vmem:[#allocation5 + $0x230] sm:$0xf0]  ;;  %v5007_v27 = vld [vmem:[#allocation5 + $0x204] sm:$0xf] }
  0x65   :  { %v387_v32 = vpack.c.bf16 %v339_v15, %v339_v15  ;;  %v390_v33 = vpack.c.bf16 %v342_v16, %v342_v16  ;;  %v393_v34 = vpack.c.bf16 %v345_v20, %v345_v20  ;;  %v5679_v35 = vpack.c.b16 %v584_v31, %v584_v31  ;;  %v4947_v15 = vld [vmem:[#allocation5 + $0x24] sm:$0xf]  ;;  %v3503_v16 = vld [vmem:[#allocation5 + $0x30] sm:$0xf0] }
  0x66   :  { %v396_v36 = vpack.c.bf16 %v348_v25, %v348_v25  ;;  %v399_v37 = vpack.c.bf16 %v351_v26, %v351_v26  ;;  %v512_v38 = vunpack.c.l.b16 %v378_v28  ;;  %v515_v39 = vunpack.c.l.b16 %v381_v29  ;;  %v3743_v28 = vld [vmem:[#allocation5 + $0x210] sm:$0xf0]  ;;  %v3573_v29 = vld [vmem:[#allocation5 + $0xa8] sm:$0xf] }
  0x67   :  { %v518_v40 = vunpack.c.l.b16 %v384_v30  ;;  %v521_v41 = vunpack.c.l.b16 %v387_v32  ;;  %v524_v42 = vunpack.c.l.b16 %v390_v33  ;;  %3787 = vmatmul.msk.bf16.vlgmr.msra.gmra.mxu3 %vm966_vm8, %v5679_v35  ;;  %v527_v43 = vunpack.c.l.b16 %v393_v34  ;;  %v4966_v30 = vld [vmem:[#allocation5 + $0xb4] sm:$0xf0] }
  0x68   :  { %v530_v44 = vunpack.c.l.b16 %v396_v36  ;;  %v533_v45 = vunpack.c.l.b16 %v399_v37  ;;  %v331_v46 = vperm.slane %v5638_v13, 1  ;;  %v536_v47 = vrot.slane %v515_v39, 7  ;;  %v3749_v36 = vld [vmem:[#allocation5 + $0x208] sm:$0xf]  ;;  %v5010_v37 = vld [vmem:[#allocation5 + $0x214] sm:$0xf0] }
  0x69   :  { %v539_v48 = vrot.slane %v518_v40, 6  ;;  %v542_v49 = vrot.slane %v521_v41, 5  ;;  %v545_v50 = vrot.slane %v524_v42, 4  ;;  %v548_v51 = vrot.slane %v527_v43, 3  ;;  %v4943_v40 = vld [vmem:[#allocation5 + $0x4] sm:$0xf] }
  0x6a   :  { %v551_v52 = vrot.slane %v530_v44, 2  ;;  %v554_v53 = vrot.slane %v533_v45, 1  ;;  %v334_v54 = vperm.slane %v5640_v14, 1  ;;  %v538_v55 = vsel %vm537_vm1, %v536_v47, %v512_v38  ;;  %v3487_v41 = vld [vmem:[#allocation5 + $0x10] sm:$0xf0] }
  0x6b   :  { %v337_v56 = vperm.slane %v5642_v17, 1  ;;  %v340_v57 = vperm.slane %v5644_v18, 1  ;;  %v343_v58 = vperm.slane %v5646_v21, 1  ;;  %v541_v59 = vsel %vm540_vm2, %v539_v48, %v538_v55  ;;  %v3607_v47 = vld [vmem:[#allocation5 + $0xf8] sm:$0xf0] }
  0x6c   :  { %v346_v13 = vperm.slane %v5648_v22, 1  ;;  %v349_v60 = vperm.slane %v5650_v23, 1  ;;  %v352_v61 = vperm.slane %v5652_v24, 1  ;;  %v544_v62 = vsel %vm543_vm3, %v542_v49, %v541_v59  ;;  %v5011_v22 = vld [vmem:[#allocation5 + $0x224] sm:$0xf] }
  0x6d   :  { %v379_v63 = vpack.c.bf16 %v331_v46, %v331_v46  ;;  %v382_v14 = vpack.c.bf16 %v334_v54, %v334_v54  ;;  %v385_v0 = vpack.c.bf16 %v337_v56, %v337_v56  ;;  %v547_v1 = vsel %vm546_vm4, %v545_v50, %v544_v62  ;;  %v3589_v23 = vld [vmem:[#allocation5 + $0xc8] sm:$0xf]  ;;  %v4972_v46 = vld [vmem:[#allocation5 + $0xec] sm:$0xf] }
  0x6e   :  { %v388_v17 = vpack.c.bf16 %v340_v57, %v340_v57  ;;  %v391_v2 = vpack.c.bf16 %v343_v58, %v343_v58  ;;  %v394_v18 = vpack.c.bf16 %v346_v13, %v346_v13  ;;  %v550_v21 = vsel %vm549_vm5, %v548_v51, %v547_v1  ;;  %v5004_v58 = vld [vmem:[#allocation5 + $0x1ec] sm:$0xf]  ;;  %v3557_v62 = vld [vmem:[#allocation5 + $0x88] sm:$0xf] }
  0x6f   :  { %v397_v3 = vpack.c.bf16 %v349_v60, %v349_v60  ;;  %v400_v4 = vpack.c.bf16 %v352_v61, %v352_v61  ;;  %v513_v5 = vunpack.c.l.b16 %v379_v63  ;;  %v553_v24 = vsel %vm552_vm6, %v551_v52, %v550_v21  ;;  %v3733_v52 = vld [vmem:[#allocation5 + $0x1e8] sm:$0xf]  ;;  %v3735_v61 = vld [vmem:[#allocation5 + $0x1f8] sm:$0xf0]  ;;  %v4962_v63 = vld [vmem:[#allocation5 + $0x94] sm:$0xf0] }
  0x70   :  { %v516_v8 = vunpack.c.l.b16 %v382_v14  ;;  %v519_v9 = vunpack.c.l.b16 %v385_v0  ;;  %v522_v10 = vunpack.c.l.b16 %v388_v17  ;;  %v556_v19 = vsel %vm555_vm7, %v554_v53, %v553_v24  ;;  %v5006_v53 = vld [vmem:[#allocation5 + $0x1f4] sm:$0xf0]  ;;  %v4968_v17 = vld [vmem:[#allocation5 + $0xcc] sm:$0xf]  ;;  %v3717_v21 = vld [vmem:[#allocation5 + $0x1c8] sm:$0xf] }
  0x71   :  { %v525_v20 = vunpack.c.l.b16 %v391_v2  ;;  %v528_v25 = vunpack.c.l.b16 %v394_v18  ;;  %v531_v26 = vunpack.c.l.b16 %v397_v3  ;;  %v5698_v31 = vpack.c.b16 %v556_v19, %v556_v19  ;;  %v3591_v18 = vld [vmem:[#allocation5 + $0xd8] sm:$0xf0]  ;;  %v5002_v3 = vld [vmem:[#allocation5 + $0x1d4] sm:$0xf0]  ;;  %v3541_v24 = vld [vmem:[#allocation5 + $0x68] sm:$0xf] }
  0x72   :  { %v534_v32 = vunpack.c.l.b16 %v400_v4  ;;  %v557_v33 = vrot.slane %v516_v8, 7  ;;  %v559_v34 = vrot.slane %v519_v9, 6  ;;  %v561_v38 = vrot.slane %v522_v10, 5  ;;  %v4958_v8 = vld [vmem:[#allocation5 + $0x74] sm:$0xf0] }
  0x73   :  { %v563_v39 = vrot.slane %v525_v20, 4  ;;  %991 = vmatmul.bf16.vlgmr.msra.gmra.mxu0 %v5698_v31  ;;  %v565_v43 = vrot.slane %v528_v25, 3  ;;  %v3762_v44 = vor.u32 %v5011_v22, %v3759_v6  ;;  %v3590_v45 = vor.u32 %v4970_v7, %v3589_v23  ;;  %v5000_v6 = vld [vmem:[#allocation5 + $0x1cc] sm:$0xf]  ;;  %v3719_v7 = vld [vmem:[#allocation5 + $0x1d8] sm:$0xf0] }
  0x74   :  { %v558_v42 = vsel %vm537_vm1, %v557_v33, %v513_v5  ;;  %v567_v49 = vrot.slane %v531_v26, 2  ;;  %v3766_v50 = vor.u32 %v5014_v12, %v3765_v11  ;;  %v3506_v51 = vor.u32 %v4947_v15, %v3503_v16  ;;  %v4964_v11 = vld [vmem:[#allocation5 + $0xac] sm:$0xf]  ;;  %v3575_v12 = vld [vmem:[#allocation5 + $0xb8] sm:$0xf0] }
  0x75   :  { %v560_v48 = vsel %vm540_vm2, %v559_v34, %v558_v42  ;;  %v569_v55 = vrot.slane %v534_v32, 1  ;;  %1054 = vmatpush.bf16.msrb.mxu0 %v3762_v44  ;;  %1062 = vmatpush.bf16.msrb.mxu1 %v3590_v45  ;;  %v3746_v56 = vor.u32 %v5007_v27, %v3743_v28  ;;  %v3574_v57 = vor.u32 %v4966_v30, %v3573_v29  ;;  %v3701_v15 = vld [vmem:[#allocation5 + $0x1a8] sm:$0xf]  ;;  %v4998_v16 = vld [vmem:[#allocation5 + $0x1b4] sm:$0xf0] }
  0x76   :  { %v562_v54 = vsel %vm543_vm3, %v561_v38, %v560_v48  ;;  %1093 = vmatpush.bf16.msrb.mxu2 %v3766_v50  ;;  %1028 = vmatpush.bf16.msrb.mxu3 %v3506_v51  ;;  %v3750_v13 = vor.u32 %v5010_v37, %v3749_v36  ;;  %v3490_v60 = vor.u32 %v4943_v40, %v3487_v41  ;;  %v4996_v25 = vld [vmem:[#allocation5 + $0x1ac] sm:$0xf]  ;;  %v3703_v26 = vld [vmem:[#allocation5 + $0x1b8] sm:$0xf0]  ;;  %v3525_v27 = vld [vmem:[#allocation5 + $0x48] sm:$0xf] }
  0x77   :  { %v564_v59 = vsel %vm546_vm4, %v563_v39, %v562_v54  ;;  %v3610_v0 = vor.u32 %v4972_v46, %v3607_v47  ;;  %v3734_v1 = vor.u32 %v5006_v53, %v3733_v52  ;;  %v3738_v5 = vor.u32 %v5004_v58, %v3735_v61  ;;  %v4954_v28 = vld [vmem:[#allocation5 + $0x54] sm:$0xf0]  ;;  %v4960_v32 = vld [vmem:[#allocation5 + $0x8c] sm:$0xf]  ;;  %v3559_v33 = vld [vmem:[#allocation5 + $0x98] sm:$0xf0] }
  0x78   :  { %v566_v14 = vsel %vm549_vm5, %v565_v43, %v564_v59  ;;  %v3558_v22 = vor.u32 %v4962_v63, %v3557_v62  ;;  %v3594_v9 = vor.u32 %v4968_v17, %v3591_v18  ;;  %v3718_v10 = vor.u32 %v5002_v3, %v3717_v21  ;;  %v3685_v34 = vld [vmem:[#allocation5 + $0x188] sm:$0xf]  ;;  %v4994_v36 = vld [vmem:[#allocation5 + $0x194] sm:$0xf0]  ;;  %v4992_v39 = vld [vmem:[#allocation5 + $0x18c] sm:$0xf] }
  0x79   :  { %v568_v2 = vsel %vm552_vm6, %v567_v49, %v566_v14  ;;  %1055 = vmatpush.bf16.msrb.mxu0 %v3746_v56  ;;  %1063 = vmatpush.bf16.msrb.mxu1 %v3574_v57  ;;  %v3722_v19 = vor.u32 %v5000_v6, %v3719_v7  ;;  %v3542_v20 = vor.u32 %v4958_v8, %v3541_v24  ;;  %v3687_v40 = vld [vmem:[#allocation5 + $0x198] sm:$0xf0]  ;;  %v3509_v41 = vld [vmem:[#allocation5 + $0x28] sm:$0xf]  ;;  %v4950_v42 = vld [vmem:[#allocation5 + $0x34] sm:$0xf0] }
  0x7a   :  { %v570_v4 = vsel %vm555_vm7, %v569_v55, %v568_v2  ;;  %1094 = vmatpush.bf16.msrb.mxu2 %v3750_v13  ;;  %1029 = vmatpush.bf16.msrb.mxu3 %v3490_v60  ;;  %v3578_v29 = vor.u32 %v4964_v11, %v3575_v12  ;;  %v3702_v30 = vor.u32 %v4998_v16, %v3701_v15  ;;  %v4956_v45 = vld [vmem:[#allocation5 + $0x6c] sm:$0xf]  ;;  %v3543_v46 = vld [vmem:[#allocation5 + $0x78] sm:$0xf0]  ;;  %v3669_v47 = vld [vmem:[#allocation5 + $0x168] sm:$0xf] }
  0x7b   :  { %v5708_v23 = vpack.c.b16 %v570_v4, %v570_v4  ;;  %v3706_v37 = vor.u32 %v4996_v25, %v3703_v26  ;;  %v3526_v38 = vor.u32 %v4954_v28, %v3525_v27  ;;  %v3562_v43 = vor.u32 %v4960_v32, %v3559_v33  ;;  %v4990_v48 = vld [vmem:[#allocation5 + $0x174] sm:$0xf0]  ;;  %v5016_v49 = vld [vmem:[#allocation5 + $0x24c] sm:$0xf]  ;;  %v3783_v50 = vld [vmem:[#allocation5 + $0x258] sm:$0x30] }
  0x7c   :  { %v3686_v44 = vor.u32 %v4994_v36, %v3685_v34  ;;  %v3690_v51 = vor.u32 %v4992_v39, %v3687_v40  ;;  %v3510_v52 = vor.u32 %v4950_v42, %v3509_v41  ;;  %v4988_v53 = vld [vmem:[#allocation5 + $0x16c] sm:$0xf]  ;;  %v3671_v54 = vld [vmem:[#allocation5 + $0x178] sm:$0xf0]  ;;  %v3493_v55 = vld [vmem:[#allocation5 + $0x8] sm:$0xf]  ;;  %v3546_v57 = vor.u32 %v4956_v45, %v3543_v46 }
  0x7d   :  { %1100 = vmatpush.bf16.msra.mxu0 %v3610_v0  ;;  %1043 = vmatmul.bf16.vlgmr.msra.gmra.mxu2 %v5708_v23  ;;  %v4946_v56 = vld [vmem:[#allocation5 + $0x14] sm:$0xf0]  ;;  %v3670_v58 = vor.u32 %v4990_v48, %v3669_v47  ;;  %v4952_v59 = vld [vmem:[#allocation5 + $0x4c] sm:$0xf]  ;;  %v3786_v13 = vor.u32 %v5016_v49, %v3783_v50  ;;  %v3527_v60 = vld [vmem:[#allocation5 + $0x58] sm:$0xf0]  ;;  %v3674_v63 = vor.u32 %v4988_v53, %v3671_v54 }
  0x7e   :  { %1074 = vmatpush.bf16.msra.mxu3 %v3734_v1  ;;  %1004 = vmatmul.bf16.vlgmr.msra.gmra.mxu1 %v5708_v23  ;;  %v3653_v61 = vld [vmem:[#allocation5 + $0x148] sm:$0xf]  ;;  %v4986_v62 = vld [vmem:[#allocation5 + $0x154] sm:$0xf0]  ;;  %v3494_v14 = vor.u32 %v4946_v56, %v3493_v55  ;;  %v4984_v0 = vld [vmem:[#allocation5 + $0x14c] sm:$0xf]  ;;  %v3530_v2 = vor.u32 %v4952_v59, %v3527_v60 }
  0x7f   :  { %1113 = vmatpush.bf16.msra.mxu2 %v3738_v5  ;;  %1064 = vmatpush.bf16.msrb.mxu1 %v3558_v22  ;;  %v3655_v1 = vld [vmem:[#allocation5 + $0x158] sm:$0xf0]  ;;  %v4948_v17 = vld [vmem:[#allocation5 + $0x2c] sm:$0xf]  ;;  %v3654_v18 = vor.u32 %v4986_v62, %v3653_v61  ;;  %v981_v21 = vsel %vm970_vm0, %v3786_v13, 0 }
  0x80   :  { %1030 = vmatmul.bf16.vlgmr.msrb.gmra.mxu3 %v5698_v31  ;;  %v5012_v3 = vld [vmem:[#allocation5 + $0x22c] sm:$0xf]  ;;  %v3767_v4 = vld [vmem:[#allocation5 + $0x238] sm:$0xf0]  ;;  %v3637_v22 = vld [vmem:[#allocation5 + $0x128] sm:$0xf]  ;;  %v3658_v7 = vor.u32 %v4984_v0, %v3655_v1 }
  0x81   :  { %1101 = vmatpush.bf16.msra.mxu0 %v3594_v9  ;;  %v3511_v5 = vld [vmem:[#allocation5 + $0x38] sm:$0xf0]  ;;  %v4982_v6 = vld [vmem:[#allocation5 + $0x134] sm:$0xf0]  ;;  %v4980_v24 = vld [vmem:[#allocation5 + $0x12c] sm:$0xf] }
  0x82   :  { %1075 = vmatpush.bf16.msra.mxu3 %v3718_v10  ;;  %v3639_v8 = vld [vmem:[#allocation5 + $0x138] sm:$0xf0]  ;;  %v4944_v9 = vld [vmem:[#allocation5 + $0xc] sm:$0xf]  ;;  %v3770_v10 = vor.u32 %v5012_v3, %v3767_v4  ;;  %v3514_v11 = vor.u32 %v4948_v17, %v3511_v5  ;;  %v3638_v12 = vor.u32 %v4982_v6, %v3637_v22  ;;  %v4978_v25 = vld [vmem:[#allocation5 + $0x114] sm:$0xf0] }
  0x83   :  { %1114 = vmatpush.bf16.msra.mxu2 %v3722_v19  ;;  %1065 = vmatpush.bf16.msrb.mxu1 %v3542_v20  ;;  %v3495_v15 = vld [vmem:[#allocation5 + $0x18] sm:$0xf0]  ;;  %v5008_v16 = vld [vmem:[#allocation5 + $0x20c] sm:$0xf]  ;;  %v3621_v20 = vld [vmem:[#allocation5 + $0x108] sm:$0xf]  ;;  %v3642_v27 = vor.u32 %v4980_v24, %v3639_v8 }
  0x84   :  { %3788 = vmatmul.msk.bf16.vlgmr.msrb.gmra.mxu0 %vm966_vm8, %v5679_v35  ;;  %v3751_v19 = vld [vmem:[#allocation5 + $0x218] sm:$0xf0]  ;;  %v3905_v26 = vld [vmem:[#allocation8 + $0xe0] sm:$0xf]  ;;  %v5049_v28 = vld [vmem:[#allocation8 + $0xec] sm:$0xf0]  ;;  %v3498_v36 = vor.u32 %v4944_v9, %v3495_v15 }
  0x85   :  { %1102 = vmatpush.bf16.msra.mxu0 %v3578_v29  ;;  %v4033_v29 = vld [vmem:[#allocation8 + $0x1e0] sm:$0xf]  ;;  %v4976_v32 = vld [vmem:[#allocation5 + $0x10c] sm:$0xf]  ;;  %v3623_v33 = vld [vmem:[#allocation5 + $0x118] sm:$0xf0]  ;;  %v3754_v34 = vor.u32 %v5008_v16, %v3751_v19 }
  0x86   :  { %1076 = vmatpush.bf16.msra.mxu3 %v3702_v30  ;;  %v5081_v30 = vld [vmem:[#allocation8 + $0x1ec] sm:$0xf0]  ;;  %v3626_v40 = vor.u32 %v4976_v32, %v3623_v33  ;;  %v3889_v41 = vld [vmem:[#allocation8 + $0xc0] sm:$0xf]  ;;  %v5047_v4 = vld [vmem:[#allocation8 + $0xe4] sm:$0xf] }
  0x87   :  { %1115 = vmatpush.bf16.msra.mxu2 %v3706_v37  ;;  %1066 = vmatpush.bf16.msrb.mxu1 %v3526_v38  ;;  %v3622_v37 = vor.u32 %v4978_v25, %v3621_v20  ;;  %v3906_v38 = vor.u32 %v5049_v28, %v3905_v26  ;;  %v4034_v39 = vor.u32 %v5081_v30, %v4033_v29  ;;  %v5045_v42 = vld [vmem:[#allocation8 + $0xcc] sm:$0xf0]  ;;  %v3873_v46 = vld [vmem:[#allocation8 + $0xa0] sm:$0xf]  ;;  %v3907_v5 = vld [vmem:[#allocation8 + $0xf0] sm:$0xf0] }
  0x88   :  { %v3890_v45 = vor.u32 %v5045_v42, %v3889_v41  ;;  %v5041_v47 = vld [vmem:[#allocation8 + $0xac] sm:$0xf0]  ;;  %v4001_v49 = vld [vmem:[#allocation8 + $0x1a0] sm:$0xf]  ;;  %v3910_v6 = vor.u32 %v5047_v4, %v3907_v5  ;;  %v3891_v24 = vld [vmem:[#allocation8 + $0xd0] sm:$0xf0] }
  0x89   :  { %1103 = vmatpush.bf16.msra.mxu0 %v3562_v43  ;;  %v4017_v43 = vld [vmem:[#allocation8 + $0x1c0] sm:$0xf]  ;;  %v5073_v50 = vld [vmem:[#allocation8 + $0x1ac] sm:$0xf0]  ;;  %v5039_v9 = vld [vmem:[#allocation8 + $0xa4] sm:$0xf] }
  0x8a   :  { %1077 = vmatpush.bf16.msra.mxu3 %v3686_v44  ;;  %v5077_v44 = vld [vmem:[#allocation8 + $0x1cc] sm:$0xf0]  ;;  %v4002_v54 = vor.u32 %v5073_v50, %v4001_v49  ;;  %v3985_v55 = vld [vmem:[#allocation8 + $0x180] sm:$0xf]  ;;  %v3859_v15 = vld [vmem:[#allocation8 + $0x90] sm:$0xf0] }
  0x8b   :  { %1116 = vmatpush.bf16.msra.mxu2 %v3690_v51  ;;  %1067 = vmatpush.bf16.msrb.mxu1 %v3510_v52  ;;  %v4018_v48 = vor.u32 %v5077_v44, %v4017_v43  ;;  %v3874_v51 = vor.u32 %v5041_v47, %v3873_v46  ;;  %v3857_v52 = vld [vmem:[#allocation8 + $0x80] sm:$0xf]  ;;  %v5037_v53 = vld [vmem:[#allocation8 + $0x8c] sm:$0xf0]  ;;  %v5031_v33 = vld [vmem:[#allocation8 + $0x64] sm:$0xf] }
  0x8c   :  { %v5069_v56 = vld [vmem:[#allocation8 + $0x18c] sm:$0xf0]  ;;  %v3969_v13 = vld [vmem:[#allocation8 + $0x160] sm:$0xf]  ;;  %v5027_v46 = vld [vmem:[#allocation8 + $0x44] sm:$0xf] }
  0x8d   :  { %1104 = vmatpush.bf16.msra.mxu0 %v3546_v57  ;;  %3789 = vmatmul.msk.bf16.vlgmr.msrb.gmra.mxu2 %vm966_vm8, %v5679_v35  ;;  %v3858_v57 = vor.u32 %v5037_v53, %v3857_v52  ;;  %v3986_v59 = vor.u32 %v5069_v56, %v3985_v55  ;;  %v5065_v60 = vld [vmem:[#allocation8 + $0x16c] sm:$0xf0]  ;;  %v3825_v61 = vld [vmem:[#allocation8 + $0x40] sm:$0xf]  ;;  %v3827_v47 = vld [vmem:[#allocation8 + $0x50] sm:$0xf0] }
  0x8e   :  { %1078 = vmatpush.bf16.msra.mxu3 %v3670_v58  ;;  %v5033_v58 = vld [vmem:[#allocation8 + $0x6c] sm:$0xf0]  ;;  %v3809_v17 = vld [vmem:[#allocation8 + $0x20] sm:$0xf]  ;;  %v3830_v49 = vor.u32 %v5027_v46, %v3827_v47  ;;  %v4035_v50 = vld [vmem:[#allocation8 + $0x1f0] sm:$0xf0] }
  0x8f   :  { %1117 = vmatpush.bf16.msra.mxu2 %v3674_v63  ;;  %1068 = vmatpush.bf16.msrb.mxu1 %v3494_v14  ;;  %v5029_v62 = vld [vmem:[#allocation8 + $0x4c] sm:$0xf0]  ;;  %v3970_v63 = vor.u32 %v5065_v60, %v3969_v13  ;;  %v3953_v14 = vld [vmem:[#allocation8 + $0x140] sm:$0xf]  ;;  %v4019_v60 = vld [vmem:[#allocation8 + $0x1d0] sm:$0xf0] }
  0x90   :  { %v5061_v0 = vld [vmem:[#allocation8 + $0x14c] sm:$0xf0]  ;;  %v3826_v1 = vor.u32 %v5029_v62, %v3825_v61  ;;  %v4289_v19 = vld [vmem:[#allocation8 + $0x3e0] sm:$0xf] }
  0x91   :  { %1105 = vmatpush.bf16.msra.mxu0 %v3530_v2  ;;  %v3954_v2 = vor.u32 %v5061_v0, %v3953_v14  ;;  %v5021_v3 = vld [vmem:[#allocation8 + $0xc] sm:$0xf0]  ;;  %v4161_v25 = vld [vmem:[#allocation8 + $0x2e0] sm:$0xf] }
  0x92   :  { %1079 = vmatpush.bf16.msra.mxu3 %v3654_v18  ;;  %1069 = vmatmul.bf16.vlgmr.msrb.gmra.mxu1 %v5698_v31  ;;  %v5145_v20 = vld [vmem:[#allocation8 + $0x3ec] sm:$0xf0]  ;;  %v3937_v29 = vld [vmem:[#allocation8 + $0x120] sm:$0xf] }
  0x93   :  { %1131 = vmatpush.bf16.msra.mxu1 %v981_v21  ;;  %1118 = vmatpush.bf16.msra.mxu2 %v3658_v7  ;;  %v3793_v21 = vld [vmem:[#allocation8] sm:$0xf]  ;;  %v5043_v7 = vld [vmem:[#allocation8 + $0xc4] sm:$0xf]  ;;  %v4290_v26 = vor.u32 %v5145_v20, %v4289_v19  ;;  %v5057_v30 = vld [vmem:[#allocation8 + $0x12c] sm:$0xf0] }
  0x94   :  { %v3794_v22 = vor.u32 %v5021_v3, %v3793_v21  ;;  %v3894_v8 = vor.u32 %v5043_v7, %v3891_v24  ;;  %v3938_v32 = vor.u32 %v5057_v30, %v3937_v29  ;;  %v5109_v41 = vld [vmem:[#allocation8 + $0x2cc] sm:$0xf0]  ;;  %v3921_v43 = vld [vmem:[#allocation8 + $0x100] sm:$0xf]  ;;  %v4003_v21 = vld [vmem:[#allocation8 + $0x1b0] sm:$0xf0] }
  0x95   :  { %1106 = vmatpush.bf16.msra.mxu0 %v3514_v11  ;;  %v5053_v44 = vld [vmem:[#allocation8 + $0x10c] sm:$0xf0]  ;;  %v4129_v55 = vld [vmem:[#allocation8 + $0x2a0] sm:$0xf]  ;;  %v5067_v24 = vld [vmem:[#allocation8 + $0x184] sm:$0xf] }
  0x96   :  { %1080 = vmatpush.bf16.msra.mxu3 %v3638_v12  ;;  %v5035_v12 = vld [vmem:[#allocation8 + $0x84] sm:$0xf]  ;;  %v5137_v52 = vld [vmem:[#allocation8 + $0x3ac] sm:$0xf0]  ;;  %v4113_v14 = vld [vmem:[#allocation8 + $0x280] sm:$0xf] }
  0x97   :  { %1132 = vmatpush.bf16.msra.mxu1 %v3770_v10  ;;  %1119 = vmatpush.bf16.msra.mxu2 %v3642_v27  ;;  %v3875_v10 = vld [vmem:[#allocation8 + $0xb0] sm:$0xf0]  ;;  %v3862_v16 = vor.u32 %v5035_v12, %v3859_v15  ;;  %v5113_v27 = vld [vmem:[#allocation8 + $0x2ec] sm:$0xf0]  ;;  %v4225_v3 = vld [vmem:[#allocation8 + $0x360] sm:$0xf] }
  0x98   :  { %v3878_v11 = vor.u32 %v5039_v9, %v3875_v10  ;;  %v4162_v28 = vor.u32 %v5113_v27, %v4161_v25  ;;  %v5105_v56 = vld [vmem:[#allocation8 + $0x2ac] sm:$0xf0]  ;;  %v4209_v12 = vld [vmem:[#allocation8 + $0x340] sm:$0xf]  ;;  %v3971_v27 = vld [vmem:[#allocation8 + $0x170] sm:$0xf0] }
  0x99   :  { %1107 = vmatpush.bf16.msra.mxu0 %v3498_v36  ;;  %v5133_v61 = vld [vmem:[#allocation8 + $0x38c] sm:$0xf0]  ;;  %v4081_v19 = vld [vmem:[#allocation8 + $0x240] sm:$0xf] }
  0x9a   :  { %1081 = vmatpush.bf16.msra.mxu3 %v3622_v37  ;;  %v4273_v37 = vld [vmem:[#allocation8 + $0x3c0] sm:$0xf]  ;;  %v5101_v0 = vld [vmem:[#allocation8 + $0x28c] sm:$0xf0] }
  0x9b   :  { %1133 = vmatpush.bf16.msra.mxu1 %v3754_v34  ;;  %1120 = vmatpush.bf16.msra.mxu2 %v3626_v40  ;;  %v3843_v34 = vld [vmem:[#allocation8 + $0x70] sm:$0xf0]  ;;  %v4145_v40 = vld [vmem:[#allocation8 + $0x2c0] sm:$0xf]  ;;  %v5129_v4 = vld [vmem:[#allocation8 + $0x36c] sm:$0xf0] }
  0x9c   :  { %1108 = vmatmul.bf16.vlgmr.msra.gmra.mxu0 %v5698_v31  ;;  %v3841_v31 = vld [vmem:[#allocation8 + $0x60] sm:$0xf]  ;;  %v3846_v36 = vor.u32 %v5031_v33, %v3843_v34  ;;  %v4146_v42 = vor.u32 %v5109_v41, %v4145_v40  ;;  %v5097_v7 = vld [vmem:[#allocation8 + $0x26c] sm:$0xf0]  ;;  %v3955_v40 = vld [vmem:[#allocation8 + $0x150] sm:$0xf0] }
  0x9d   :  { %1938 = vmatpush.bf16.msrb.mxu0 %v4034_v39  ;;  %1082 = vmatmul.bf16.vlgmr.msra.gmra.mxu3 %v5708_v23  ;;  %v5125_v15 = vld [vmem:[#allocation8 + $0x34c] sm:$0xf0]  ;;  %v4193_v29 = vld [vmem:[#allocation8 + $0x320] sm:$0xf] }
  0x9e   :  { %1925 = vmatpush.bf16.msrb.mxu3 %v3906_v38  ;;  %1121 = vmatmul.bf16.vlgmr.msra.gmra.mxu2 %v5708_v23  ;;  %v3842_v23 = vor.u32 %v5033_v58, %v3841_v31  ;;  %v5141_v38 = vld [vmem:[#allocation8 + $0x3cc] sm:$0xf0]  ;;  %v5023_v31 = vld [vmem:[#allocation8 + $0x24] sm:$0xf]  ;;  %v3811_v58 = vld [vmem:[#allocation8 + $0x30] sm:$0xf0] }
  0x9f   :  { %1964 = vmatpush.bf16.msrb.mxu2 %v4290_v26  ;;  %1951 = vmatpush.bf16.msrb.mxu1 %v4162_v28  ;;  %v4274_v39 = vor.u32 %v5141_v38, %v4273_v37  ;;  %v3814_v13 = vor.u32 %v5023_v31, %v3811_v58  ;;  %v5093_v20 = vld [vmem:[#allocation8 + $0x24c] sm:$0xf0]  ;;  %v5063_v26 = vld [vmem:[#allocation8 + $0x164] sm:$0xf]  ;;  %v4065_v34 = vld [vmem:[#allocation8 + $0x220] sm:$0xf] }
  0xa0   :  { %v4082_v25 = vor.u32 %v5093_v20, %v4081_v19  ;;  %v3974_v28 = vor.u32 %v5063_v26, %v3971_v27  ;;  %v5121_v30 = vld [vmem:[#allocation8 + $0x32c] sm:$0xf0]  ;;  %v4177_v41 = vld [vmem:[#allocation8 + $0x300] sm:$0xf]  ;;  %v5127_v27 = vld [vmem:[#allocation8 + $0x364] sm:$0xf] }
  0xa1   :  { %1939 = vmatpush.bf16.msrb.mxu0 %v4018_v48  ;;  %v5079_v48 = vld [vmem:[#allocation8 + $0x1e4] sm:$0xf]  ;;  %v4194_v33 = vor.u32 %v5121_v30, %v4193_v29  ;;  %v4049_v47 = vld [vmem:[#allocation8 + $0x200] sm:$0xf] }
  0xa2   :  { %1926 = vmatpush.bf16.msrb.mxu3 %v3890_v45  ;;  %3790 = vmatmul.msk.bf16.vlgmr.msra.gmra.mxu1 %vm966_vm8, %v5679_v35  ;;  %v5025_v35 = vld [vmem:[#allocation8 + $0x2c] sm:$0xf0]  ;;  %v3922_v45 = vor.u32 %v5053_v44, %v3921_v43  ;;  %v4038_v53 = vor.u32 %v5079_v48, %v4035_v50 }
  0xa3   :  { %v3810_v18 = vor.u32 %v5025_v35, %v3809_v17  ;;  %1965 = vmatpush.bf16.msrb.mxu2 %v4274_v39  ;;  %1952 = vmatpush.bf16.msrb.mxu1 %v4146_v42  ;;  %v5019_v17 = vld [vmem:[#allocation8 + $0x4] sm:$0xf]  ;;  %v3795_v35 = vld [vmem:[#allocation8 + $0x10] sm:$0xf0]  ;;  %v5117_v43 = vld [vmem:[#allocation8 + $0x30c] sm:$0xf0] }
  0xa4   :  { %v5059_v39 = vld [vmem:[#allocation8 + $0x144] sm:$0xf]  ;;  %v4178_v46 = vor.u32 %v5117_v43, %v4177_v41  ;;  %v5085_v48 = vld [vmem:[#allocation8 + $0x20c] sm:$0xf0] }
  0xa5   :  { %1940 = vmatpush.bf16.msrb.mxu0 %v4002_v54  ;;  %v3958_v42 = vor.u32 %v5059_v39, %v3955_v40  ;;  %v4050_v50 = vor.u32 %v5085_v48, %v4049_v47  ;;  %v3897_v39 = vld [vmem:[#allocation8 + $0xc8] sm:$0xf]  ;;  %v5046_v40 = vld [vmem:[#allocation8 + $0xd4] sm:$0xf0]  ;;  %v5091_v48 = vld [vmem:[#allocation8 + $0x244] sm:$0xf] }
  0xa6   :  { %1927 = vmatpush.bf16.msrb.mxu3 %v3874_v51  ;;  %v4257_v51 = vld [vmem:[#allocation8 + $0x3a0] sm:$0xf] }
  0xa7   :  { %v4258_v54 = vor.u32 %v5137_v52, %v4257_v51  ;;  %v4291_v51 = vld [vmem:[#allocation8 + $0x3f0] sm:$0xf0]  ;;  %v5111_v52 = vld [vmem:[#allocation8 + $0x2e4] sm:$0xf] }
  0xa9   :  { %1941 = vmatpush.bf16.msrb.mxu0 %v3986_v59  ;;  %1966 = vmatpush.bf16.msrb.mxu2 %v4258_v54  ;;  %v5075_v59 = vld [vmem:[#allocation8 + $0x1c4] sm:$0xf]  ;;  %v4163_v54 = vld [vmem:[#allocation8 + $0x2f0] sm:$0xf0] }
  0xaa   :  { %1928 = vmatpush.bf16.msrb.mxu3 %v3858_v57  ;;  %v4130_v57 = vor.u32 %v5105_v56, %v4129_v55  ;;  %v4022_v62 = vor.u32 %v5075_v59, %v4019_v60  ;;  %v5055_v55 = vld [vmem:[#allocation8 + $0x124] sm:$0xf]  ;;  %v3939_v56 = vld [vmem:[#allocation8 + $0x130] sm:$0xf0]  ;;  %v4166_v31 = vor.u32 %v5111_v52, %v4163_v54 }
  0xab   :  { %v3942_v58 = vor.u32 %v5055_v55, %v3939_v56  ;;  %v5139_v59 = vld [vmem:[#allocation8 + $0x3c4] sm:$0xf]  ;;  %v4041_v55 = vld [vmem:[#allocation8 + $0x1e8] sm:$0xf] }
  0xac   :  { %1953 = vmatpush.bf16.msrb.mxu1 %v4130_v57  ;;  %v5119_v56 = vld [vmem:[#allocation8 + $0x324] sm:$0xf] }
  0xad   :  { %1942 = vmatpush.bf16.msrb.mxu0 %v3970_v63 }
  0xae   :  { %1929 = vmatpush.bf16.msrb.mxu3 %v3842_v23  ;;  %v4241_v23 = vld [vmem:[#allocation8 + $0x380] sm:$0xf] }
  0xaf   :  { %v4242_v63 = vor.u32 %v5133_v61, %v4241_v23  ;;  %v5107_v61 = vld [vmem:[#allocation8 + $0x2c4] sm:$0xf] }
  0xb1   :  { %1943 = vmatpush.bf16.msrb.mxu0 %v3954_v2  ;;  %1967 = vmatpush.bf16.msrb.mxu2 %v4242_v63  ;;  %v5071_v2 = vld [vmem:[#allocation8 + $0x1a4] sm:$0xf] }
  0xb2   :  { %1930 = vmatpush.bf16.msrb.mxu3 %v3826_v1  ;;  %v4114_v1 = vor.u32 %v5101_v0, %v4113_v14  ;;  %v4006_v5 = vor.u32 %v5071_v2, %v4003_v21  ;;  %v5051_v63 = vld [vmem:[#allocation8 + $0x104] sm:$0xf] }
  0xb3   :  { %v5135_v2 = vld [vmem:[#allocation8 + $0x3a4] sm:$0xf] }
  0xb4   :  { %1954 = vmatpush.bf16.msrb.mxu1 %v4114_v1  ;;  %v3923_v1 = vld [vmem:[#allocation8 + $0x110] sm:$0xf0] }
  0xb5   :  { %1944 = vmatpush.bf16.msrb.mxu0 %v3938_v32  ;;  %v5726_v32 = vld [vmem:[#allocation7] sm:$0xf] }
  0xb6   :  { %1931 = vmatpush.bf16.msrb.mxu3 %v3810_v18  ;;  %v3798_v18 = vor.u32 %v5019_v17, %v3795_v35  ;;  %v480_v44 = vperm.slane %v5726_v32, 0  ;;  %v3926_v35 = vor.u32 %v5051_v63, %v3923_v1 }
  0xb9   :  { %1945 = vmatpush.bf16.msrb.mxu0 %v3922_v45 }
  0xba   :  { %1932 = vmatpush.bf16.msrb.mxu3 %v3794_v22  ;;  %v4226_v22 = vor.u32 %v5129_v4, %v4225_v3  ;;  %v5103_v4 = vld [vmem:[#allocation8 + $0x2a4] sm:$0xf] }
  0xbc   :  { %1968 = vmatpush.bf16.msrb.mxu2 %v4226_v22 }
  0xbd   :  { %1990 = vmatpush.bf16.msra.mxu0 %v4038_v53 }
  0xbe   :  { %1977 = vmatpush.bf16.msra.mxu3 %v3910_v6  ;;  %v4097_v6 = vld [vmem:[#allocation8 + $0x260] sm:$0xf] }
  0xbf   :  { %v4098_v9 = vor.u32 %v5097_v7, %v4097_v6  ;;  %v481_v7 = vperm.slane %v5726_v32, 1 }
  0xc1   :  { %1991 = vmatpush.bf16.msra.mxu0 %v4022_v62  ;;  %1955 = vmatpush.bf16.msrb.mxu1 %v4098_v9  ;;  %v4147_v62 = vld [vmem:[#allocation8 + $0x2d0] sm:$0xf0] }
  0xc2   :  { %1978 = vmatpush.bf16.msra.mxu3 %v3894_v8  ;;  %v3987_v8 = vld [vmem:[#allocation8 + $0x190] sm:$0xf0]  ;;  %v4150_v0 = vor.u32 %v5107_v61, %v4147_v62  ;;  %v5038_v61 = vld [vmem:[#allocation8 + $0x94] sm:$0xf0] }
  0xc3   :  { %v3990_v10 = vor.u32 %v5067_v24, %v3987_v8  ;;  %v5131_v24 = vld [vmem:[#allocation8 + $0x384] sm:$0xf]  ;;  %v4243_v8 = vld [vmem:[#allocation8 + $0x390] sm:$0xf0] }
  0xc4   :  { %v4246_v9 = vor.u32 %v5131_v24, %v4243_v8 }
  0xc5   :  { %1992 = vmatpush.bf16.msra.mxu0 %v4006_v5  ;;  %1956 = vmatpush.bf16.msrb.mxu1 %v4082_v25  ;;  %v4131_v5 = vld [vmem:[#allocation8 + $0x2b0] sm:$0xf0] }
  0xc6   :  { %1979 = vmatpush.bf16.msra.mxu3 %v3878_v11  ;;  %v4134_v22 = vor.u32 %v5103_v4, %v4131_v5  ;;  %v5078_v4 = vld [vmem:[#allocation8 + $0x1d4] sm:$0xf0]  ;;  %v5083_v5 = vld [vmem:[#allocation8 + $0x204] sm:$0xf] }
  0xc9   :  { %1993 = vmatpush.bf16.msra.mxu0 %v3990_v10  ;;  %v5099_v10 = vld [vmem:[#allocation8 + $0x284] sm:$0xf] }
  0xca   :  { %1980 = vmatpush.bf16.msra.mxu3 %v3862_v16  ;;  %v4210_v16 = vor.u32 %v5125_v15, %v4209_v12  ;;  %v4115_v12 = vld [vmem:[#allocation8 + $0x290] sm:$0xf0] }
  0xcb   :  { %v4118_v20 = vor.u32 %v5099_v10, %v4115_v12  ;;  %v4009_v10 = vld [vmem:[#allocation8 + $0x1a8] sm:$0xf]  ;;  %v5074_v12 = vld [vmem:[#allocation8 + $0x1b4] sm:$0xf0] }
  0xcc   :  { %1969 = vmatpush.bf16.msrb.mxu2 %v4210_v16  ;;  %v3913_v16 = vld [vmem:[#allocation8 + $0xe8] sm:$0xf] }
  0xcd   :  { %1994 = vmatpush.bf16.msra.mxu0 %v3974_v28  ;;  %v4227_v28 = vld [vmem:[#allocation8 + $0x370] sm:$0xf0] }
  0xce   :  { %1981 = vmatpush.bf16.msra.mxu3 %v3846_v36  ;;  %v5089_v36 = vld [vmem:[#allocation8 + $0x22c] sm:$0xf0] }
  0xcf   :  { %v4066_v38 = vor.u32 %v5089_v36, %v4065_v34  ;;  %v5095_v34 = vld [vmem:[#allocation8 + $0x264] sm:$0xf]  ;;  %v4099_v36 = vld [vmem:[#allocation8 + $0x270] sm:$0xf0] }
  0xd0   :  { %1970 = vmatpush.bf16.msrb.mxu2 %v4194_v33  ;;  %v4230_v33 = vor.u32 %v5127_v27, %v4227_v28  ;;  %v4102_v41 = vor.u32 %v5095_v34, %v4099_v36  ;;  %v483_v28 = vperm.slane %v5726_v32, 3  ;;  %v5026_v34 = vld [vmem:[#allocation8 + $0x34] sm:$0xf0] }
  0xd1   :  { %1957 = vmatpush.bf16.msrb.mxu1 %v4066_v38  ;;  %1995 = vmatpush.bf16.msra.mxu0 %v3958_v42 }
  0xd2   :  { %1982 = vmatpush.bf16.msra.mxu3 %v3830_v49  ;;  %v5143_v49 = vld [vmem:[#allocation8 + $0x3e4] sm:$0xf] }
  0xd3   :  { %v4294_v53 = vor.u32 %v5143_v49, %v4291_v51  ;;  %v4083_v49 = vld [vmem:[#allocation8 + $0x250] sm:$0xf0]  ;;  %v5042_v51 = vld [vmem:[#allocation8 + $0xb4] sm:$0xf0] }
  0xd4   :  { %1971 = vmatpush.bf16.msrb.mxu2 %v4178_v46  ;;  %v3898_v46 = vor.u32 %v5046_v40, %v3897_v39 }
  0xd5   :  { %1958 = vmatpush.bf16.msrb.mxu1 %v4050_v50  ;;  %1996 = vmatpush.bf16.msra.mxu0 %v3942_v58  ;;  %v3881_v50 = vld [vmem:[#allocation8 + $0xa8] sm:$0xf]  ;;  %v5082_v58 = vld [vmem:[#allocation8 + $0x1f4] sm:$0xf0] }
  0xd6   :  { %1983 = vmatpush.bf16.msra.mxu3 %v3814_v13  ;;  %v4275_v13 = vld [vmem:[#allocation8 + $0x3d0] sm:$0xf0] }
  0xd7   :  { %v4278_v23 = vor.u32 %v5139_v59, %v4275_v13  ;;  %v5087_v13 = vld [vmem:[#allocation8 + $0x224] sm:$0xf] }
  0xd8   :  { %2016 = vmatpush.bf16.msra.mxu2 %v4294_v53  ;;  %v4086_v53 = vor.u32 %v5091_v48, %v4083_v49  ;;  %v5048_v48 = vld [vmem:[#allocation8 + $0xec] sm:$0xf]  ;;  %v3915_v49 = vld [vmem:[#allocation8 + $0xf8] sm:$0xf0] }
  0xd9   :  { %2003 = vmatpush.bf16.msra.mxu1 %v4166_v31  ;;  %1997 = vmatpush.bf16.msra.mxu0 %v3926_v35  ;;  %v3882_v31 = vor.u32 %v5042_v51, %v3881_v50  ;;  %v4042_v35 = vor.u32 %v5082_v58, %v4041_v55  ;;  %v3961_v55 = vld [vmem:[#allocation8 + $0x148] sm:$0xf]  ;;  %v5044_v58 = vld [vmem:[#allocation8 + $0xcc] sm:$0xf] }
  0xda   :  { %1984 = vmatpush.bf16.msra.mxu3 %v3798_v18  ;;  %v4259_v18 = vld [vmem:[#allocation8 + $0x3b0] sm:$0xf0] }
  0xdb   :  { %v4262_v3 = vor.u32 %v5135_v2, %v4259_v18  ;;  %v4025_v2 = vld [vmem:[#allocation8 + $0x1c8] sm:$0xf] }
  0xdc   :  { %2017 = vmatpush.bf16.msra.mxu2 %v4278_v23  ;;  %v3865_v23 = vld [vmem:[#allocation8 + $0x88] sm:$0xf]  ;;  %v4026_v8 = vor.u32 %v5078_v4, %v4025_v2 }
  0xdd   :  { %2004 = vmatpush.bf16.msra.mxu1 %v4150_v0  ;;  %v4179_v0 = vld [vmem:[#allocation8 + $0x310] sm:$0xf0]  ;;  %v4297_v2 = vld [vmem:[#allocation8 + $0x3e8] sm:$0xf] }
  0xe0   :  { %2018 = vmatpush.bf16.msra.mxu2 %v4262_v3  ;;  %v3866_v3 = vor.u32 %v5038_v61, %v3865_v23  ;;  %v5058_v23 = vld [vmem:[#allocation8 + $0x134] sm:$0xf0] }
  0xe1   :  { %2005 = vmatpush.bf16.msra.mxu1 %v4134_v22  ;;  %v4051_v22 = vld [vmem:[#allocation8 + $0x210] sm:$0xf0] }
  0xe2   :  { %v4054_v24 = vor.u32 %v5083_v5, %v4051_v22  ;;  %v4153_v22 = vld [vmem:[#allocation8 + $0x2c8] sm:$0xf] }
  0xe4   :  { %2019 = vmatpush.bf16.msra.mxu2 %v4246_v9 }
  0xe5   :  { %2006 = vmatpush.bf16.msra.mxu1 %v4118_v20 }
  0xe8   :  { %2020 = vmatpush.bf16.msra.mxu2 %v4230_v33  ;;  %v3817_v33 = vld [vmem:[#allocation8 + $0x28] sm:$0xf] }
  0xe9   :  { %2007 = vmatpush.bf16.msra.mxu1 %v4102_v41  ;;  %v3818_v40 = vor.u32 %v5026_v34, %v3817_v33  ;;  %v3977_v41 = vld [vmem:[#allocation8 + $0x168] sm:$0xf]  ;;  %v5106_v34 = vld [vmem:[#allocation8 + $0x2b4] sm:$0xf0] }
  0xea   :  { %v5724_v11 = vpop.f32.mrf.mxu3 }
  0xed   :  { %2008 = vmatpush.bf16.msra.mxu1 %v4086_v53 }
  0xf0   :  { %v992_v37 = vpop.f32.mrf.mxu0 }
  0xf1   :  { %v993_v57 = vadd.f32 %v992_v37, %v480_v44  ;;  %v5123_v44 = vld [vmem:[#allocation8 + $0x344] sm:$0xf] }
  0xf2   :  { %v1020_v45 = vpop.f32.mrf.mxu3 }
  0xf3   :  { %v4211_v45 = vld [vmem:[#allocation8 + $0x350] sm:$0xf0] }
  0xf4   :  { %v4214_v47 = vor.u32 %v5123_v44, %v4211_v45  ;;  %v5022_v44 = vld [vmem:[#allocation8 + $0x14] sm:$0xf0] }
  0xf6   :  { %2021 = vmatpush.bf16.msra.mxu2 %v4214_v47 }
  0xf8   :  { %v994_v60 = vpop.f32.mrf.mxu0 }
  0xf9   :  { %v4067_v60 = vld [vmem:[#allocation8 + $0x230] sm:$0xf0] }
  0xfa   :  { %v4070_v63 = vor.u32 %v5087_v13, %v4067_v60  ;;  %v3945_v60 = vld [vmem:[#allocation8 + $0x128] sm:$0xf] }
  0xfb   :  { %v1005_v14 = vpop.f32.mrf.mxu1 }
  0xfc   :  { %v1006_v17 = vadd.f32 %v1005_v14, %v993_v57  ;;  %v4195_v57 = vld [vmem:[#allocation8 + $0x330] sm:$0xf0]  ;;  %v5115_v14 = vld [vmem:[#allocation8 + $0x304] sm:$0xf]  ;;  %2009 = vmatpush.bf16.msra.mxu1 %v4070_v63 }
  0xfd   :  { %v4198_v59 = vor.u32 %v5119_v56, %v4195_v57  ;;  %v4182_v18 = vor.u32 %v5115_v14, %v4179_v0  ;;  %v5062_v56 = vld [vmem:[#allocation8 + $0x154] sm:$0xf0]  ;;  %v3918_v57 = vor.u32 %v5048_v48, %v3915_v49  ;;  %v4169_v14 = vld [vmem:[#allocation8 + $0x2e8] sm:$0xf]  ;;  %v5072_v49 = vld [vmem:[#allocation8 + $0x1ac] sm:$0xf] }
  0xfe   :  { %v1019_v21 = vadd.f32 %v5724_v11, %v1006_v17  ;;  %v5050_v11 = vld [vmem:[#allocation8 + $0xf4] sm:$0xf0]  ;;  %v3962_v13 = vor.u32 %v5062_v56, %v3961_v55 }
  0xff   :  { %v3914_v30 = vor.u32 %v5050_v11, %v3913_v16  ;;  %2022 = vmatpush.bf16.msra.mxu2 %v4198_v59  ;;  %v5030_v16 = vld [vmem:[#allocation8 + $0x54] sm:$0xf0]  ;;  %v3899_v59 = vld [vmem:[#allocation8 + $0xd8] sm:$0xf0] }
 0x100   :  { %5322 = vtanh.f32 %v1019_v21  ;;  %v1044_v6 = vpop.f32.mrf.mxu2  ;;  %2010 = vmatpush.bf16.msra.mxu1 %v4054_v24  ;;  %v3902_v61 = vor.u32 %v5044_v58, %v3899_v59  ;;  %v5114_v0 = vld [vmem:[#allocation8 + $0x2f4] sm:$0xf0]  ;;  %v5068_v59 = vld [vmem:[#allocation8 + $0x18c] sm:$0xf] }
 0x101   :  { %v1057_v19 = vpop.f32.mrf.mxu0  ;;  %v4170_v5 = vor.u32 %v5114_v0, %v4169_v14  ;;  %v5102_v48 = vld [vmem:[#allocation8 + $0x294] sm:$0xf0] }
 0x102   :  { %v5098_v58 = vld [vmem:[#allocation8 + $0x274] sm:$0xf0] }
 0x103   :  { %v1007_v15 = vpop.f32.mrf.mxu1  ;;  %v1031_v25 = vpop.f32.mrf.mxu3  ;;  %2023 = vmatpush.bf16.msra.mxu2 %v4182_v18  ;;  %v5146_v18 = vld [vmem:[#allocation8 + $0x3f4] sm:$0xf0] }
 0x104   :  { %v1032_v26 = vadd.f32 %v1031_v25, %v481_v7  ;;  %v5034_v7 = vld [vmem:[#allocation8 + $0x74] sm:$0xf0]  ;;  %v3833_v15 = vld [vmem:[#allocation8 + $0x48] sm:$0xf]  ;;  %v4010_v25 = vor.u32 %v5074_v12, %v4009_v10  ;;  %v5080_v10 = vld [vmem:[#allocation8 + $0x1ec] sm:$0xf] }
 0x105   :  { %v3834_v27 = vor.u32 %v5030_v16, %v3833_v15  ;;  %v4043_v12 = vld [vmem:[#allocation8 + $0x1f8] sm:$0xf0]  ;;  %v5036_v16 = vld [vmem:[#allocation8 + $0x8c] sm:$0xf] }
 0x106   :  { %v5323_v29 = vpop.eup %5322  ;;  %v1045_v38 = vadd.f32 %v1044_v6, %v1032_v26  ;;  %v3849_v6 = vld [vmem:[#allocation8 + $0x68] sm:$0xf]  ;;  %v482_v26 = vperm.slane %v5726_v32, 2 }
 0x107   :  { %v5731_v37 = vpack.c.bf16 %v5323_v29, %v5323_v29  ;;  %v3850_v9 = vor.u32 %v5034_v7, %v3849_v6  ;;  %v3993_v29 = vld [vmem:[#allocation8 + $0x188] sm:$0xf]  ;;  %v5054_v7 = vld [vmem:[#allocation8 + $0x114] sm:$0xf0] }
 0x108   :  { %v1046_v42 = vpop.f32.mrf.mxu2  ;;  %v1058_v43 = vadd.f32 %v1057_v19, %v1045_v38  ;;  %v3929_v6 = vld [vmem:[#allocation8 + $0x108] sm:$0xf] }
 0x109   :  { %1933 = vmatmul.bf16.vlgmr.msrb.gmra.mxu3 %v5731_v37  ;;  %v1059_v52 = vpop.f32.mrf.mxu0  ;;  %v5066_v42 = vld [vmem:[#allocation8 + $0x174] sm:$0xf0] }
 0x10a   :  { %2029 = vmatpush.bf16.msrb.mxu3 %v3914_v30  ;;  %5324 = vtanh.f32 %v1058_v43  ;;  %v5070_v30 = vld [vmem:[#allocation8 + $0x194] sm:$0xf0]  ;;  %v3801_v43 = vld [vmem:[#allocation8 + $0x8] sm:$0xf]  ;;  %v3978_v51 = vor.u32 %v5066_v42, %v3977_v41 }
 0x10b   :  { %v1033_v54 = vpop.f32.mrf.mxu3  ;;  %v3994_v36 = vor.u32 %v5070_v30, %v3993_v29  ;;  %v3802_v53 = vor.u32 %v5022_v44, %v3801_v43  ;;  %v4046_v29 = vor.u32 %v5080_v10, %v4043_v12  ;;  %v4137_v30 = vld [vmem:[#allocation8 + $0x2a8] sm:$0xf]  ;;  %v5138_v43 = vld [vmem:[#allocation8 + $0x3b4] sm:$0xf0] }
 0x10c   :  { %v4265_v42 = vld [vmem:[#allocation8 + $0x3a8] sm:$0xf]  ;;  %v4138_v44 = vor.u32 %v5106_v34, %v4137_v30  ;;  %v5090_v12 = vld [vmem:[#allocation8 + $0x234] sm:$0xf0]  ;;  %v5112_v30 = vld [vmem:[#allocation8 + $0x2ec] sm:$0xf] }
 0x10d   :  { %v4073_v10 = vld [vmem:[#allocation8 + $0x228] sm:$0xf]  ;;  %v4171_v34 = vld [vmem:[#allocation8 + $0x2f8] sm:$0xf0] }
 0x10e   :  { %2030 = vmatpush.bf16.msrb.mxu3 %v3898_v46 }
 0x10f   :  { %v1070_v62 = vpop.f32.mrf.mxu1 }
 0x110   :  { %v5325_v1 = vpop.eup %5324  ;;  %v1096_v17 = vpop.f32.mrf.mxu2  ;;  %v1071_v38 = vadd.f32 %v1070_v62, %v482_v26  ;;  %v5142_v26 = vld [vmem:[#allocation8 + $0x3d4] sm:$0xf0] }
 0x111   :  { %v5734_v21 = vpack.c.bf16 %v5325_v1, %v5325_v1  ;;  %v5040_v1 = vld [vmem:[#allocation8 + $0xac] sm:$0xf] }
 0x112   :  { %2031 = vmatpush.bf16.msrb.mxu3 %v3882_v31 }
 0x113   :  { %1946 = vmatmul.bf16.vlgmr.msrb.gmra.mxu0 %v5734_v21 }
 0x114   :  { %2042 = vmatpush.bf16.msrb.mxu0 %v4042_v35 }
 0x116   :  { %2032 = vmatpush.bf16.msrb.mxu3 %v3866_v3  ;;  %v3946_v3 = vor.u32 %v5058_v23, %v3945_v60  ;;  %v5024_v60 = vld [vmem:[#allocation8 + $0x2c] sm:$0xf]  ;;  %v3819_v23 = vld [vmem:[#allocation8 + $0x38] sm:$0xf0] }
 0x117   :  { %v1072_v11 = vpop.f32.mrf.mxu1 }
 0x118   :  { %v1098_v19 = vpop.f32.mrf.mxu2  ;;  %2043 = vmatpush.bf16.msrb.mxu0 %v4026_v8  ;;  %v3867_v11 = vld [vmem:[#allocation8 + $0x98] sm:$0xf0] }
 0x119   :  { %1985 = vmatmul.bf16.vlgmr.msra.gmra.mxu3 %v5731_v37  ;;  %v1109_v20 = vpop.f32.mrf.mxu0  ;;  %v4298_v19 = vor.u32 %v5146_v18, %v4297_v2  ;;  %v3870_v33 = vor.u32 %v5036_v16, %v3867_v11  ;;  %v5064_v2 = vld [vmem:[#allocation8 + $0x16c] sm:$0xf]  ;;  %v3979_v18 = vld [vmem:[#allocation8 + $0x178] sm:$0xf0] }
 0x11a   :  { %2033 = vmatpush.bf16.msrb.mxu3 %v3850_v9  ;;  %v1110_v39 = vadd.f32 %v1109_v20, %v483_v28  ;;  %v5110_v9 = vld [vmem:[#allocation8 + $0x2d4] sm:$0xf0]  ;;  %v5060_v16 = vld [vmem:[#allocation8 + $0x14c] sm:$0xf]  ;;  %v3963_v11 = vld [vmem:[#allocation8 + $0x158] sm:$0xf0] }
 0x11b   :  { %v4154_v28 = vor.u32 %v5110_v9, %v4153_v22  ;;  %v4217_v22 = vld [vmem:[#allocation8 + $0x348] sm:$0xf] }
 0x11c   :  { %2044 = vmatpush.bf16.msrb.mxu0 %v4010_v25  ;;  %v4281_v25 = vld [vmem:[#allocation8 + $0x3c8] sm:$0xf] }
 0x11d   :  { %v4282_v41 = vor.u32 %v5142_v26, %v4281_v25  ;;  %v5122_v25 = vld [vmem:[#allocation8 + $0x334] sm:$0xf0]  ;;  %v4074_v26 = vor.u32 %v5090_v12, %v4073_v10  ;;  %v5120_v12 = vld [vmem:[#allocation8 + $0x32c] sm:$0xf] }
 0x11e   :  { %2034 = vmatpush.bf16.msrb.mxu3 %v3834_v27  ;;  %v3930_v27 = vor.u32 %v5054_v7, %v3929_v6  ;;  %v5126_v6 = vld [vmem:[#allocation8 + $0x354] sm:$0xf0] }
 0x11f   :  { %v1135_v46 = vpop.f32.mrf.mxu1 }
 0x120   :  { %v1083_v45 = vpop.f32.mrf.mxu3  ;;  %2045 = vmatpush.bf16.msrb.mxu0 %v3994_v36  ;;  %v5076_v36 = vld [vmem:[#allocation8 + $0x1cc] sm:$0xf] }
 0x121   :  { %v1084_v47 = vadd.f32 %v1083_v45, %v1071_v38  ;;  %v1122_v32 = vpop.f32.mrf.mxu2  ;;  %v1111_v50 = vpop.f32.mrf.mxu0  ;;  %v4027_v38 = vld [vmem:[#allocation8 + $0x1d8] sm:$0xf0] }
 0x122   :  { %2035 = vmatpush.bf16.msrb.mxu3 %v3818_v40  ;;  %v1123_v52 = vadd.f32 %v1122_v32, %v1110_v39  ;;  %v5032_v39 = vld [vmem:[#allocation8 + $0x6c] sm:$0xf]  ;;  %v3851_v40 = vld [vmem:[#allocation8 + $0x78] sm:$0xf0]  ;;  %v4030_v45 = vor.u32 %v5076_v36, %v4027_v38 }
 0x123   :  { %v1097_v54 = vadd.f32 %v1096_v17, %v1084_v47  ;;  %1998 = vmatmul.bf16.vlgmr.msra.gmra.mxu0 %v5734_v21  ;;  %v3883_v17 = vld [vmem:[#allocation8 + $0xb8] sm:$0xf0]  ;;  %v3854_v47 = vor.u32 %v5032_v39, %v3851_v40  ;;  %v5028_v50 = vld [vmem:[#allocation8 + $0x4c] sm:$0xf]  ;;  %v4185_v39 = vld [vmem:[#allocation8 + $0x308] sm:$0xf] }
 0x124   :  { %v1136_v31 = vadd.f32 %v1135_v46, %v1123_v52  ;;  %2046 = vmatpush.bf16.msrb.mxu0 %v3978_v51  ;;  %v3886_v8 = vor.u32 %v5040_v1, %v3883_v17  ;;  %v4121_v46 = vld [vmem:[#allocation8 + $0x288] sm:$0xf]  ;;  %v4011_v32 = vld [vmem:[#allocation8 + $0x1b8] sm:$0xf0]  ;;  %v4266_v52 = vor.u32 %v5138_v43, %v4265_v42  ;;  %v3822_v17 = vor.u32 %v5024_v60, %v3819_v23  ;;  %v5056_v36 = vld [vmem:[#allocation8 + $0x12c] sm:$0xf] }
 0x125   :  { %5326 = vtanh.f32 %v1097_v54  ;;  %v3835_v51 = vld [vmem:[#allocation8 + $0x58] sm:$0xf0]  ;;  %v5134_v54 = vld [vmem:[#allocation8 + $0x394] sm:$0xf0]  ;;  %v4122_v55 = vor.u32 %v5102_v48, %v4121_v46  ;;  %v4014_v56 = vor.u32 %v5072_v49, %v4011_v32  ;;  %v4089_v1 = vld [vmem:[#allocation8 + $0x248] sm:$0xf] }
 0x126   :  { %2036 = vmatpush.bf16.msrb.mxu3 %v3802_v53  ;;  %5328 = vtanh.f32 %v1136_v31  ;;  %v4249_v53 = vld [vmem:[#allocation8 + $0x388] sm:$0xf]  ;;  %v3838_v31 = vor.u32 %v5028_v50, %v3835_v51  ;;  %v3947_v38 = vld [vmem:[#allocation8 + $0x138] sm:$0xf0]  ;;  %v5118_v40 = vld [vmem:[#allocation8 + $0x314] sm:$0xf0] }
 0x127   :  { %v1137_v63 = vpop.f32.mrf.mxu1  ;;  %v5144_v42 = vld [vmem:[#allocation8 + $0x3ec] sm:$0xf]  ;;  %v4299_v43 = vld [vmem:[#allocation8 + $0x3f8] sm:$0xf0]  ;;  %v4186_v46 = vor.u32 %v5118_v40, %v4185_v39  ;;  %v4369_v40 = vld [vmem:[#allocation11 + $0x80] sm:$0xf] }
 0x128   :  { %v1085_v62 = vpop.f32.mrf.mxu3  ;;  %2047 = vmatpush.bf16.msrb.mxu0 %v3962_v13  ;;  %v3995_v13 = vld [vmem:[#allocation8 + $0x198] sm:$0xf0]  ;;  %v5130_v63 = vld [vmem:[#allocation8 + $0x374] sm:$0xf0]  ;;  %v4302_v49 = vor.u32 %v5144_v42, %v4299_v43  ;;  %v5052_v32 = vld [vmem:[#allocation8 + $0x10c] sm:$0xf] }
 0x129   :  { %2037 = vmatmul.bf16.vlgmr.msrb.gmra.mxu3 %v5731_v37  ;;  %v1124_v35 = vpop.f32.mrf.mxu2  ;;  %v4233_v62 = vld [vmem:[#allocation8 + $0x368] sm:$0xf]  ;;  %v3998_v0 = vor.u32 %v5068_v59, %v3995_v13  ;;  %v4155_v48 = vld [vmem:[#allocation8 + $0x2d8] sm:$0xf0]  ;;  %v5140_v51 = vld [vmem:[#allocation8 + $0x3cc] sm:$0xf] }
 0x12a   :  { %2081 = vmatpush.bf16.msra.mxu3 %v3918_v57  ;;  %v4105_v57 = vld [vmem:[#allocation8 + $0x268] sm:$0xf]  ;;  %v5094_v35 = vld [vmem:[#allocation8 + $0x254] sm:$0xf0]  ;;  %v3931_v50 = vld [vmem:[#allocation8 + $0x118] sm:$0xf0] }
 0x12b   :  { %v5327_v4 = vpop.eup %5326  ;;  %v4106_v14 = vor.u32 %v5098_v58, %v4105_v57  ;;  %v4090_v7 = vor.u32 %v5094_v35, %v4089_v1  ;;  %v5177_v57 = vld [vmem:[#allocation11 + $0xec] sm:$0xf0]  ;;  %v5136_v59 = vld [vmem:[#allocation8 + $0x3ac] sm:$0xf]  ;;  %v4267_v13 = vld [vmem:[#allocation8 + $0x3b8] sm:$0xf0] }
 0x12c   :  { %v5742_v24 = vpack.c.bf16 %v5327_v4, %v5327_v4  ;;  %v5329_v15 = vpop.eup %5328  ;;  %2048 = vmatpush.bf16.msrb.mxu0 %v3946_v3  ;;  %v5020_v3 = vld [vmem:[#allocation8 + $0xc] sm:$0xf]  ;;  %v3803_v4 = vld [vmem:[#allocation8 + $0x18] sm:$0xf0]  ;;  %v4353_v43 = vld [vmem:[#allocation11 + $0x60] sm:$0xf] }
 0x12d   :  { %v5744_v20 = vpack.c.bf16 %v5329_v15, %v5329_v15  ;;  %v3806_v9 = vor.u32 %v5020_v3, %v3803_v4  ;;  %v4218_v15 = vor.u32 %v5126_v6, %v4217_v22  ;;  %v5100_v23 = vld [vmem:[#allocation8 + $0x28c] sm:$0xf] }
 0x12e   :  { %2082 = vmatpush.bf16.msra.mxu3 %v3902_v61  ;;  %1959 = vmatmul.bf16.vlgmr.msrb.gmra.mxu1 %v5742_v24  ;;  %v4250_v61 = vor.u32 %v5134_v54, %v4249_v53  ;;  %v5104_v53 = vld [vmem:[#allocation8 + $0x2ac] sm:$0xf]  ;;  %v3934_v54 = vor.u32 %v5052_v32, %v3931_v50  ;;  %v5205_v50 = vld [vmem:[#allocation11 + $0x1cc] sm:$0xf0] }
 0x12f   :  { %2055 = vmatpush.bf16.msrb.mxu1 %v4170_v5  ;;  %1972 = vmatmul.bf16.vlgmr.msrb.gmra.mxu2 %v5744_v20  ;;  %v4234_v5 = vor.u32 %v5130_v63, %v4233_v62  ;;  %v4270_v62 = vor.u32 %v5136_v59, %v4267_v13  ;;  %v5132_v63 = vld [vmem:[#allocation8 + $0x38c] sm:$0xf]  ;;  %v5197_v13 = vld [vmem:[#allocation11 + $0x18c] sm:$0xf0] }
 0x130   :  { %2068 = vmatpush.bf16.msrb.mxu2 %v4298_v19  ;;  %2049 = vmatpush.bf16.msrb.mxu0 %v3930_v27  ;;  %v4201_v19 = vld [vmem:[#allocation8 + $0x328] sm:$0xf]  ;;  %v3966_v27 = vor.u32 %v5060_v16, %v3963_v11  ;;  %v5096_v1 = vld [vmem:[#allocation8 + $0x26c] sm:$0xf] }
 0x131   :  { %v5092_v4 = vld [vmem:[#allocation8 + $0x24c] sm:$0xf] }
 0x132   :  { %2083 = vmatpush.bf16.msra.mxu3 %v3886_v8  ;;  %v3982_v8 = vor.u32 %v5064_v2, %v3979_v18  ;;  %v5128_v2 = vld [vmem:[#allocation8 + $0x36c] sm:$0xf]  ;;  %v4235_v18 = vld [vmem:[#allocation8 + $0x378] sm:$0xf0] }
 0x133   :  { %2056 = vmatpush.bf16.msrb.mxu1 %v4154_v28  ;;  %2050 = vmatmul.bf16.vlgmr.msrb.gmra.mxu0 %v5734_v21  ;;  %v4057_v28 = vld [vmem:[#allocation8 + $0x208] sm:$0xf]  ;;  %v4238_v22 = vor.u32 %v5128_v2, %v4235_v18  ;;  %v5124_v6 = vld [vmem:[#allocation8 + $0x34c] sm:$0xf] }
 0x134   :  { %2094 = vmatpush.bf16.msra.mxu0 %v4046_v29  ;;  %2069 = vmatpush.bf16.msrb.mxu2 %v4282_v41  ;;  %v5086_v29 = vld [vmem:[#allocation8 + $0x214] sm:$0xf0]  ;;  %v5084_v11 = vld [vmem:[#allocation8 + $0x20c] sm:$0xf] }
 0x135   :  { %v4058_v41 = vor.u32 %v5086_v29, %v4057_v28 }
 0x136   :  { %2084 = vmatpush.bf16.msra.mxu3 %v3870_v33  ;;  %v4202_v33 = vor.u32 %v5122_v25, %v4201_v19  ;;  %v4059_v19 = vld [vmem:[#allocation8 + $0x218] sm:$0xf0] }
 0x137   :  { %2057 = vmatpush.bf16.msrb.mxu1 %v4138_v44  ;;  %v4174_v44 = vor.u32 %v5112_v30, %v4171_v34  ;;  %v4062_v28 = vor.u32 %v5084_v11, %v4059_v19  ;;  %v4401_v30 = vld [vmem:[#allocation11 + $0xc0] sm:$0xf]  ;;  %v5233_v19 = vld [vmem:[#allocation11 + $0x2ac] sm:$0xf0] }
 0x138   :  { %2095 = vmatpush.bf16.msra.mxu0 %v4030_v45  ;;  %2070 = vmatpush.bf16.msrb.mxu2 %v4266_v52  ;;  %v3950_v45 = vor.u32 %v5056_v36, %v3947_v38  ;;  %v4283_v52 = vld [vmem:[#allocation8 + $0x3d8] sm:$0xf0]  ;;  %v4385_v36 = vld [vmem:[#allocation11 + $0xa0] sm:$0xf]  ;;  %v5169_v38 = vld [vmem:[#allocation11 + $0xac] sm:$0xf0] }
 0x139   :  { %v4386_v39 = vor.u32 %v5169_v38, %v4385_v36  ;;  %v4641_v11 = vld [vmem:[#allocation11 + $0x2a0] sm:$0xf] }
 0x13a   :  { %2085 = vmatpush.bf16.msra.mxu3 %v3854_v47  ;;  %v5108_v47 = vld [vmem:[#allocation8 + $0x2cc] sm:$0xf]  ;;  %v4625_v36 = vld [vmem:[#allocation11 + $0x280] sm:$0xf] }
 0x13b   :  { %2058 = vmatpush.bf16.msrb.mxu1 %v4122_v55  ;;  %v4139_v55 = vld [vmem:[#allocation8 + $0x2b8] sm:$0xf0] }
 0x13c   :  { %2096 = vmatpush.bf16.msra.mxu0 %v4014_v56  ;;  %2071 = vmatpush.bf16.msrb.mxu2 %v4250_v61  ;;  %v4417_v56 = vld [vmem:[#allocation11 + $0xe0] sm:$0xf]  ;;  %v4142_v60 = vor.u32 %v5104_v53, %v4139_v55  ;;  %v4123_v61 = vld [vmem:[#allocation8 + $0x298] sm:$0xf0]  ;;  %v5201_v55 = vld [vmem:[#allocation11 + $0x1ac] sm:$0xf0] }
 0x13d   :  { %v4418_v58 = vor.u32 %v5177_v57, %v4417_v56  ;;  %v4513_v53 = vld [vmem:[#allocation11 + $0x1a0] sm:$0xf] }
 0x13e   :  { %2086 = vmatpush.bf16.msra.mxu3 %v3838_v31  ;;  %2011 = vmatmul.bf16.vlgmr.msra.gmra.mxu1 %v5742_v24  ;;  %v4286_v31 = vor.u32 %v5140_v51, %v4283_v52  ;;  %v4321_v52 = vld [vmem:[#allocation11 + $0x20] sm:$0xf]  ;;  %v4514_v56 = vor.u32 %v5201_v55, %v4513_v53  ;;  %v5221_v55 = vld [vmem:[#allocation11 + $0x24c] sm:$0xf0] }
 0x13f   :  { %2059 = vmatpush.bf16.msrb.mxu1 %v4106_v14  ;;  %2024 = vmatmul.bf16.vlgmr.msra.gmra.mxu2 %v5744_v20  ;;  %v4251_v14 = vld [vmem:[#allocation8 + $0x398] sm:$0xf0]  ;;  %v4305_v57 = vld [vmem:[#allocation11] sm:$0xf] }
 0x140   :  { %2097 = vmatpush.bf16.msra.mxu0 %v3998_v0  ;;  %2072 = vmatpush.bf16.msrb.mxu2 %v4234_v5  ;;  %v4126_v0 = vor.u32 %v5100_v23, %v4123_v61  ;;  %v4254_v35 = vor.u32 %v5132_v63, %v4251_v14  ;;  %v4091_v5 = vld [vmem:[#allocation8 + $0x258] sm:$0xf0]  ;;  %v4419_v23 = vld [vmem:[#allocation11 + $0xf0] sm:$0xf0]  ;;  %v4481_v63 = vld [vmem:[#allocation11 + $0x160] sm:$0xf] }
 0x141   :  { %v5193_v14 = vld [vmem:[#allocation11 + $0x16c] sm:$0xf0] }
 0x142   :  { %2087 = vmatpush.bf16.msra.mxu3 %v3822_v17  ;;  %v4107_v17 = vld [vmem:[#allocation8 + $0x278] sm:$0xf0]  ;;  %v4482_v2 = vor.u32 %v5193_v14, %v4481_v63  ;;  %v5147_v63 = vld [vmem:[#allocation11 + $0x4] sm:$0xf]  ;;  %v4307_v14 = vld [vmem:[#allocation11 + $0x10] sm:$0xf0] }
 0x143   :  { %2060 = vmatpush.bf16.msrb.mxu1 %v4090_v7  ;;  %v4110_v3 = vor.u32 %v5096_v1, %v4107_v17  ;;  %v4219_v7 = vld [vmem:[#allocation8 + $0x358] sm:$0xf0]  ;;  %v5241_v1 = vld [vmem:[#allocation11 + $0x2ec] sm:$0xf0]  ;;  %v5171_v17 = vld [vmem:[#allocation11 + $0xc4] sm:$0xf] }
 0x144   :  { %2098 = vmatpush.bf16.msra.mxu0 %v3982_v8  ;;  %2073 = vmatpush.bf16.msrb.mxu2 %v4218_v15  ;;  %v4094_v8 = vor.u32 %v5092_v4, %v4091_v5  ;;  %v4222_v10 = vor.u32 %v5124_v6, %v4219_v7  ;;  %v4203_v15 = vld [vmem:[#allocation8 + $0x338] sm:$0xf0]  ;;  %v4465_v4 = vld [vmem:[#allocation11 + $0x140] sm:$0xf]  ;;  %v5189_v5 = vld [vmem:[#allocation11 + $0x14c] sm:$0xf0] }
 0x145   :  { %v4206_v25 = vor.u32 %v5120_v12, %v4203_v15  ;;  %v4466_v7 = vor.u32 %v5189_v5, %v4465_v4  ;;  %v4449_v15 = vld [vmem:[#allocation11 + $0x120] sm:$0xf] }
 0x146   :  { %2088 = vmatpush.bf16.msra.mxu3 %v3806_v9  ;;  %v5088_v9 = vld [vmem:[#allocation8 + $0x22c] sm:$0xf]  ;;  %v4801_v4 = vld [vmem:[#allocation11 + $0x3e0] sm:$0xf] }
 0x147   :  { %2061 = vmatpush.bf16.msrb.mxu1 %v4074_v26  ;;  %v5116_v26 = vld [vmem:[#allocation8 + $0x30c] sm:$0xf] }
 0x148   :  { %2099 = vmatpush.bf16.msra.mxu0 %v3966_v27  ;;  %2074 = vmatpush.bf16.msrb.mxu2 %v4202_v33  ;;  %v4187_v27 = vld [vmem:[#allocation8 + $0x318] sm:$0xf0]  ;;  %v5173_v33 = vld [vmem:[#allocation11 + $0xcc] sm:$0xf0] }
 0x149   :  { %2089 = vmatmul.bf16.vlgmr.msra.gmra.mxu3 %v5731_v37  ;;  %v4158_v37 = vor.u32 %v5108_v47, %v4155_v48  ;;  %v4190_v29 = vor.u32 %v5116_v26, %v4187_v27  ;;  %v4402_v34 = vor.u32 %v5173_v33, %v4401_v30  ;;  %v4337_v48 = vld [vmem:[#allocation11 + $0x40] sm:$0xf]  ;;  %v4371_v26 = vld [vmem:[#allocation11 + $0x90] sm:$0xf0] }
 0x14a   :  { %2919 = vmatpush.bf16.msrb.mxu3 %v4418_v58  ;;  %v4497_v58 = vld [vmem:[#allocation11 + $0x180] sm:$0xf] }
 0x14b   :  { %2062 = vmatpush.bf16.msrb.mxu1 %v4058_v41  ;;  %v5165_v41 = vld [vmem:[#allocation11 + $0x8c] sm:$0xf0]  ;;  %v4498_v61 = vor.u32 %v5197_v13, %v4497_v58  ;;  %v4433_v33 = vld [vmem:[#allocation11 + $0x100] sm:$0xf]  ;;  %v4323_v58 = vld [vmem:[#allocation11 + $0x30] sm:$0xf0] }
 0x14c   :  { %2100 = vmatpush.bf16.msra.mxu0 %v3950_v45  ;;  %2075 = vmatpush.bf16.msrb.mxu2 %v4186_v46  ;;  %v4370_v42 = vor.u32 %v5165_v41, %v4369_v40  ;;  %v4545_v45 = vld [vmem:[#allocation11 + $0x1e0] sm:$0xf]  ;;  %v5209_v46 = vld [vmem:[#allocation11 + $0x1ec] sm:$0xf0]  ;;  %v5159_v41 = vld [vmem:[#allocation11 + $0x64] sm:$0xf] }
 0x14d   :  { %v5229_v40 = vld [vmem:[#allocation11 + $0x28c] sm:$0xf0] }
 0x14e   :  { %2063 = vmatmul.bf16.vlgmr.msrb.gmra.mxu1 %v5742_v24  ;;  %2920 = vmatpush.bf16.msrb.mxu3 %v4402_v34  ;;  %v5181_v34 = vld [vmem:[#allocation11 + $0x10c] sm:$0xf0] }
 0x14f   :  { %2107 = vmatpush.bf16.msra.mxu1 %v4174_v44  ;;  %2076 = vmatmul.bf16.vlgmr.msrb.gmra.mxu2 %v5744_v20  ;;  %v5161_v44 = vld [vmem:[#allocation11 + $0x6c] sm:$0xf0] }
 0x150   :  { %2120 = vmatpush.bf16.msra.mxu2 %v4302_v49  ;;  %2101 = vmatpush.bf16.msra.mxu0 %v3934_v54  ;;  %v4354_v47 = vor.u32 %v5161_v44, %v4353_v43  ;;  %v4529_v49 = vld [vmem:[#allocation11 + $0x1c0] sm:$0xf]  ;;  %v4626_v43 = vor.u32 %v5229_v40, %v4625_v36 }
 0x151   :  { %v4530_v51 = vor.u32 %v5205_v50, %v4529_v49  ;;  %v5155_v49 = vld [vmem:[#allocation11 + $0x44] sm:$0xf] }
 0x152   :  { %2921 = vmatpush.bf16.msrb.mxu3 %v4386_v39  ;;  %v4434_v39 = vor.u32 %v5181_v34, %v4433_v33  ;;  %v5203_v50 = vld [vmem:[#allocation11 + $0x1c4] sm:$0xf] }
 0x153   :  { %2108 = vmatpush.bf16.msra.mxu1 %v4158_v37  ;;  %2102 = vmatmul.bf16.vlgmr.msra.gmra.mxu0 %v5734_v21  ;;  %v4075_v21 = vld [vmem:[#allocation8 + $0x238] sm:$0xf0]  ;;  %v5153_v37 = vld [vmem:[#allocation11 + $0x2c] sm:$0xf0]  ;;  %v5235_v33 = vld [vmem:[#allocation11 + $0x2c4] sm:$0xf] }
 0x154   :  { %2121 = vmatpush.bf16.msra.mxu2 %v4286_v31  ;;  %v4078_v16 = vor.u32 %v5088_v9, %v4075_v21  ;;  %v4322_v54 = vor.u32 %v5153_v37, %v4321_v52  ;;  %v5149_v31 = vld [vmem:[#allocation11 + $0xc] sm:$0xf0]  ;;  %v5167_v9 = vld [vmem:[#allocation11 + $0xa4] sm:$0xf]  ;;  %v4387_v21 = vld [vmem:[#allocation11 + $0xb0] sm:$0xf0] }
 0x155   :  { %v4306_v59 = vor.u32 %v5149_v31, %v4305_v57  ;;  %v4390_v12 = vor.u32 %v5167_v9, %v4387_v21  ;;  %v4531_v37 = vld [vmem:[#allocation11 + $0x1d0] sm:$0xf0]  ;;  %v5151_v31 = vld [vmem:[#allocation11 + $0x24] sm:$0xf] }
 0x156   :  { %2922 = vmatpush.bf16.msrb.mxu3 %v4370_v42  ;;  %v4355_v42 = vld [vmem:[#allocation11 + $0x70] sm:$0xf0]  ;;  %v4534_v53 = vor.u32 %v5203_v50, %v4531_v37  ;;  %v4326_v13 = vor.u32 %v5151_v31, %v4323_v58  ;;  %v5239_v21 = vld [vmem:[#allocation11 + $0x2e4] sm:$0xf] }
 0x157   :  { %2109 = vmatpush.bf16.msra.mxu1 %v4142_v60  ;;  %v5175_v60 = vld [vmem:[#allocation11 + $0xe4] sm:$0xf]  ;;  %v4358_v44 = vor.u32 %v5159_v41, %v4355_v42  ;;  %v4769_v42 = vld [vmem:[#allocation11 + $0x3a0] sm:$0xf] }
 0x158   :  { %2122 = vmatpush.bf16.msra.mxu2 %v4270_v62  ;;  %v4422_v62 = vor.u32 %v5175_v60, %v4419_v23  ;;  %v4515_v60 = vld [vmem:[#allocation11 + $0x1b0] sm:$0xf0]  ;;  %v4577_v23 = vld [vmem:[#allocation11 + $0x220] sm:$0xf] }
 0x15a   :  { %2923 = vmatpush.bf16.msrb.mxu3 %v4354_v47 }
 0x15b   :  { %2110 = vmatpush.bf16.msra.mxu1 %v4126_v0  ;;  %v4673_v0 = vld [vmem:[#allocation11 + $0x2e0] sm:$0xf] }
 0x15c   :  { %2123 = vmatpush.bf16.msra.mxu2 %v4254_v35  ;;  %v4403_v35 = vld [vmem:[#allocation11 + $0xd0] sm:$0xf0]  ;;  %v4674_v18 = vor.u32 %v5241_v1, %v4673_v0  ;;  %v5195_v0 = vld [vmem:[#allocation11 + $0x184] sm:$0xf] }
 0x15f   :  { %2111 = vmatpush.bf16.msra.mxu1 %v4110_v3  ;;  %v4406_v3 = vor.u32 %v5171_v17, %v4403_v35  ;;  %v4499_v17 = vld [vmem:[#allocation11 + $0x190] sm:$0xf0]  ;;  %v4310_v35 = vor.u32 %v5147_v63, %v4307_v14 }
 0x160   :  { %2124 = vmatpush.bf16.msra.mxu2 %v4238_v22  ;;  %v4657_v22 = vld [vmem:[#allocation11 + $0x2c0] sm:$0xf]  ;;  %v4611_v63 = vld [vmem:[#allocation11 + $0x270] sm:$0xf0] }
 0x163   :  { %2112 = vmatpush.bf16.msra.mxu1 %v4094_v8  ;;  %v5237_v8 = vld [vmem:[#allocation11 + $0x2cc] sm:$0xf0] }
 0x164   :  { %2125 = vmatpush.bf16.msra.mxu2 %v4222_v10  ;;  %v4658_v10 = vor.u32 %v5237_v8, %v4657_v22  ;;  %v5273_v22 = vld [vmem:[#allocation11 + $0x3ec] sm:$0xf0]  ;;  %v4483_v8 = vld [vmem:[#allocation11 + $0x170] sm:$0xf0] }
 0x165   :  { %v4802_v9 = vor.u32 %v5273_v22, %v4801_v4  ;;  %v5219_v4 = vld [vmem:[#allocation11 + $0x244] sm:$0xf]  ;;  %v4595_v22 = vld [vmem:[#allocation11 + $0x250] sm:$0xf0] }
 0x167   :  { %2113 = vmatpush.bf16.msra.mxu1 %v4078_v16  ;;  %v5185_v16 = vld [vmem:[#allocation11 + $0x12c] sm:$0xf0] }
 0x168   :  { %2126 = vmatpush.bf16.msra.mxu2 %v4206_v25  ;;  %v5163_v25 = vld [vmem:[#allocation11 + $0x84] sm:$0xf]  ;;  %v4450_v27 = vor.u32 %v5185_v16, %v4449_v15 }
 0x16b   :  { %2114 = vmatpush.bf16.msra.mxu1 %v4062_v28  ;;  %v4642_v28 = vor.u32 %v5233_v19, %v4641_v11  ;;  %v5765_v19 = vld [vmem:[#allocation10] sm:$0xf] }
 0x16c   :  { %2127 = vmatpush.bf16.msra.mxu2 %v4190_v29  ;;  %v4374_v29 = vor.u32 %v5163_v25, %v4371_v26  ;;  %v4785_v25 = vld [vmem:[#allocation11 + $0x3c0] sm:$0xf]  ;;  %v5269_v26 = vld [vmem:[#allocation11 + $0x3cc] sm:$0xf0]  ;;  %v1277_v34 = vperm.slane %v5765_v19, 0 }
 0x16e   :  { %2115 = vmatmul.bf16.vlgmr.msra.gmra.mxu1 %v5742_v24  ;;  %v4546_v24 = vor.u32 %v5209_v46, %v4545_v45  ;;  %v5207_v45 = vld [vmem:[#allocation11 + $0x1e4] sm:$0xf]  ;;  %v4547_v46 = vld [vmem:[#allocation11 + $0x1f0] sm:$0xf0] }
 0x16f   :  { %2128 = vmatmul.bf16.vlgmr.msra.gmra.mxu2 %v5744_v20  ;;  %v5157_v20 = vld [vmem:[#allocation11 + $0x4c] sm:$0xf0]  ;;  %2945 = vmatpush.bf16.msrb.mxu1 %v4674_v18  ;;  %v4550_v47 = vor.u32 %v5207_v45, %v4547_v46  ;;  %v4561_v18 = vld [vmem:[#allocation11 + $0x200] sm:$0xf]  ;;  %v5183_v46 = vld [vmem:[#allocation11 + $0x124] sm:$0xf] }
 0x170   :  { %2932 = vmatpush.bf16.msrb.mxu0 %v4546_v24  ;;  %v4338_v32 = vor.u32 %v5157_v20, %v4337_v48  ;;  %v4609_v24 = vld [vmem:[#allocation11 + $0x260] sm:$0xf]  ;;  %v5225_v48 = vld [vmem:[#allocation11 + $0x26c] sm:$0xf0]  ;;  %2958 = vmatpush.bf16.msrb.mxu2 %v4802_v9  ;;  %v4598_v9 = vor.u32 %v5219_v4, %v4595_v22  ;;  %v5158_v4 = vld [vmem:[#allocation11 + $0x54] sm:$0xf0] }
 0x171   :  { %v4610_v20 = vor.u32 %v5225_v48, %v4609_v24  ;;  %v5231_v24 = vld [vmem:[#allocation11 + $0x2a4] sm:$0xf]  ;;  %v4537_v22 = vld [vmem:[#allocation11 + $0x1c8] sm:$0xf] }
 0x172   :  { %2924 = vmatpush.bf16.msrb.mxu3 %v4338_v32  ;;  %v4339_v32 = vld [vmem:[#allocation11 + $0x50] sm:$0xf0] }
 0x173   :  { %2946 = vmatpush.bf16.msrb.mxu1 %v4658_v10  ;;  %v4342_v52 = vor.u32 %v5155_v49, %v4339_v32  ;;  %v4675_v10 = vld [vmem:[#allocation11 + $0x2f0] sm:$0xf0] }
 0x174   :  { %2933 = vmatpush.bf16.msrb.mxu0 %v4530_v51  ;;  %v4678_v11 = vor.u32 %v5239_v21, %v4675_v10  ;;  %v4643_v49 = vld [vmem:[#allocation11 + $0x2b0] sm:$0xf0] }
 0x175   :  { %v4646_v32 = vor.u32 %v5231_v24, %v4643_v49 }
 0x176   :  { %2925 = vmatpush.bf16.msrb.mxu3 %v4322_v54  ;;  %v4593_v54 = vld [vmem:[#allocation11 + $0x240] sm:$0xf] }
 0x177   :  { %2947 = vmatpush.bf16.msrb.mxu1 %v4642_v28  ;;  %v4594_v57 = vor.u32 %v5221_v55, %v4593_v54  ;;  %v5187_v28 = vld [vmem:[#allocation11 + $0x144] sm:$0xf]  ;;  %v4435_v54 = vld [vmem:[#allocation11 + $0x110] sm:$0xf0] }
 0x178   :  { %2934 = vmatpush.bf16.msrb.mxu0 %v4514_v56  ;;  %v5227_v55 = vld [vmem:[#allocation11 + $0x284] sm:$0xf] }
 0x17a   :  { %2926 = vmatpush.bf16.msrb.mxu3 %v4306_v59  ;;  %v5199_v59 = vld [vmem:[#allocation11 + $0x1a4] sm:$0xf] }
 0x17b   :  { %2948 = vmatpush.bf16.msrb.mxu1 %v4626_v43  ;;  %v5265_v43 = vld [vmem:[#allocation11 + $0x3ac] sm:$0xf0] }
 0x17c   :  { %2935 = vmatpush.bf16.msrb.mxu0 %v4498_v61  ;;  %v5217_v61 = vld [vmem:[#allocation11 + $0x22c] sm:$0xf0]  ;;  %v4770_v45 = vor.u32 %v5265_v43, %v4769_v42  ;;  %v5211_v43 = vld [vmem:[#allocation11 + $0x204] sm:$0xf] }
 0x17d   :  { %v4578_v1 = vor.u32 %v5217_v61, %v4577_v23  ;;  %v4737_v23 = vld [vmem:[#allocation11 + $0x360] sm:$0xf]  ;;  %v5245_v42 = vld [vmem:[#allocation11 + $0x30c] sm:$0xf0] }
 0x17e   :  { %2971 = vmatpush.bf16.msra.mxu3 %v4422_v62  ;;  %v4518_v62 = vor.u32 %v5199_v59, %v4515_v60  ;;  %v4627_v59 = vld [vmem:[#allocation11 + $0x290] sm:$0xf0] }
 0x17f   :  { %2949 = vmatpush.bf16.msrb.mxu1 %v4610_v20  ;;  %v4630_v60 = vor.u32 %v5227_v55, %v4627_v59 }
 0x180   :  { %2936 = vmatpush.bf16.msrb.mxu0 %v4482_v2  ;;  %v4502_v2 = vor.u32 %v5195_v0, %v4499_v17  ;;  %v4425_v17 = vld [vmem:[#allocation11 + $0xe8] sm:$0xf] }
 0x182   :  { %2972 = vmatpush.bf16.msra.mxu3 %v4406_v3  ;;  %v5213_v3 = vld [vmem:[#allocation11 + $0x20c] sm:$0xf0] }
 0x183   :  { %2950 = vmatpush.bf16.msrb.mxu1 %v4594_v57 }
 0x184   :  { %2937 = vmatpush.bf16.msrb.mxu0 %v4466_v7  ;;  %v5191_v7 = vld [vmem:[#allocation11 + $0x164] sm:$0xf] }
 0x185   :  { %v4486_v16 = vor.u32 %v5191_v7, %v4483_v8  ;;  %v1278_v7 = vperm.slane %v5765_v19, 1 }
 0x186   :  { %2973 = vmatpush.bf16.msra.mxu3 %v4390_v12  ;;  %v4562_v12 = vor.u32 %v5213_v3, %v4561_v18  ;;  %v5178_v18 = vld [vmem:[#allocation11 + $0xf4] sm:$0xf0] }
 0x187   :  { %2951 = vmatpush.bf16.msrb.mxu1 %v4578_v1 }
 0x188   :  { %2938 = vmatpush.bf16.msrb.mxu0 %v4450_v27  ;;  %v4786_v27 = vor.u32 %v5269_v26, %v4785_v25  ;;  %v5249_v25 = vld [vmem:[#allocation11 + $0x32c] sm:$0xf0] }
 0x18a   :  { %2974 = vmatpush.bf16.msra.mxu3 %v4374_v29  ;;  %v4467_v29 = vld [vmem:[#allocation11 + $0x150] sm:$0xf0]  ;;  %2959 = vmatpush.bf16.msrb.mxu2 %v4786_v27  ;;  %v5174_v27 = vld [vmem:[#allocation11 + $0xd4] sm:$0xf0] }
 0x18b   :  { %2952 = vmatpush.bf16.msrb.mxu1 %v4562_v12 }
 0x18c   :  { %v5757_v6 = vpop.f32.mrf.mxu3  ;;  %2939 = vmatpush.bf16.msrb.mxu0 %v4434_v39  ;;  %v4659_v39 = vld [vmem:[#allocation11 + $0x2d0] sm:$0xf0] }
 0x18d   :  { %v4662_v41 = vor.u32 %v5235_v33, %v4659_v39  ;;  %v1935_v48 = vadd.f32 %v5757_v6, %v1277_v34  ;;  %v4579_v33 = vld [vmem:[#allocation11 + $0x230] sm:$0xf0]  ;;  %v4689_v39 = vld [vmem:[#allocation11 + $0x300] sm:$0xf] }
 0x18e   :  { %2975 = vmatpush.bf16.msra.mxu3 %v4358_v44  ;;  %2960 = vmatpush.bf16.msrb.mxu2 %v4770_v45  ;;  %v4563_v45 = vld [vmem:[#allocation11 + $0x210] sm:$0xf0] }
 0x18f   :  { %2997 = vmatpush.bf16.msra.mxu1 %v4678_v11  ;;  %v4705_v11 = vld [vmem:[#allocation11 + $0x320] sm:$0xf]  ;;  %v4566_v24 = vor.u32 %v5211_v43, %v4563_v45  ;;  %v4505_v43 = vld [vmem:[#allocation11 + $0x188] sm:$0xf]  ;;  %v5198_v45 = vld [vmem:[#allocation11 + $0x194] sm:$0xf0] }
 0x190   :  { %v5759_v30 = vpop.f32.mrf.mxu0  ;;  %2984 = vmatpush.bf16.msra.mxu0 %v4550_v47  ;;  %v4451_v47 = vld [vmem:[#allocation11 + $0x130] sm:$0xf0] }
 0x191   :  { %v4454_v20 = vor.u32 %v5183_v46, %v4451_v47  ;;  %v1948_v50 = vadd.f32 %v5759_v30, %v1935_v48  ;;  %v5257_v30 = vld [vmem:[#allocation11 + $0x36c] sm:$0xf0]  ;;  %v5170_v46 = vld [vmem:[#allocation11 + $0xb4] sm:$0xf0]  ;;  %v4690_v47 = vor.u32 %v5245_v42, %v4689_v39  ;;  %v5271_v48 = vld [vmem:[#allocation11 + $0x3e4] sm:$0xf] }
 0x192   :  { %2976 = vmatpush.bf16.msra.mxu3 %v4342_v52  ;;  %v5261_v52 = vld [vmem:[#allocation11 + $0x38c] sm:$0xf0]  ;;  %v4738_v0 = vor.u32 %v5257_v30, %v4737_v23  ;;  %v4553_v23 = vld [vmem:[#allocation11 + $0x1e8] sm:$0xf]  ;;  %v1279_v30 = vperm.slane %v5765_v19, 2 }
 0x193   :  { %2998 = vmatpush.bf16.msra.mxu1 %v4662_v41  ;;  %v5150_v42 = vld [vmem:[#allocation11 + $0x14] sm:$0xf0] }
 0x194   :  { %v1936_v38 = vpop.f32.mrf.mxu3  ;;  %2985 = vmatpush.bf16.msra.mxu0 %v4534_v53  ;;  %v5179_v53 = vld [vmem:[#allocation11 + $0x104] sm:$0xf] }
 0x195   :  { %v4470_v38 = vor.u32 %v5187_v28, %v4467_v29  ;;  %v4438_v58 = vor.u32 %v5179_v53, %v4435_v54  ;;  %v4706_v28 = vor.u32 %v5249_v25, %v4705_v11  ;;  %v5215_v29 = vld [vmem:[#allocation11 + $0x224] sm:$0xf]  ;;  %v4377_v53 = vld [vmem:[#allocation11 + $0x88] sm:$0xf]  ;;  %v5166_v54 = vld [vmem:[#allocation11 + $0x94] sm:$0xf0] }
 0x196   :  { %2977 = vmatpush.bf16.msra.mxu3 %v4326_v13  ;;  %v4378_v59 = vor.u32 %v5166_v54, %v4377_v53  ;;  %v4329_v11 = vld [vmem:[#allocation11 + $0x28] sm:$0xf]  ;;  %v4707_v53 = vld [vmem:[#allocation11 + $0x330] sm:$0xf0]  ;;  %v5242_v54 = vld [vmem:[#allocation11 + $0x2f4] sm:$0xf0] }
 0x197   :  { %2999 = vmatpush.bf16.msra.mxu1 %v4646_v32 }
 0x198   :  { %v1949_v51 = vpop.f32.mrf.mxu0  ;;  %2986 = vmatpush.bf16.msra.mxu0 %v4518_v62  ;;  %v5223_v62 = vld [vmem:[#allocation11 + $0x264] sm:$0xf] }
 0x199   :  { %v4753_v51 = vld [vmem:[#allocation11 + $0x380] sm:$0xf]  ;;  %v4614_v1 = vor.u32 %v5223_v62, %v4611_v63  ;;  %v5259_v63 = vld [vmem:[#allocation11 + $0x384] sm:$0xf] }
 0x19a   :  { %2978 = vmatpush.bf16.msra.mxu3 %v4310_v35  ;;  %v4754_v37 = vor.u32 %v5261_v52, %v4753_v51  ;;  %v4721_v35 = vld [vmem:[#allocation11 + $0x340] sm:$0xf]  ;;  %v5267_v51 = vld [vmem:[#allocation11 + $0x3c4] sm:$0xf] }
 0x19b   :  { %3000 = vmatpush.bf16.msra.mxu1 %v4630_v60  ;;  %v5162_v60 = vld [vmem:[#allocation11 + $0x74] sm:$0xf0] }
 0x19c   :  { %v5761_v56 = vpop.f32.mrf.mxu3  ;;  %2987 = vmatpush.bf16.msra.mxu0 %v4502_v2  ;;  %2961 = vmatpush.bf16.msrb.mxu2 %v4754_v37  ;;  %v5253_v2 = vld [vmem:[#allocation11 + $0x34c] sm:$0xf0]  ;;  %v4787_v37 = vld [vmem:[#allocation11 + $0x3d0] sm:$0xf0] }
 0x19d   :  { %v4722_v3 = vor.u32 %v5253_v2, %v4721_v35  ;;  %v1987_v34 = vadd.f32 %v5761_v56, %v1278_v7  ;;  %v4790_v55 = vor.u32 %v5267_v51, %v4787_v37  ;;  %v5206_v7 = vld [vmem:[#allocation11 + $0x1d4] sm:$0xf0]  ;;  %v5247_v37 = vld [vmem:[#allocation11 + $0x324] sm:$0xf] }
 0x19f   :  { %3001 = vmatpush.bf16.msra.mxu1 %v4614_v1 }
 0x1a0   :  { %v5763_v5 = vpop.f32.mrf.mxu0  ;;  %2988 = vmatpush.bf16.msra.mxu0 %v4486_v16  ;;  %2962 = vmatpush.bf16.msrb.mxu2 %v4738_v0  ;;  %v4409_v16 = vld [vmem:[#allocation11 + $0xc8] sm:$0xf] }
 0x1a1   :  { %v4410_v41 = vor.u32 %v5174_v27, %v4409_v16  ;;  %v4538_v16 = vor.u32 %v5206_v7, %v4537_v22  ;;  %v5154_v27 = vld [vmem:[#allocation11 + $0x34] sm:$0xf0] }
 0x1a3   :  { %3002 = vmatpush.bf16.msra.mxu1 %v4598_v9 }
 0x1a4   :  { %v1988_v15 = vpop.f32.mrf.mxu3  ;;  %2989 = vmatpush.bf16.msra.mxu0 %v4470_v38  ;;  %2963 = vmatpush.bf16.msrb.mxu2 %v4722_v3  ;;  %v4393_v38 = vld [vmem:[#allocation11 + $0xa8] sm:$0xf] }
 0x1a5   :  { %v4426_v15 = vor.u32 %v5178_v18, %v4425_v17  ;;  %v4345_v18 = vld [vmem:[#allocation11 + $0x48] sm:$0xf] }
 0x1a8   :  { %v2001_v36 = vpop.f32.mrf.mxu0  ;;  %2990 = vmatpush.bf16.msra.mxu0 %v4454_v20  ;;  %2964 = vmatpush.bf16.msrb.mxu2 %v4706_v28  ;;  %v4803_v20 = vld [vmem:[#allocation11 + $0x3f0] sm:$0xf0]  ;;  %v4521_v28 = vld [vmem:[#allocation11 + $0x1a8] sm:$0xf] }
 0x1a9   :  { %v4582_v36 = vor.u32 %v5215_v29, %v4579_v33  ;;  %v4806_v49 = vor.u32 %v5271_v48, %v4803_v20  ;;  %v5202_v29 = vld [vmem:[#allocation11 + $0x1b4] sm:$0xf0]  ;;  %v4427_v48 = vld [vmem:[#allocation11 + $0xf8] sm:$0xf0] }
 0x1ab   :  { %v1960_v40 = vpop.f32.mrf.mxu1  ;;  %3003 = vmatpush.bf16.msra.mxu1 %v4582_v36 }
 0x1ac   :  { %v5768_v44 = vpop.f32.mrf.mxu3  ;;  %v1961_v57 = vadd.f32 %v1960_v40, %v1948_v50  ;;  %2991 = vmatpush.bf16.msra.mxu0 %v4438_v58  ;;  %v2000_v40 = vadd.f32 %v5763_v5, %v1987_v34  ;;  %2965 = vmatpush.bf16.msrb.mxu2 %v4690_v47  ;;  %v4394_v5 = vor.u32 %v5170_v46, %v4393_v38  ;;  %v4771_v58 = vld [vmem:[#allocation11 + $0x3b0] sm:$0xf0]  ;;  %v5251_v46 = vld [vmem:[#allocation11 + $0x344] sm:$0xf] }
 0x1ad   :  { %v2039_v9 = vadd.f32 %v5768_v44, %v1279_v30  ;;  %v4723_v47 = vld [vmem:[#allocation11 + $0x350] sm:$0xf0] }
 0x1ae   :  { %v4726_v20 = vor.u32 %v5251_v46, %v4723_v47  ;;  %v5226_v47 = vld [vmem:[#allocation11 + $0x274] sm:$0xf0] }
 0x1af   :  { %3004 = vmatpush.bf16.msra.mxu1 %v4566_v24  ;;  %v5176_v24 = vld [vmem:[#allocation11 + $0xec] sm:$0xf] }
 0x1b0   :  { %v5772_v31 = vpop.f32.mrf.mxu0  ;;  %3010 = vmatpush.bf16.msra.mxu2 %v4806_v49  ;;  %v4506_v49 = vor.u32 %v5198_v45, %v4505_v43  ;;  %v4617_v45 = vld [vmem:[#allocation11 + $0x268] sm:$0xf] }
 0x1b2   :  { %v1973_v6 = vpop.f32.mrf.mxu2 }
 0x1b3   :  { %v1962_v13 = vpop.f32.mrf.mxu1  ;;  %v1974_v61 = vadd.f32 %v1973_v6, %v1961_v57  ;;  %v5263_v57 = vld [vmem:[#allocation11 + $0x3a4] sm:$0xf]  ;;  %v4361_v6 = vld [vmem:[#allocation11 + $0x68] sm:$0xf] }
 0x1b4   :  { %v2040_v14 = vpop.f32.mrf.mxu3  ;;  %3011 = vmatpush.bf16.msra.mxu2 %v4790_v55  ;;  %v4774_v13 = vor.u32 %v5263_v57, %v4771_v58  ;;  %v4362_v35 = vor.u32 %v5162_v60, %v4361_v6  ;;  %v5172_v55 = vld [vmem:[#allocation11 + $0xcc] sm:$0xf]  ;;  %v4411_v57 = vld [vmem:[#allocation11 + $0xd8] sm:$0xf0]  ;;  %v4710_v58 = vor.u32 %v5247_v37, %v4707_v53  ;;  %v5243_v60 = vld [vmem:[#allocation11 + $0x304] sm:$0xf] }
 0x1b5   :  { %5330 = vtanh.f32 %v1974_v61  ;;  %v5210_v61 = vld [vmem:[#allocation11 + $0x1f4] sm:$0xf0]  ;;  %v4755_v14 = vld [vmem:[#allocation11 + $0x390] sm:$0xf0]  ;;  %v5152_v37 = vld [vmem:[#allocation11 + $0x2c] sm:$0xf] }
 0x1b6   :  { %v4554_v2 = vor.u32 %v5210_v61, %v4553_v23  ;;  %v4691_v23 = vld [vmem:[#allocation11 + $0x310] sm:$0xf0]  ;;  %v4331_v53 = vld [vmem:[#allocation11 + $0x38] sm:$0xf0] }
 0x1b8   :  { %v2053_v8 = vpop.f32.mrf.mxu0  ;;  %3012 = vmatpush.bf16.msra.mxu2 %v4774_v13 }
 0x1b9   :  { %v4758_v8 = vor.u32 %v5259_v63, %v4755_v14  ;;  %v4414_v63 = vor.u32 %v5172_v55, %v4411_v57  ;;  %v4473_v14 = vld [vmem:[#allocation11 + $0x148] sm:$0xf]  ;;  %v4523_v55 = vld [vmem:[#allocation11 + $0x1b8] sm:$0xf0] }
 0x1ba   :  { %v1975_v21 = vpop.f32.mrf.mxu2 }
 0x1bb   :  { %v2012_v10 = vpop.f32.mrf.mxu1  ;;  %v5331_v12 = vpop.eup %5330  ;;  %v5255_v21 = vld [vmem:[#allocation11 + $0x364] sm:$0xf] }
 0x1bc   :  { %v5775_v26 = vpack.c.bf16 %v5331_v12, %v5331_v12  ;;  %v2013_v56 = vadd.f32 %v2012_v10, %v2000_v40  ;;  %v4739_v10 = vld [vmem:[#allocation11 + $0x370] sm:$0xf0]  ;;  %v2052_v12 = vadd.f32 %v5772_v31, %v2039_v9  ;;  %3013 = vmatpush.bf16.msra.mxu2 %v4758_v8  ;;  %v4330_v31 = vor.u32 %v5154_v27, %v4329_v11  ;;  %v4457_v8 = vld [vmem:[#allocation11 + $0x128] sm:$0xf]  ;;  %v5186_v9 = vld [vmem:[#allocation11 + $0x134] sm:$0xf0] }
 0x1bd   :  { %v4742_v44 = vor.u32 %v5255_v21, %v4739_v10  ;;  %v4522_v40 = vor.u32 %v5202_v29, %v4521_v28  ;;  %v4649_v21 = vld [vmem:[#allocation11 + $0x2a8] sm:$0xf]  ;;  %v5234_v10 = vld [vmem:[#allocation11 + $0x2b4] sm:$0xf0] }
 0x1be   :  { %2927 = vmatmul.bf16.vlgmr.msrb.gmra.mxu3 %v5775_v26  ;;  %v4650_v11 = vor.u32 %v5234_v10, %v4649_v21  ;;  %v4441_v28 = vld [vmem:[#allocation11 + $0x108] sm:$0xf]  ;;  %v5182_v29 = vld [vmem:[#allocation11 + $0x114] sm:$0xf0]  ;;  %v4683_v21 = vld [vmem:[#allocation11 + $0x2f8] sm:$0xf0] }
 0x1bf   :  { %3023 = vmatpush.bf16.msrb.mxu3 %v4426_v15  ;;  %v4346_v15 = vor.u32 %v5158_v4, %v4345_v18  ;;  %v4694_v18 = vor.u32 %v5243_v60, %v4691_v23  ;;  %v5218_v23 = vld [vmem:[#allocation11 + $0x234] sm:$0xf0] }
 0x1c0   :  { %3014 = vmatpush.bf16.msra.mxu2 %v4742_v44  ;;  %v4633_v44 = vld [vmem:[#allocation11 + $0x288] sm:$0xf] }
 0x1c2   :  { %v2025_v32 = vpop.f32.mrf.mxu2 }
 0x1c3   :  { %v2014_v50 = vpop.f32.mrf.mxu1  ;;  %v2026_v52 = vadd.f32 %v2025_v32, %v2013_v56  ;;  %3024 = vmatpush.bf16.msrb.mxu3 %v4410_v41  ;;  %v4313_v41 = vld [vmem:[#allocation11 + $0x8] sm:$0xf] }
 0x1c4   :  { %v4314_v56 = vor.u32 %v5150_v42, %v4313_v41  ;;  %v4489_v32 = vld [vmem:[#allocation11 + $0x168] sm:$0xf]  ;;  %v5194_v50 = vld [vmem:[#allocation11 + $0x174] sm:$0xf0]  ;;  %3015 = vmatpush.bf16.msra.mxu2 %v4726_v20  ;;  %v4442_v41 = vor.u32 %v5182_v29, %v4441_v28 }
 0x1c5   :  { %5332 = vtanh.f32 %v2026_v52  ;;  %v4430_v52 = vor.u32 %v5176_v24, %v4427_v48  ;;  %v4490_v13 = vor.u32 %v5194_v50, %v4489_v32  ;;  %v5156_v24 = vld [vmem:[#allocation11 + $0x4c] sm:$0xf]  ;;  %v4347_v48 = vld [vmem:[#allocation11 + $0x58] sm:$0xf0]  ;;  %v4618_v32 = vor.u32 %v5226_v47, %v4617_v45  ;;  %v4793_v29 = vld [vmem:[#allocation11 + $0x3c8] sm:$0xf] }
 0x1c6   :  { %v4350_v50 = vor.u32 %v5156_v24, %v4347_v48  ;;  %v4459_v45 = vld [vmem:[#allocation11 + $0x138] sm:$0xf0] }
 0x1c7   :  { %3025 = vmatpush.bf16.msrb.mxu3 %v4394_v5  ;;  %v4681_v5 = vld [vmem:[#allocation11 + $0x2e8] sm:$0xf]  ;;  %v4651_v47 = vld [vmem:[#allocation11 + $0x2b8] sm:$0xf0] }
 0x1c8   :  { %v4682_v30 = vor.u32 %v5242_v54, %v4681_v5  ;;  %3016 = vmatpush.bf16.msra.mxu2 %v4710_v58  ;;  %v5222_v5 = vld [vmem:[#allocation11 + $0x254] sm:$0xf0] }
 0x1ca   :  { %v2027_v0 = vpop.f32.mrf.mxu2 }
 0x1cb   :  { %v2064_v1 = vpop.f32.mrf.mxu1  ;;  %v5333_v17 = vpop.eup %5332  ;;  %3026 = vmatpush.bf16.msrb.mxu3 %v4378_v59  ;;  %v5190_v0 = vld [vmem:[#allocation11 + $0x154] sm:$0xf0] }
 0x1cc   :  { %v5781_v62 = vpop.f32.mrf.mxu3  ;;  %v5783_v3 = vpack.c.bf16 %v5333_v17, %v5333_v17  ;;  %v2065_v34 = vadd.f32 %v2064_v1, %v2052_v12  ;;  %v4665_v1 = vld [vmem:[#allocation11 + $0x2c8] sm:$0xf]  ;;  %v5238_v17 = vld [vmem:[#allocation11 + $0x2d4] sm:$0xf0]  ;;  %v4474_v4 = vor.u32 %v5190_v0, %v4473_v14  ;;  %v5164_v12 = vld [vmem:[#allocation11 + $0x8c] sm:$0xf]  ;;  %3017 = vmatpush.bf16.msra.mxu2 %v4694_v18 }
 0x1cd   :  { %v4666_v22 = vor.u32 %v5238_v17, %v4665_v1  ;;  %v5196_v14 = vld [vmem:[#allocation11 + $0x18c] sm:$0xf]  ;;  %v4507_v0 = vld [vmem:[#allocation11 + $0x198] sm:$0xf0] }
 0x1ce   :  { %2940 = vmatmul.bf16.vlgmr.msrb.gmra.mxu0 %v5783_v3  ;;  %2979 = vmatmul.bf16.vlgmr.msra.gmra.mxu3 %v5775_v26  ;;  %v4510_v18 = vor.u32 %v5196_v14, %v4507_v0  ;;  %v4587_v14 = vld [vmem:[#allocation11 + $0x238] sm:$0xf0] }
 0x1cf   :  { %3027 = vmatpush.bf16.msrb.mxu3 %v4362_v35  ;;  %3036 = vmatpush.bf16.msrb.mxu0 %v4554_v2  ;;  %v5168_v35 = vld [vmem:[#allocation11 + $0xac] sm:$0xf]  ;;  %v4395_v2 = vld [vmem:[#allocation11 + $0xb8] sm:$0xf0] }
 0x1d0   :  { %v5789_v25 = vpop.f32.mrf.mxu0  ;;  %v4398_v7 = vor.u32 %v5168_v35, %v4395_v2  ;;  %v4569_v35 = vld [vmem:[#allocation11 + $0x208] sm:$0xf]  ;;  %v5214_v2 = vld [vmem:[#allocation11 + $0x214] sm:$0xf0] }
 0x1d2   :  { %v2077_v36 = vpop.f32.mrf.mxu2 }
 0x1d3   :  { %v2066_v38 = vpop.f32.mrf.mxu1  ;;  %v2078_v39 = vadd.f32 %v2077_v36, %v2065_v34  ;;  %3028 = vmatpush.bf16.msrb.mxu3 %v4346_v15  ;;  %3037 = vmatpush.bf16.msrb.mxu0 %v4538_v16  ;;  %v4379_v15 = vld [vmem:[#allocation11 + $0x98] sm:$0xf0]  ;;  %v4458_v16 = vor.u32 %v5186_v9, %v4457_v8  ;;  %v5160_v34 = vld [vmem:[#allocation11 + $0x6c] sm:$0xf] }
 0x1d4   :  { %v2092_v33 = vpop.f32.mrf.mxu3  ;;  %v4382_v27 = vor.u32 %v5164_v12, %v4379_v15  ;;  %v4363_v36 = vld [vmem:[#allocation11 + $0x78] sm:$0xf0]  ;;  %v1280_v38 = vperm.slane %v5765_v19, 3  ;;  %v5240_v9 = vld [vmem:[#allocation11 + $0x2ec] sm:$0xf]  ;;  %v4570_v15 = vor.u32 %v5214_v2, %v4569_v35 }
 0x1d5   :  { %5334 = vtanh.f32 %v2078_v39  ;;  %v5230_v33 = vld [vmem:[#allocation11 + $0x294] sm:$0xf0]  ;;  %v5208_v39 = vld [vmem:[#allocation11 + $0x1ec] sm:$0xf]  ;;  %v4366_v43 = vor.u32 %v5160_v34, %v4363_v36  ;;  %v4491_v8 = vld [vmem:[#allocation11 + $0x178] sm:$0xf0]  ;;  %v4686_v28 = vor.u32 %v5240_v9, %v4683_v21 }
 0x1d6   :  { %v4634_v42 = vor.u32 %v5230_v33, %v4633_v44  ;;  %v2091_v20 = vadd.f32 %v5781_v62, %v1280_v38  ;;  %v5200_v62 = vld [vmem:[#allocation11 + $0x1ac] sm:$0xf]  ;;  %v5270_v44 = vld [vmem:[#allocation11 + $0x3d4] sm:$0xf0]  ;;  %v4475_v34 = vld [vmem:[#allocation11 + $0x158] sm:$0xf0] }
 0x1d7   :  { %3029 = vmatpush.bf16.msrb.mxu3 %v4330_v31  ;;  %3038 = vmatpush.bf16.msrb.mxu0 %v4522_v40  ;;  %v4555_v31 = vld [vmem:[#allocation11 + $0x1f8] sm:$0xf0]  ;;  %v4526_v60 = vor.u32 %v5200_v62, %v4523_v55  ;;  %v5188_v33 = vld [vmem:[#allocation11 + $0x14c] sm:$0xf]  ;;  %v5246_v35 = vld [vmem:[#allocation11 + $0x314] sm:$0xf0] }
 0x1d8   :  { %v2105_v51 = vpop.f32.mrf.mxu0  ;;  %v4558_v46 = vor.u32 %v5208_v39, %v4555_v31  ;;  %v2104_v19 = vadd.f32 %v5789_v25, %v2091_v20  ;;  %v5236_v36 = vld [vmem:[#allocation11 + $0x2cc] sm:$0xf]  ;;  %v4667_v38 = vld [vmem:[#allocation11 + $0x2d8] sm:$0xf0]  ;;  %v4794_v39 = vor.u32 %v5270_v44, %v4793_v29  ;;  %v4478_v31 = vor.u32 %v5188_v33, %v4475_v34  ;;  %v4761_v20 = vld [vmem:[#allocation11 + $0x388] sm:$0xf] }
 0x1d9   :  { %v4601_v51 = vld [vmem:[#allocation11 + $0x248] sm:$0xf]  ;;  %v4619_v62 = vld [vmem:[#allocation11 + $0x278] sm:$0xf0]  ;;  %v5212_v2 = vld [vmem:[#allocation11 + $0x20c] sm:$0xf] }
 0x1da   :  { %v2079_v59 = vpop.f32.mrf.mxu2  ;;  %v5268_v9 = vld [vmem:[#allocation11 + $0x3cc] sm:$0xf]  ;;  %v4795_v21 = vld [vmem:[#allocation11 + $0x3d8] sm:$0xf0] }
 0x1db   :  { %v5335_v6 = vpop.eup %5334  ;;  %3030 = vmatpush.bf16.msrb.mxu3 %v4314_v56  ;;  %3039 = vmatpush.bf16.msrb.mxu0 %v4506_v49  ;;  %v5204_v56 = vld [vmem:[#allocation11 + $0x1cc] sm:$0xf]  ;;  %v4539_v49 = vld [vmem:[#allocation11 + $0x1d8] sm:$0xf0]  ;;  %v4602_v59 = vor.u32 %v5222_v5, %v4601_v51 }
 0x1dc   :  { %v5791_v61 = vpack.c.bf16 %v5335_v6, %v5335_v6  ;;  %v4334_v6 = vor.u32 %v5152_v37, %v4331_v53  ;;  %v4745_v37 = vld [vmem:[#allocation11 + $0x368] sm:$0xf]  ;;  %v5258_v53 = vld [vmem:[#allocation11 + $0x374] sm:$0xf0]  ;;  %v5256_v44 = vld [vmem:[#allocation11 + $0x36c] sm:$0xf] }
 0x1dd   :  { %v4746_v55 = vor.u32 %v5258_v53, %v4745_v37  ;;  %v4747_v33 = vld [vmem:[#allocation11 + $0x378] sm:$0xf0]  ;;  %v5289_v37 = vld [vmem:[#allocation13 + $0x70] sm:$0xff] }
 0x1de   :  { %2953 = vmatmul.bf16.vlgmr.msrb.gmra.mxu1 %v5791_v61  ;;  %2992 = vmatmul.bf16.vlgmr.msra.gmra.mxu0 %v5783_v3  ;;  %v4750_v34 = vor.u32 %v5256_v44, %v4747_v33 }
 0x1df   :  { %3075 = vmatpush.bf16.msra.mxu3 %v4430_v52  ;;  %3040 = vmatpush.bf16.msrb.mxu0 %v4490_v13  ;;  %v4542_v52 = vor.u32 %v5204_v56, %v4539_v49  ;;  %v4585_v13 = vld [vmem:[#allocation11 + $0x228] sm:$0xf]  ;;  %v5262_v56 = vld [vmem:[#allocation11 + $0x394] sm:$0xf0]  ;;  %v5180_v49 = vld [vmem:[#allocation11 + $0x10c] sm:$0xf] }
 0x1e0   :  { %3031 = vmatmul.bf16.vlgmr.msrb.gmra.mxu3 %v5775_v26  ;;  %3049 = vmatpush.bf16.msrb.mxu1 %v4682_v30  ;;  %v5148_v30 = vld [vmem:[#allocation11 + $0xc] sm:$0xf]  ;;  %v4586_v1 = vor.u32 %v5218_v23, %v4585_v13  ;;  %v4762_v51 = vor.u32 %v5262_v56, %v4761_v20  ;;  %v4713_v23 = vld [vmem:[#allocation11 + $0x328] sm:$0xf] }
 0x1e3   :  { %3076 = vmatpush.bf16.msra.mxu3 %v4414_v63  ;;  %3041 = vmatpush.bf16.msrb.mxu0 %v4474_v4  ;;  %v4315_v63 = vld [vmem:[#allocation11 + $0x18] sm:$0xf0]  ;;  %v4809_v4 = vld [vmem:[#allocation11 + $0x3e8] sm:$0xf] }
 0x1e4   :  { %3050 = vmatpush.bf16.msrb.mxu1 %v4666_v22  ;;  %v4318_v17 = vor.u32 %v5148_v30, %v4315_v63  ;;  %v5274_v22 = vld [vmem:[#allocation11 + $0x3f4] sm:$0xf0]  ;;  %v5216_v63 = vld [vmem:[#allocation11 + $0x22c] sm:$0xf] }
 0x1e5   :  { %v5250_v30 = vld [vmem:[#allocation11 + $0x334] sm:$0xf0] }
 0x1e6   :  { %v4714_v0 = vor.u32 %v5250_v30, %v4713_v23  ;;  %v5822_v23 = vld [vmem:[%s5844_s6] sm:$0xf]  ;;  %v5285_v30 = vld [vmem:[#allocation13 + $0x50] sm:$0xff] }
 0x1e7   :  { %3077 = vmatpush.bf16.msra.mxu3 %v4398_v7  ;;  %3042 = vmatpush.bf16.msrb.mxu0 %v4458_v16  ;;  %v5192_v7 = vld [vmem:[#allocation11 + $0x16c] sm:$0xf]  ;;  %v4810_v16 = vor.u32 %v5274_v22, %v4809_v4  ;;  %v4811_v22 = vld [vmem:[#allocation11 + $0x3f8] sm:$0xf0] }
 0x1e8   :  { %3051 = vmatpush.bf16.msrb.mxu1 %v4650_v11  ;;  %v5272_v4 = vld [vmem:[#allocation11 + $0x3ec] sm:$0xf] }
 0x1eb   :  { %v2116_v40 = vpop.f32.mrf.mxu1  ;;  %3078 = vmatpush.bf16.msra.mxu3 %v4382_v27  ;;  %3043 = vmatpush.bf16.msrb.mxu0 %v4442_v41  ;;  %v4494_v27 = vor.u32 %v5192_v7, %v4491_v8  ;;  %v4777_v41 = vld [vmem:[#allocation11 + $0x3a8] sm:$0xf]  ;;  %v4814_v8 = vor.u32 %v5272_v4, %v4811_v22 }
 0x1ec   :  { %3052 = vmatpush.bf16.msrb.mxu1 %v4634_v42  ;;  %v2117_v54 = vadd.f32 %v2116_v40, %v2104_v19  ;;  %v4670_v40 = vor.u32 %v5236_v36, %v4667_v38  ;;  %v5266_v42 = vld [vmem:[#allocation11 + $0x3b4] sm:$0xf0]  ;;  %v4443_v19 = vld [vmem:[#allocation11 + $0x118] sm:$0xf0]  ;;  %v5252_v36 = vld [vmem:[#allocation11 + $0x34c] sm:$0xf] }
 0x1ed   :  { %v4778_v24 = vor.u32 %v5266_v42, %v4777_v41  ;;  %v4731_v38 = vld [vmem:[#allocation11 + $0x358] sm:$0xf0]  ;;  %v5244_v42 = vld [vmem:[#allocation11 + $0x30c] sm:$0xf] }
 0x1ee   :  { %3005 = vmatmul.bf16.vlgmr.msra.gmra.mxu1 %v5791_v61  ;;  %3044 = vmatmul.bf16.vlgmr.msrb.gmra.mxu0 %v5783_v3 }
 0x1ef   :  { %3079 = vmatpush.bf16.msra.mxu3 %v4366_v43  ;;  %3088 = vmatpush.bf16.msra.mxu0 %v4558_v46  ;;  %v5184_v43 = vld [vmem:[#allocation11 + $0x12c] sm:$0xf] }
 0x1f0   :  { %3053 = vmatpush.bf16.msrb.mxu1 %v4618_v32  ;;  %v5232_v46 = vld [vmem:[#allocation11 + $0x2ac] sm:$0xf] }
 0x1f1   :  { %v4654_v48 = vor.u32 %v5232_v46, %v4651_v47  ;;  %v5228_v32 = vld [vmem:[#allocation11 + $0x28c] sm:$0xf]  ;;  %v5282_v47 = vld [vmem:[#allocation13 + $0x38] sm:$0xff] }
 0x1f2   :  { %v2129_v57 = vpop.f32.mrf.mxu2 }
 0x1f3   :  { %v2118_v58 = vpop.f32.mrf.mxu1  ;;  %v2130_v25 = vadd.f32 %v2129_v57, %v2117_v54  ;;  %3080 = vmatpush.bf16.msra.mxu3 %v4350_v50  ;;  %3089 = vmatpush.bf16.msra.mxu0 %v4542_v52  ;;  %v4635_v50 = vld [vmem:[#allocation11 + $0x298] sm:$0xf0]  ;;  %v4446_v52 = vor.u32 %v5180_v49, %v4443_v19  ;;  %v5224_v54 = vld [vmem:[#allocation11 + $0x26c] sm:$0xf]  ;;  %v5279_v19 = vld [vmem:[#allocation13 + $0x20] sm:$0xff] }
 0x1f4   :  { %3054 = vmatpush.bf16.msrb.mxu1 %v4602_v59  ;;  %v4638_v5 = vor.u32 %v5228_v32, %v4635_v50  ;;  %v4622_v57 = vor.u32 %v5224_v54, %v4619_v62  ;;  %v4729_v58 = vld [vmem:[#allocation11 + $0x348] sm:$0xf]  ;;  %v5220_v59 = vld [vmem:[#allocation11 + $0x24c] sm:$0xf]  ;;  %v5290_v49 = vld [vmem:[#allocation13 + $0x78] sm:$0xff] }
 0x1f5   :  { %5336 = vtanh.f32 %v2130_v25  ;;  %v5254_v25 = vld [vmem:[#allocation11 + $0x354] sm:$0xf0]  ;;  %v5276_v62 = vld [vmem:[#allocation13 + $0x8] sm:$0xff] }
 0x1f6   :  { %v4730_v13 = vor.u32 %v5254_v25, %v4729_v58  ;;  %v5278_v32 = vld [vmem:[#allocation13 + $0x18] sm:$0xff]  ;;  %v5287_v58 = vld [vmem:[#allocation13 + $0x60] sm:$0xff] }
 0x1f7   :  { %3081 = vmatpush.bf16.msra.mxu3 %v4334_v6  ;;  %3090 = vmatpush.bf16.msra.mxu0 %v4526_v60  ;;  %v4603_v6 = vld [vmem:[#allocation11 + $0x258] sm:$0xf0] }
 0x1f8   :  { %3055 = vmatpush.bf16.msrb.mxu1 %v4586_v1  ;;  %v4606_v60 = vor.u32 %v5220_v59, %v4603_v6  ;;  %v4590_v1 = vor.u32 %v5216_v63, %v4587_v14  ;;  %v5298_v59 = vld [vmem:[#allocation13 + $0xb8] sm:$0xff]  ;;  %v5297_v63 = vld [vmem:[#allocation13 + $0xb0] sm:$0xff] }
 0x1fa   :  { %v2131_v10 = vpop.f32.mrf.mxu2 }
 0x1fb   :  { %v5337_v12 = vpop.eup %5336  ;;  %3082 = vmatpush.bf16.msra.mxu3 %v4318_v17  ;;  %3091 = vmatpush.bf16.msra.mxu0 %v4510_v18  ;;  %v4697_v17 = vld [vmem:[#allocation11 + $0x308] sm:$0xf]  ;;  %v4571_v18 = vld [vmem:[#allocation11 + $0x218] sm:$0xf0]  ;;  %v4798_v10 = vor.u32 %v5268_v9, %v4795_v21 }
 0x1fc   :  { %v5801_v11 = vpack.c.bf16 %v5337_v12, %v5337_v12  ;;  %3056 = vmatpush.bf16.msrb.mxu1 %v4570_v15  ;;  %v4698_v7 = vor.u32 %v5246_v35, %v4697_v17  ;;  %v5264_v12 = vld [vmem:[#allocation11 + $0x3ac] sm:$0xf]  ;;  %v4779_v15 = vld [vmem:[#allocation11 + $0x3b8] sm:$0xf0] }
 0x1fd   :  { %v5284_v17 = vld [vmem:[#allocation13 + $0x48] sm:$0xff] }
 0x1fe   :  { %2966 = vmatmul.bf16.vlgmr.msrb.gmra.mxu2 %v5801_v11  ;;  %3083 = vmatmul.bf16.vlgmr.msra.gmra.mxu3 %v5775_v26  ;;  %v4462_v26 = vor.u32 %v5184_v43, %v4459_v45  ;;  %v5296_v35 = vld [vmem:[#allocation13 + $0xa8] sm:$0xff] }
 0x1ff   :  { %3062 = vmatpush.bf16.msrb.mxu2 %v4810_v16  ;;  %3092 = vmatpush.bf16.msra.mxu0 %v4494_v27  ;;  %v4782_v16 = vor.u32 %v5264_v12, %v4779_v15  ;;  %v5260_v27 = vld [vmem:[#allocation11 + $0x38c] sm:$0xf]  ;;  %v5293_v12 = vld [vmem:[#allocation13 + $0x90] sm:$0xff] }
 0x200   :  { %3101 = vmatpush.bf16.msra.mxu1 %v4686_v28  ;;  %v4763_v28 = vld [vmem:[#allocation11 + $0x398] sm:$0xf0]  ;;  %3395 = vmatpush.bf16.msrb.mxu3 %v5282_v47  ;;  %v2273_v47 = vperm.slane %v5822_v23, 2 }
 0x201   :  { %3057 = vmatmul.bf16.vlgmr.msrb.gmra.mxu1 %v5791_v61  ;;  %v4766_v29 = vor.u32 %v5260_v27, %v4763_v28 }
 0x203   :  { %3063 = vmatpush.bf16.msrb.mxu2 %v4794_v39  ;;  %3093 = vmatpush.bf16.msra.mxu0 %v4478_v31  ;;  %v4734_v39 = vor.u32 %v5252_v36, %v4731_v38  ;;  %v5248_v31 = vld [vmem:[#allocation11 + $0x32c] sm:$0xf]  ;;  %v5306_v36 = vld [vmem:[#allocation13 + $0xf8] sm:$0xff] }
 0x204   :  { %3102 = vmatpush.bf16.msra.mxu1 %v4670_v40  ;;  %v4715_v40 = vld [vmem:[#allocation11 + $0x338] sm:$0xf0] }
 0x205   :  { %v4718_v41 = vor.u32 %v5248_v31, %v4715_v40  ;;  %v5305_v31 = vld [vmem:[#allocation13 + $0xf0] sm:$0xff] }
 0x207   :  { %3064 = vmatpush.bf16.msrb.mxu2 %v4778_v24  ;;  %3094 = vmatpush.bf16.msra.mxu0 %v4462_v26  ;;  %v5281_v26 = vld [vmem:[#allocation13 + $0x30] sm:$0xff] }
 0x208   :  { %3103 = vmatpush.bf16.msra.mxu1 %v4654_v48  ;;  %3396 = vmatpush.bf16.msrb.mxu3 %v5281_v26  ;;  %v5280_v48 = vld [vmem:[#allocation13 + $0x28] sm:$0xff]  ;;  %v5302_v26 = vld [vmem:[#allocation13 + $0xd8] sm:$0xff] }
 0x20b   :  { %3065 = vmatpush.bf16.msrb.mxu2 %v4762_v51  ;;  %3095 = vmatpush.bf16.msra.mxu0 %v4446_v52 }
 0x20c   :  { %3104 = vmatpush.bf16.msra.mxu1 %v4638_v5  ;;  %3397 = vmatpush.bf16.msrb.mxu3 %v5280_v48  ;;  %v5277_v5 = vld [vmem:[#allocation13 + $0x10] sm:$0xff] }
 0x20e   :  { %3018 = vmatmul.bf16.vlgmr.msra.gmra.mxu2 %v5801_v11  ;;  %3096 = vmatmul.bf16.vlgmr.msra.gmra.mxu0 %v5783_v3  ;;  %v4574_v3 = vor.u32 %v5212_v2, %v4571_v18  ;;  %v5283_v2 = vld [vmem:[#allocation13 + $0x40] sm:$0xff] }
 0x20f   :  { %3066 = vmatpush.bf16.msrb.mxu2 %v4746_v55  ;;  %3408 = vmatpush.bf16.msrb.mxu0 %v5290_v49  ;;  %v5288_v55 = vld [vmem:[#allocation13 + $0x68] sm:$0xff]  ;;  %v5295_v18 = vld [vmem:[#allocation13 + $0xa0] sm:$0xff] }
 0x210   :  { %3105 = vmatpush.bf16.msra.mxu1 %v4622_v57  ;;  %3398 = vmatpush.bf16.msrb.mxu3 %v5279_v19  ;;  %v5275_v57 = vld [vmem:[#allocation13] sm:$0xff] }
 0x213   :  { %3067 = vmatpush.bf16.msrb.mxu2 %v4730_v13  ;;  %3409 = vmatpush.bf16.msrb.mxu0 %v5289_v37  ;;  %v5300_v37 = vld [vmem:[#allocation13 + $0xc8] sm:$0xff] }
 0x214   :  { %3106 = vmatpush.bf16.msra.mxu1 %v4606_v60  ;;  %3399 = vmatpush.bf16.msrb.mxu3 %v5278_v32  ;;  %v5286_v60 = vld [vmem:[#allocation13 + $0x58] sm:$0xff] }
 0x217   :  { %3068 = vmatpush.bf16.msrb.mxu2 %v4714_v0  ;;  %3410 = vmatpush.bf16.msrb.mxu0 %v5288_v55 }
 0x218   :  { %3107 = vmatpush.bf16.msra.mxu1 %v4590_v1  ;;  %3400 = vmatpush.bf16.msrb.mxu3 %v5277_v5  ;;  %v2271_v1 = vperm.slane %v5822_v23, 0 }
 0x21b   :  { %3069 = vmatpush.bf16.msrb.mxu2 %v4698_v7  ;;  %3411 = vmatpush.bf16.msrb.mxu0 %v5287_v58 }
 0x21c   :  { %3108 = vmatpush.bf16.msra.mxu1 %v4574_v3  ;;  %3401 = vmatpush.bf16.msrb.mxu3 %v5276_v62  ;;  %v5294_v3 = vld [vmem:[#allocation13 + $0x98] sm:$0xff] }
 0x21e   :  { %3070 = vmatmul.bf16.vlgmr.msrb.gmra.mxu2 %v5801_v11 }
 0x21f   :  { %3114 = vmatpush.bf16.msra.mxu2 %v4814_v8  ;;  %3109 = vmatmul.bf16.vlgmr.msra.gmra.mxu1 %v5791_v61  ;;  %v4699_v61 = vld [vmem:[#allocation11 + $0x318] sm:$0xf0] }
 0x220   :  { %v4702_v43 = vor.u32 %v5244_v42, %v4699_v61  ;;  %3402 = vmatpush.bf16.msrb.mxu3 %v5275_v57  ;;  %3421 = vmatpush.bf16.msrb.mxu1 %v5298_v59  ;;  %v5304_v61 = vld [vmem:[#allocation13 + $0xe8] sm:$0xff] }
 0x221   :  { %3412 = vmatpush.bf16.msrb.mxu0 %v5286_v60 }
 0x223   :  { %3115 = vmatpush.bf16.msra.mxu2 %v4798_v10 }
 0x224   :  { %3422 = vmatpush.bf16.msrb.mxu1 %v5297_v63 }
 0x225   :  { %3413 = vmatpush.bf16.msrb.mxu0 %v5285_v30 }
 0x227   :  { %3116 = vmatpush.bf16.msra.mxu2 %v4782_v16  ;;  %v2272_v16 = vperm.slane %v5822_v23, 1 }
 0x228   :  { %3423 = vmatpush.bf16.msrb.mxu1 %v5296_v35 }
 0x229   :  { %3414 = vmatpush.bf16.msrb.mxu0 %v5284_v17 }
 0x22b   :  { %3117 = vmatpush.bf16.msra.mxu2 %v4766_v29  ;;  %v5292_v29 = vld [vmem:[#allocation13 + $0x88] sm:$0xff] }
 0x22c   :  { %3424 = vmatpush.bf16.msrb.mxu1 %v5295_v18 }
 0x22d   :  { %3415 = vmatpush.bf16.msrb.mxu0 %v5283_v2  ;;  %v3447_v2 = vlaneseq }
 0x22f   :  { %3118 = vmatpush.bf16.msra.mxu2 %v4750_v34  ;;  %v5291_v34 = vld [vmem:[#allocation13 + $0x80] sm:$0xff] }
 0x230   :  { %3425 = vmatpush.bf16.msrb.mxu1 %v5294_v3 }
 0x233   :  { %3119 = vmatpush.bf16.msra.mxu2 %v4734_v39 }
 0x234   :  { %3426 = vmatpush.bf16.msrb.mxu1 %v5293_v12 }
 0x237   :  { %3120 = vmatpush.bf16.msra.mxu2 %v4718_v41 }
 0x238   :  { %3427 = vmatpush.bf16.msrb.mxu1 %v5292_v29 }
 0x23b   :  { %3121 = vmatpush.bf16.msra.mxu2 %v4702_v43 }
 0x23c   :  { %3428 = vmatpush.bf16.msrb.mxu1 %v5291_v34 }
 0x23e   :  { %3122 = vmatmul.bf16.vlgmr.msra.gmra.mxu2 %v5801_v11 }
 0x23f   :  { %3434 = vmatpush.bf16.msrb.mxu2 %v5306_v36 }
 0x241   :  { %v2928_v45 = vpop.f32.mrf.mxu3 }
 0x242   :  { %v2929_v4 = vadd.f32 %v2928_v45, %v2271_v1 }
 0x243   :  { %3435 = vmatpush.bf16.msrb.mxu2 %v5305_v31 }
 0x247   :  { %3436 = vmatpush.bf16.msrb.mxu2 %v5304_v61 }
 0x249   :  { %v2930_v46 = vpop.f32.mrf.mxu3 }
 0x24a   :  { %v5303_v46 = vld [vmem:[#allocation13 + $0xe0] sm:$0xff] }
 0x24b   :  { %v2941_v24 = vpop.f32.mrf.mxu0  ;;  %3437 = vmatpush.bf16.msrb.mxu2 %v5303_v46 }
 0x24c   :  { %v2942_v22 = vadd.f32 %v2941_v24, %v2929_v4  ;;  %v3448_v4 = vand.u32 127, %v3447_v2 }
 0x24e   :  { %vm3449_vm9 = vcmp.lt.s32.totalorder %v3448_v4, 2 }
 0x24f   :  { %3438 = vmatpush.bf16.msrb.mxu2 %v5302_v26 }
 0x251   :  { %v5811_v20 = vpop.f32.mrf.mxu3 }
 0x252   :  { %v2981_v38 = vadd.f32 %v5811_v20, %v2272_v16 }
 0x253   :  { %v2943_v56 = vpop.f32.mrf.mxu0 }
 0x259   :  { %v2982_v50 = vpop.f32.mrf.mxu3 }
 0x25b   :  { %v2954_v51 = vpop.f32.mrf.mxu1  ;;  %v5813_v11 = vpop.f32.mrf.mxu0 }
 0x25c   :  { %v2955_v8 = vadd.f32 %v2954_v51, %v2942_v22  ;;  %v2994_v40 = vadd.f32 %v5813_v11, %v2981_v38  ;;  %v5301_v51 = vld [vmem:[#allocation13 + $0xd0] sm:$0xff] }
 0x25d   :  { %3439 = vmatpush.bf16.msrb.mxu2 %v5301_v51 }
 0x261   :  { %3440 = vmatpush.bf16.msrb.mxu2 %v5300_v37 }
 0x263   :  { %v5815_v52 = vpop.f32.mrf.mxu3  ;;  %v2956_v53 = vpop.f32.mrf.mxu1 }
 0x264   :  { %v2995_v54 = vpop.f32.mrf.mxu0  ;;  %v3033_v56 = vadd.f32 %v5815_v52, %v2273_v47  ;;  %v5299_v53 = vld [vmem:[#allocation13 + $0xc0] sm:$0xff]  ;;  %v2274_v52 = vperm.slane %v5822_v23, 3  ;;  %v5321_v23 = vld [vmem:[%s5846_s8] ss:$0 sm:$0xff]  ;;  %s5565_s8 = smov [#allocation14]  }
 0x265   :  { %3441 = vmatpush.bf16.msrb.mxu2 %v5299_v53  ;;  %s3468_s24 = sshll.u32 %s5565_s8, 4  ;;  %s3469_s24 = int_to_ptr.vmem [resolvable:$true] %s3468_s24 }
 0x26b   :  { %v3034_v25 = vpop.f32.mrf.mxu3  ;;  %v3006_v6 = vpop.f32.mrf.mxu1 }
 0x26c   :  { %v5817_v13 = vpop.f32.mrf.mxu0  ;;  %v3007_v41 = vadd.f32 %v3006_v6, %v2994_v40 }
 0x26d   :  { %v3046_v19 = vadd.f32 %v5817_v13, %v3033_v56 }
 0x273   :  { %v3008_v14 = vpop.f32.mrf.mxu1 }
 0x274   :  { %v3047_v0 = vpop.f32.mrf.mxu0 }
 0x27e   :  { %v3058_v7 = vpop.f32.mrf.mxu1 }
 0x27f   :  { %v3059_v32 = vadd.f32 %v3058_v7, %v3046_v19 }
 0x281   :  { %v2967_v9 = vpop.f32.mrf.mxu2  ;;  %v3084_v21 = vpop.f32.mrf.mxu3 }
 0x282   :  { %v2968_v10 = vadd.f32 %v2967_v9, %v2955_v8  ;;  %v3085_v57 = vadd.f32 %v3084_v21, %v2274_v52 }
 0x284   :  { %5338 = vtanh.f32 %v2968_v10 }
 0x286   :  { %v3060_v15 = vpop.f32.mrf.mxu1 }
 0x289   :  { %v2969_v27 = vpop.f32.mrf.mxu2  ;;  %v3086_v28 = vpop.f32.mrf.mxu3 }
 0x28a   :  { %v5339_v44 = vpop.eup %5338 }
 0x28b   :  { %v3131_v33 = vpack.c.bf16 %v5339_v44, %v5339_v44  ;;  %v3097_v39 = vpop.f32.mrf.mxu0 }
 0x28c   :  { %v3098_v58 = vadd.f32 %v3097_v39, %v3085_v57 }
 0x28d   :  { %3403 = vmatmul.bf16.vlgmr.msrb.gmra.mxu3 %v3131_v33 }
 0x291   :  { %v3019_v42 = vpop.f32.mrf.mxu2 }
 0x292   :  { %v3020_v43 = vadd.f32 %v3019_v42, %v3007_v41 }
 0x293   :  { %v3099_v45 = vpop.f32.mrf.mxu0 }
 0x294   :  { %5340 = vtanh.f32 %v3020_v43 }
 0x299   :  { %v3021_v24 = vpop.f32.mrf.mxu2 }
 0x29a   :  { %v5341_v48 = vpop.eup %5340 }
 0x29b   :  { %v3132_v20 = vpack.c.bf16 %v5341_v48, %v5341_v48 }
 0x29c   :  { %v3110_v49 = vpop.f32.mrf.mxu1 }
 0x29d   :  { %3416 = vmatmul.bf16.vlgmr.msrb.gmra.mxu0 %v3132_v20  ;;  %v3111_v25 = vadd.f32 %v3110_v49, %v3098_v58 }
 0x2a1   :  { %v3071_v50 = vpop.f32.mrf.mxu2 }
 0x2a2   :  { %v3072_v11 = vadd.f32 %v3071_v50, %v3059_v32 }
 0x2a4   :  { %5342 = vtanh.f32 %v3072_v11  ;;  %v3112_v5 = vpop.f32.mrf.mxu1 }
 0x2a9   :  { %v3073_v54 = vpop.f32.mrf.mxu2 }
 0x2aa   :  { %v5343_v62 = vpop.eup %5342 }
 0x2ab   :  { %v3133_v55 = vpack.c.bf16 %v5343_v62, %v5343_v62 }
 0x2ad   :  { %3429 = vmatmul.bf16.vlgmr.msrb.gmra.mxu1 %v3133_v55 }
 0x2c1   :  { %v3123_v59 = vpop.f32.mrf.mxu2 }
 0x2c2   :  { %v3124_v6 = vadd.f32 %v3123_v59, %v3111_v25 }
 0x2c4   :  { %5344 = vtanh.f32 %v3124_v6 }
 0x2c9   :  { %v3125_v13 = vpop.f32.mrf.mxu2 }
 0x2ca   :  { %v5345_v60 = vpop.eup %5344 }
 0x2cb   :  { %v3134_v30 = vpack.c.bf16 %v5345_v60, %v5345_v60 }
 0x2cd   :  { %3442 = vmatmul.bf16.vlgmr.msrb.gmra.mxu2 %v3134_v30 }
 0x310   :  { %v3404_v63 = vpop.f32.mrf.mxu3 }
 0x311   :  { %v3405_v18 = vadd.f32 %v5321_v23, %v3404_v63 }
 0x318   :  { %v3406_v14 = vpop.f32.mrf.mxu3 }
 0x31a   :  { %v3417_v0 = vpop.f32.mrf.mxu0 }
 0x31b   :  { %v3418_v22 = vadd.f32 %v3417_v0, %v3405_v18 }
 0x322   :  { %v3419_v1 = vpop.f32.mrf.mxu0 }
 0x32a   :  { %v3430_v17 = vpop.f32.mrf.mxu1 }
 0x32b   :  { %v3431_v7 = vadd.f32 %v3430_v17, %v3418_v22 }
 0x332   :  { %v3432_v35 = vpop.f32.mrf.mxu1 }
 0x350   :  { %v3443_v3 = vpop.f32.mrf.mxu2 }
 0x351   :  { %v3444_v8 = vadd.f32 %v3443_v3, %v3431_v7 }
 0x353   :  { %v3450_v9 = vsel %vm3449_vm9, %v3444_v8, -inf }
 0x354   :  { %3451 = vmax.xlane.f32.xlu0 %v3450_v9 }
 0x358   :  { %v3445_v21 = vpop.f32.mrf.mxu2 }
 0x3c7   :  { %v3452_v10 = vpop.xlane.xlu0 %3451 }
 0x3c8   :  { %v3453_v12 = vsub.f32 %v3450_v9, %v3452_v10  ;;  %v3458_v29 = vsub.f32 %v3444_v8, %v3452_v10 }
 0x3ca   :  { %v3454_v15 = vmul.f32 1.442695, %v3453_v12 }
 0x3cc   :  { %5346 = vpow2.f32 %v3454_v15 }
 0x3d2   :  { %v5347_v16 = vpop.eup %5346 }
 0x3d3   :  { %3456 = vadd.xlane.f32.xlu0 %v5347_v16 }
 0x446   :  { %v3457_v27 = vpop.xlane.xlu0 %3456 }
 0x447   :  { %5348 = vlog2.f32 %v3457_v27 }
 0x44d   :  { %v5349_v28 = vpop.eup %5348 }
 0x44e   :  { %v3460_v44 = vmul.f32 0.6931472, %v5349_v28 }
 0x450   :  { %v3461_v33 = vsub.f32 %v3458_v29, %v3460_v44 }
 0x452   :  { %3462 = vst [vmem:[#allocation14] sm:$0xff] %v3461_v33 }
 0x453   :  { %3473 = dma.vmem_to_hbm [thread:$0]  %s3469_s24, 128, %s3471_s27, [#allocation4]  }
 0x454   :  { %5550 = dma.done.wait [#allocation4], 128  }
 0x455   :  { %5551 = vsyncadd [#allocation4], 4294967168 }
 0x456   :  { %3478 = vsyncpa [#allocation3], 1 }
 0x457   :  { %3479 = vsyncpa [#allocation6], 1 }
 0x458   :  { %3480 = vsyncpa [#allocation9], 1 }
 0x459   :  { %3481 = vsyncpa [#allocation12], 1 }
 0x45a   :  { %3482 = vsyncpa [#allocation4], 1 }

</bundles_post_ra>
